<compile_context>
chip_gen: v7x
topology: tpu7x:2x2x1
jax: 0.10.0
libtpu: 0.0.40
codegen_flags: <defaults>
</compile_context>

<pallas_src>
import functools
import math

import jax
import jax.numpy as jnp
from jax.experimental import pallas as pl
from jax.experimental.pallas import tpu as pltpu


def _round_up(x, m):
    return (x + m - 1) // m * m


def _pick_tile(total_padded, requested):
    """Largest multiple of 128 <= requested that divides total_padded (itself a
    multiple of 128)."""
    req = max(128, min(_round_up(requested, 128), total_padded))
    cand = req - (req % 128)
    while cand > 128 and total_padded % cand != 0:
        cand -= 128
    return cand


def _num_tensorcores():
    """Heuristic: 2 for v7x-class parts (2 TCs/chip), else 1."""
    try:
        kind = jax.devices()[0].device_kind.lower()
        if "v7" in kind or "7x" in kind:
            return 2
    except Exception:
        pass
    return 1


def _conv3x3_s2_kernel(x_ref, w_ref, b_ref, o_ref,
                       a00_ref, a01_ref, a10_ref, a11_ref, *,
                       apply_relu, bt, hp1, wp):
    """One (batch-supertile, Cout-tile, Cin-tile) step of a 3x3/stride-2/pad-1 conv.

    x_ref : (4, bt, hp1, wp, tk)  phase-split input, phase p = 2*(row par) + col par;
                                  hp1 = ho + 1 rows per image (last row is scrap)
    w_ref : (9, tk, tco)          taps ordered kh*3 + kw
    b_ref : (1, tco)              bias (f32)
    o_ref : (bt, hp1, wp, tco)    output tile (row ho and columns >= wo are scrap)
    aXY   : (bt*hp1*wp, tco) f32  accumulator for taps with (row-shift X, col-shift Y)
    """
    k = pl.program_id(2)
    m = bt * hp1 * wp

    @pl.when(k == 0)
    def _init():
        for r in (a00_ref, a01_ref, a10_ref, a11_ref):
            r[...] = jnp.zeros_like(r)

    # 9 taps, grouped by input phase so each phase slab is loaded (and, for the P7
    # branch, ReLU'd) exactly once per grid step.  Taps are summed into 4 local
    # partials keyed by (row-shift, col-shift) and each scratch accumulator is
    # updated with a single += per step.
    parts = [[None, None], [None, None]]
    for rp in range(2):                               # kh % 2
        for cp in range(2):                           # kw % 2
            ph = x_ref[2 * rp + cp]                   # (bt, hp1, wp, tk)
            if apply_relu:
                ph = jnp.maximum(ph, 0)
            lhs = ph.reshape(m, ph.shape[-1])         # layout-free: wp % sublanes == 0
            for kh in range(rp, 3, 2):
                for kw in range(cp, 3, 2):
                    tap = jnp.dot(lhs, w_ref[kh * 3 + kw],
                                  preferred_element_type=jnp.float32)
                    kh2, kw2 = kh // 2, kw // 2
                    prev = parts[kh2][kw2]
                    parts[kh2][kw2] = tap if prev is None else prev + tap

    a00_ref[...] += parts[0][0]
    a01_ref[...] += parts[0][1]
    a10_ref[...] += parts[1][0]
    a11_ref[...] += parts[1][1]

    @pl.when(k == pl.num_programs(2) - 1)
    def _finalize():
        # out[f] = A00[f] + A01[f+1] + A10[f+wp] + A11[f+wp+1] + bias, with f the
        # flattened (image, out-row, out-col) index.  The wrapped / out-of-image
        # junk only lands in output row ho or in padded columns >= wo (wp >= wo+1),
        # both sliced off in the wrapper.
        out = a00_ref[...] + b_ref[...].astype(jnp.float32)
        out = out + pltpu.roll(a01_ref[...], shift=m - 1, axis=0)
        out = out + pltpu.roll(a10_ref[...], shift=m - wp, axis=0)
        out = out + pltpu.roll(a11_ref[...], shift=m - wp - 1, axis=0)
        o_ref[...] = out.reshape(o_ref.shape).astype(o_ref.dtype)


def conv3x3_s2_p1(x_nhwc, w_oihw, bias, *, apply_relu=False,
                  tk=256, tco=256, compute_dtype=None,
                  max_batch_fold=None, vmem_budget_bytes=32 << 20):
    """3x3 conv, stride 2, padding 1 (PyTorch nn.Conv2d semantics).  NHWC in/out."""
    n, h, w, cin = x_nhwc.shape
    cout = w_oihw.shape[0]
    assert w_oihw.shape[1] == cin and w_oihw.shape[2:] == (3, 3)
    ho, wo = (h + 1) // 2, (w + 1) // 2
    hp1 = ho + 1                                      # +1 scrap row per image

    cdt = x_nhwc.dtype if compute_dtype is None else jnp.dtype(compute_dtype)
    dsize = jnp.dtype(cdt).itemsize
    out_dt = x_nhwc.dtype
    osize = jnp.dtype(out_dt).itemsize

    # ---- tiling ---------------------------------------------------------------
    sub = 8 * max(1, 4 // dsize)                      # 8 (f32) / 16 (bf16) sublanes
    wp = _round_up(wo + 1, sub)                       # padded per-phase/output width
    assert wp >= wo + 1, "column-shift junk must land in padded output columns"

    cin_p = _round_up(cin, 128)
    tk = _pick_tile(cin_p, tk)
    n_k = cin_p // tk
    cout_p = _round_up(cout, 128)
    tco = _pick_tile(cout_p, tco)
    n_co = cout_p // tco

    # batch-fold factor from a VMEM budget (x block + out block double buffered,
    # 4 f32 accumulators, weight block double buffered).
    w_blk = 9 * tk * tco * dsize
    per_img = (2 * 4 * hp1 * wp * tk * dsize
               + 2 * hp1 * wp * tco * osize
               + 4 * hp1 * wp * tco * 4)
    avail = max(per_img, vmem_budget_bytes - 2 * w_blk)
    bt = max(1, min(n, avail // per_img))
    if max_batch_fold is not None:
        bt = max(1, min(bt, int(max_batch_fold)))
    n_t = -(-n // bt)
    bt = -(-n // n_t)
    if _num_tensorcores() >= 2 and n_t * n_co < 2 and n > 1:
        n_t = 2                                       # keep both TCs busy on v7x
        bt = -(-n // n_t)
    # TODO(synk): when batch == 1 and n_co == 1 on a 2-TC part, split Cout or rows.
    n_p = n_t * bt
    m = bt * hp1 * wp

    # ---- layout glue (pure JAX; one fused XLA pass) ----------------------------
    # cast -> channel/batch pad -> spatial pad (conv pad=1 + alignment) -> phase
    # split.  No halo duplication: the +1 row per image is the natural phase extent.
    x = x_nhwc.astype(cdt)
    x = jnp.pad(x, ((0, n_p - n),
                    (1, 2 * hp1 - h - 1),
                    (1, 2 * wp - w - 1),
                    (0, cin_p - cin)))
    x = x.reshape(n_p, hp1, 2, wp, 2, cin_p)
    x = x.transpose(2, 4, 0, 1, 3, 5).reshape(4, n_p, hp1, wp, cin_p)

    # weights OIHW -> (kh*3+kw, cin_p, cout_p); bias -> (1, cout_p) f32
    wk = jnp.pad(w_oihw, ((0, cout_p - cout), (0, cin_p - cin), (0, 0), (0, 0)))
    wk = wk.transpose(2, 3, 1, 0).reshape(9, cin_p, cout_p).astype(cdt)
    b2 = jnp.pad(bias.astype(jnp.float32), (0, cout_p - cout)).reshape(1, cout_p)

    kernel = functools.partial(_conv3x3_s2_kernel, apply_relu=apply_relu,
                               bt=bt, hp1=hp1, wp=wp)

    need = (2 * 4 * bt * hp1 * wp * tk * dsize + 2 * w_blk
            + 2 * bt * hp1 * wp * tco * osize + 4 * m * tco * 4 + (2 << 20))
    vmem_limit = int(min(100 << 20, max(48 << 20, need)))

    out = pl.pallas_call(
        kernel,
        out_shape=jax.ShapeDtypeStruct((n_p, hp1, wp, cout_p), out_dt),
        grid_spec=pltpu.PrefetchScalarGridSpec(
            num_scalar_prefetch=0,
            grid=(n_t, n_co, n_k),
            in_specs=[
                pl.BlockSpec((4, bt, hp1, wp, tk),
                             lambda t, c, k: (0, t, 0, 0, k)),
                pl.BlockSpec((9, tk, tco), lambda t, c, k: (0, k, c)),
                pl.BlockSpec((1, tco), lambda t, c, k: (0, c)),
            ],
            out_specs=pl.BlockSpec((bt, hp1, wp, tco),
                                   lambda t, c, k: (t, 0, 0, c)),
            scratch_shapes=[pltpu.VMEM((m, tco), jnp.float32)] * 4,
        ),
        compiler_params=pltpu.CompilerParams(
            dimension_semantics=("parallel", "parallel", "arbitrary"),
            vmem_limit_bytes=vmem_limit,
        ),
    )(x, wk, b2)

    return out[:n, :ho, :wo, :cout]


def init_last_level_p6p7_params(key, in_channels, out_channels):
    """Deterministic init matching the PyTorch module:
    kaiming_uniform_(a=1) for weights, zeros for biases."""
    k6, k7 = jax.random.split(key)

    def kaiming_uniform(k, cout, cin):
        fan_in = cin * 3 * 3
        gain = math.sqrt(2.0 / (1.0 + 1.0 ** 2))      # a = 1
        bound = gain * math.sqrt(3.0 / fan_in)
        return jax.random.uniform(k, (cout, cin, 3, 3), jnp.float32,
                                  minval=-bound, maxval=bound)

    return {
        "p6_w": kaiming_uniform(k6, out_channels, in_channels),
        "p6_b": jnp.zeros((out_channels,), jnp.float32),
        "p7_w": kaiming_uniform(k7, out_channels, out_channels),
        "p7_b": jnp.zeros((out_channels,), jnp.float32),
    }


@functools.partial(jax.jit, static_argnames=("use_p5", "compute_dtype"))
def _last_level_p6p7_impl(c5, p5, params, use_p5, compute_dtype):
    x_nchw = p5 if use_p5 else c5
    x = jnp.transpose(x_nchw, (0, 2, 3, 1))           # NCHW -> NHWC
    p6 = conv3x3_s2_p1(x, params["p6_w"], params["p6_b"],
                       apply_relu=False, compute_dtype=compute_dtype)
    p7 = conv3x3_s2_p1(p6, params["p7_w"], params["p7_b"],
                       apply_relu=True, compute_dtype=compute_dtype)
    # back to NCHW like the PyTorch module
    return [jnp.transpose(p6, (0, 3, 1, 2)), jnp.transpose(p7, (0, 3, 1, 2))]


def last_level_p6p7(c5, p5, params, in_channels, out_channels,
                    compute_dtype=jnp.bfloat16):
    """Forward pass of LastLevelP6P7.  c5, p5 and outputs are NCHW."""
    return _last_level_p6p7_impl(c5, p5, params,
                                 use_p5=(in_channels == out_channels),
                                 compute_dtype=compute_dtype)


def _reference_conv(x_nchw, w_oihw, b, relu_input=False):
    if relu_input:
        x_nchw = jnp.maximum(x_nchw, 0.0)
    y = jax.lax.conv_general_dilated(
        x_nchw, w_oihw, window_strides=(2, 2), padding=((1, 1), (1, 1)),
        dimension_numbers=("NCHW", "OIHW", "NCHW"),
        precision=jax.lax.Precision.HIGHEST,
    )
    return y + b.reshape(1, -1, 1, 1)


if __name__ == "__main__":
    key = jax.random.PRNGKey(0)
    kc5, kp5, kparam = jax.random.split(key, 3)

    # ---- small prescribed shapes ------------------------------------------------
    in_channels, out_channels = 4, 8    # in != out -> use_P5 is False, x = c5
    N, H, W = 2, 16, 16

    c5 = jax.random.normal(kc5, (N, in_channels, H, W), jnp.float32)
    p5 = jax.random.normal(kp5, (N, out_channels, H, W), jnp.float32)
    params = init_last_level_p6p7_params(kparam, in_channels, out_channels)

    p6_ref = _reference_conv(c5, params["p6_w"], params["p6_b"])
    p7_ref = _reference_conv(p6_ref, params["p7_w"], params["p7_b"],
                             relu_input=True)

    # f32 operands: tight check of the kernel math itself.
    p6, p7 = last_level_p6p7(c5, p5, params, in_channels, out_channels,
                             compute_dtype=jnp.float32)
    jax.block_until_ready((p6, p7))
    assert p6.shape == (N, out_channels, H // 2, W // 2)
    assert p7.shape == (N, out_channels, H // 4, W // 4)
    assert jnp.allclose(p6, p6_ref, atol=1e-4, rtol=1e-4), \
        float(jnp.abs(p6 - p6_ref).max())
    assert jnp.allclose(p7, p7_ref, atol=1e-4, rtol=1e-4), \
        float(jnp.abs(p7 - p7_ref).max())

    # default production path: bf16 operands, f32 accumulation (loose check).
    p6b, p7b = last_level_p6p7(c5, p5, params, in_channels, out_channels)
    jax.block_until_ready((p6b, p7b))
    assert p6b.shape == p6_ref.shape and p7b.shape == p7_ref.shape
    assert float(jnp.abs(p6b.astype(jnp.float32) - p6_ref).max()) < 0.2
    assert float(jnp.abs(p7b.astype(jnp.float32) - p7_ref).max()) < 0.2

    # ---- tiling exercise: multiple Cin (k), Cout (c) and batch-supertile (t)
    #      grid tiles, batch padding and the weight-restream fallback path. --------
    in2, out2, N2, H2, W2 = 320, 320, 3, 20, 20
    kx2, kw2 = jax.random.split(jax.random.PRNGKey(1))
    x2 = jax.random.normal(kx2, (N2, in2, H2, W2), jnp.float32)
    w2 = jax.random.normal(kw2, (out2, in2, 3, 3), jnp.float32) * 0.02
    b2v = jnp.linspace(-0.5, 0.5, out2, dtype=jnp.float32)

    conv_f = jax.jit(lambda a, b, c: conv3x3_s2_p1(
        a, b, c, apply_relu=False, compute_dtype=jnp.float32,
        tco=128, max_batch_fold=2))
    y2 = conv_f(jnp.transpose(x2, (0, 2, 3, 1)), w2, b2v)
    jax.block_until_ready(y2)
    y2 = jnp.transpose(y2, (0, 3, 1, 2))
    y2_ref = _reference_conv(x2, w2, b2v)
    assert y2.shape == y2_ref.shape
    assert jnp.allclose(y2, y2_ref, atol=5e-3, rtol=5e-3), \
        float(jnp.abs(y2 - y2_ref).max())

    print("KERNEL_OK")
</pallas_src>

<mosaic_0001>
module attributes {stable_mosaic.version = 11 : i64} {
  func.func @_conv3x3_s2_kernel(%arg0: i32, %arg1: i32, %arg2: i32, %arg3: memref<4x2x9x16x128xf32, #tpu.memory_space<vmem>>, %arg4: memref<9x128x128xf32, #tpu.memory_space<vmem>>, %arg5: memref<1x128xf32, #tpu.memory_space<vmem>>, %arg6: memref<2x9x16x128xf32, #tpu.memory_space<vmem>>, %arg7: memref<288x128xf32, #tpu.memory_space<vmem>>, %arg8: memref<288x128xf32, #tpu.memory_space<vmem>>, %arg9: memref<288x128xf32, #tpu.memory_space<vmem>>, %arg10: memref<288x128xf32, #tpu.memory_space<vmem>>) attributes {dimension_semantics = [#tpu.dimension_semantics<parallel>, #tpu.dimension_semantics<parallel>, #tpu.dimension_semantics<arbitrary>], iteration_bounds = array<i64: 1, 1, 1>, scalar_prefetch = 0 : i64, scratch_operands = 4 : i64, tpu.core_type = #tpu.core_type<tc>, window_params = [{transform_indices = @transform_0, window_bounds = array<i64: 4, 2, 9, 16, 128>}, {transform_indices = @transform_1, window_bounds = array<i64: 9, 128, 128>}, {transform_indices = @transform_2, window_bounds = array<i64: 1, 128>}, {transform_indices = @transform_3, window_bounds = array<i64: 2, 9, 16, 128>}]} {
    %c0_i32 = arith.constant 0 : i32
    %0 = arith.cmpi eq, %arg2, %c0_i32 : i32
    %1 = arith.extui %0 : i1 to i32
    %c0_i32_0 = arith.constant 0 : i32
    %2 = arith.cmpi ne, %1, %c0_i32_0 : i32
    scf.if %2 {
      %cst_65 = arith.constant 0.000000e+00 : f32
      %62 = vector.broadcast %cst_65 : f32 to vector<288x128xf32>
      %c0_66 = arith.constant 0 : index
      %c0_67 = arith.constant 0 : index
      %63 = vector.load %arg7[%c0_66, %c0_67] : memref<288x128xf32, #tpu.memory_space<vmem>>, vector<288x128xf32>
      tpu.vector_store %arg7[%c0_66, %c0_67], %62 {strides = array<i32>} : memref<288x128xf32, #tpu.memory_space<vmem>>, vector<288x128xf32>,
      %cst_68 = arith.constant 0.000000e+00 : f32
      %64 = vector.broadcast %cst_68 : f32 to vector<288x128xf32>
      %c0_69 = arith.constant 0 : index
      %c0_70 = arith.constant 0 : index
      %65 = vector.load %arg8[%c0_69, %c0_70] : memref<288x128xf32, #tpu.memory_space<vmem>>, vector<288x128xf32>
      tpu.vector_store %arg8[%c0_69, %c0_70], %64 {strides = array<i32>} : memref<288x128xf32, #tpu.memory_space<vmem>>, vector<288x128xf32>,
      %cst_71 = arith.constant 0.000000e+00 : f32
      %66 = vector.broadcast %cst_71 : f32 to vector<288x128xf32>
      %c0_72 = arith.constant 0 : index
      %c0_73 = arith.constant 0 : index
      %67 = vector.load %arg9[%c0_72, %c0_73] : memref<288x128xf32, #tpu.memory_space<vmem>>, vector<288x128xf32>
      tpu.vector_store %arg9[%c0_72, %c0_73], %66 {strides = array<i32>} : memref<288x128xf32, #tpu.memory_space<vmem>>, vector<288x128xf32>,
      %cst_74 = arith.constant 0.000000e+00 : f32
      %68 = vector.broadcast %cst_74 : f32 to vector<288x128xf32>
      %c0_75 = arith.constant 0 : index
      %c0_76 = arith.constant 0 : index
      %69 = vector.load %arg10[%c0_75, %c0_76] : memref<288x128xf32, #tpu.memory_space<vmem>>, vector<288x128xf32>
      tpu.vector_store %arg10[%c0_75, %c0_76], %68 {strides = array<i32>} : memref<288x128xf32, #tpu.memory_space<vmem>>, vector<288x128xf32>,
    } else {
    }
    %c0 = arith.constant 0 : index
    %c0_1 = arith.constant 0 : index
    %c0_2 = arith.constant 0 : index
    %c0_3 = arith.constant 0 : index
    %c0_4 = arith.constant 0 : index
    %3 = vector.load %arg3[%c0, %c0_1, %c0_2, %c0_3, %c0_4] : memref<4x2x9x16x128xf32, #tpu.memory_space<vmem>>, vector<1x2x9x16x128xf32>
    %4 = vector.shape_cast %3 : vector<1x2x9x16x128xf32> to vector<2x9x16x128xf32>
    %5 = vector.shape_cast %4 : vector<2x9x16x128xf32> to vector<288x128xf32>
    %c0_5 = arith.constant 0 : index
    %c0_6 = arith.constant 0 : index
    %c0_7 = arith.constant 0 : index
    %6 = vector.load %arg4[%c0_5, %c0_6, %c0_7] : memref<9x128x128xf32, #tpu.memory_space<vmem>>, vector<1x128x128xf32>
    %7 = vector.shape_cast %6 : vector<1x128x128xf32> to vector<128x128xf32>
    %cst = arith.constant dense<0.000000e+00> : vector<288x128xf32>
    %8 = tpu.matmul %5, %7, %cst {dimension_numbers = #tpu.dot_dimension_numbers<[1], [0], [0], [1], [0, 0, 1, 1], [], []>} : vector<288x128xf32>, vector<128x128xf32>, vector<288x128xf32> -> vector<288x128xf32>
    %c2 = arith.constant 2 : index
    %c0_8 = arith.constant 0 : index
    %c0_9 = arith.constant 0 : index
    %9 = vector.load %arg4[%c2, %c0_8, %c0_9] : memref<9x128x128xf32, #tpu.memory_space<vmem>>, vector<1x128x128xf32>
    %10 = vector.shape_cast %9 : vector<1x128x128xf32> to vector<128x128xf32>
    %cst_10 = arith.constant dense<0.000000e+00> : vector<288x128xf32>
    %11 = tpu.matmul %5, %10, %cst_10 {dimension_numbers = #tpu.dot_dimension_numbers<[1], [0], [0], [1], [0, 0, 1, 1], [], []>} : vector<288x128xf32>, vector<128x128xf32>, vector<288x128xf32> -> vector<288x128xf32>
    %c6 = arith.constant 6 : index
    %c0_11 = arith.constant 0 : index
    %c0_12 = arith.constant 0 : index
    %12 = vector.load %arg4[%c6, %c0_11, %c0_12] : memref<9x128x128xf32, #tpu.memory_space<vmem>>, vector<1x128x128xf32>
    %13 = vector.shape_cast %12 : vector<1x128x128xf32> to vector<128x128xf32>
    %cst_13 = arith.constant dense<0.000000e+00> : vector<288x128xf32>
    %14 = tpu.matmul %5, %13, %cst_13 {dimension_numbers = #tpu.dot_dimension_numbers<[1], [0], [0], [1], [0, 0, 1, 1], [], []>} : vector<288x128xf32>, vector<128x128xf32>, vector<288x128xf32> -> vector<288x128xf32>
    %c8 = arith.constant 8 : index
    %c0_14 = arith.constant 0 : index
    %c0_15 = arith.constant 0 : index
    %15 = vector.load %arg4[%c8, %c0_14, %c0_15] : memref<9x128x128xf32, #tpu.memory_space<vmem>>, vector<1x128x128xf32>
    %16 = vector.shape_cast %15 : vector<1x128x128xf32> to vector<128x128xf32>
    %cst_16 = arith.constant dense<0.000000e+00> : vector<288x128xf32>
    %17 = tpu.matmul %5, %16, %cst_16 {dimension_numbers = #tpu.dot_dimension_numbers<[1], [0], [0], [1], [0, 0, 1, 1], [], []>} : vector<288x128xf32>, vector<128x128xf32>, vector<288x128xf32> -> vector<288x128xf32>
    %c1 = arith.constant 1 : index
    %c0_17 = arith.constant 0 : index
    %c0_18 = arith.constant 0 : index
    %c0_19 = arith.constant 0 : index
    %c0_20 = arith.constant 0 : index
    %18 = vector.load %arg3[%c1, %c0_17, %c0_18, %c0_19, %c0_20] : memref<4x2x9x16x128xf32, #tpu.memory_space<vmem>>, vector<1x2x9x16x128xf32>
    %19 = vector.shape_cast %18 : vector<1x2x9x16x128xf32> to vector<2x9x16x128xf32>
    %20 = vector.shape_cast %19 : vector<2x9x16x128xf32> to vector<288x128xf32>
    %c1_21 = arith.constant 1 : index
    %c0_22 = arith.constant 0 : index
    %c0_23 = arith.constant 0 : index
    %21 = vector.load %arg4[%c1_21, %c0_22, %c0_23] : memref<9x128x128xf32, #tpu.memory_space<vmem>>, vector<1x128x128xf32>
    %22 = vector.shape_cast %21 : vector<1x128x128xf32> to vector<128x128xf32>
    %cst_24 = arith.constant dense<0.000000e+00> : vector<288x128xf32>
    %23 = tpu.matmul %20, %22, %cst_24 {dimension_numbers = #tpu.dot_dimension_numbers<[1], [0], [0], [1], [0, 0, 1, 1], [], []>} : vector<288x128xf32>, vector<128x128xf32>, vector<288x128xf32> -> vector<288x128xf32>
    %24 = arith.addf %8, %23 : vector<288x128xf32>
    %c7 = arith.constant 7 : index
    %c0_25 = arith.constant 0 : index
    %c0_26 = arith.constant 0 : index
    %25 = vector.load %arg4[%c7, %c0_25, %c0_26] : memref<9x128x128xf32, #tpu.memory_space<vmem>>, vector<1x128x128xf32>
    %26 = vector.shape_cast %25 : vector<1x128x128xf32> to vector<128x128xf32>
    %cst_27 = arith.constant dense<0.000000e+00> : vector<288x128xf32>
    %27 = tpu.matmul %20, %26, %cst_27 {dimension_numbers = #tpu.dot_dimension_numbers<[1], [0], [0], [1], [0, 0, 1, 1], [], []>} : vector<288x128xf32>, vector<128x128xf32>, vector<288x128xf32> -> vector<288x128xf32>
    %28 = arith.addf %14, %27 : vector<288x128xf32>
    %c2_28 = arith.constant 2 : index
    %c0_29 = arith.constant 0 : index
    %c0_30 = arith.constant 0 : index
    %c0_31 = arith.constant 0 : index
    %c0_32 = arith.constant 0 : index
    %29 = vector.load %arg3[%c2_28, %c0_29, %c0_30, %c0_31, %c0_32] : memref<4x2x9x16x128xf32, #tpu.memory_space<vmem>>, vector<1x2x9x16x128xf32>
    %30 = vector.shape_cast %29 : vector<1x2x9x16x128xf32> to vector<2x9x16x128xf32>
    %31 = vector.shape_cast %30 : vector<2x9x16x128xf32> to vector<288x128xf32>
    %c3 = arith.constant 3 : index
    %c0_33 = arith.constant 0 : index
    %c0_34 = arith.constant 0 : index
    %32 = vector.load %arg4[%c3, %c0_33, %c0_34] : memref<9x128x128xf32, #tpu.memory_space<vmem>>, vector<1x128x128xf32>
    %33 = vector.shape_cast %32 : vector<1x128x128xf32> to vector<128x128xf32>
    %cst_35 = arith.constant dense<0.000000e+00> : vector<288x128xf32>
    %34 = tpu.matmul %31, %33, %cst_35 {dimension_numbers = #tpu.dot_dimension_numbers<[1], [0], [0], [1], [0, 0, 1, 1], [], []>} : vector<288x128xf32>, vector<128x128xf32>, vector<288x128xf32> -> vector<288x128xf32>
    %35 = arith.addf %24, %34 : vector<288x128xf32>
    %c5 = arith.constant 5 : index
    %c0_36 = arith.constant 0 : index
    %c0_37 = arith.constant 0 : index
    %36 = vector.load %arg4[%c5, %c0_36, %c0_37] : memref<9x128x128xf32, #tpu.memory_space<vmem>>, vector<1x128x128xf32>
    %37 = vector.shape_cast %36 : vector<1x128x128xf32> to vector<128x128xf32>
    %cst_38 = arith.constant dense<0.000000e+00> : vector<288x128xf32>
    %38 = tpu.matmul %31, %37, %cst_38 {dimension_numbers = #tpu.dot_dimension_numbers<[1], [0], [0], [1], [0, 0, 1, 1], [], []>} : vector<288x128xf32>, vector<128x128xf32>, vector<288x128xf32> -> vector<288x128xf32>
    %39 = arith.addf %11, %38 : vector<288x128xf32>
    %c3_39 = arith.constant 3 : index
    %c0_40 = arith.constant 0 : index
    %c0_41 = arith.constant 0 : index
    %c0_42 = arith.constant 0 : index
    %c0_43 = arith.constant 0 : index
    %40 = vector.load %arg3[%c3_39, %c0_40, %c0_41, %c0_42, %c0_43] : memref<4x2x9x16x128xf32, #tpu.memory_space<vmem>>, vector<1x2x9x16x128xf32>
    %41 = vector.shape_cast %40 : vector<1x2x9x16x128xf32> to vector<2x9x16x128xf32>
    %42 = vector.shape_cast %41 : vector<2x9x16x128xf32> to vector<288x128xf32>
    %c4 = arith.constant 4 : index
    %c0_44 = arith.constant 0 : index
    %c0_45 = arith.constant 0 : index
    %43 = vector.load %arg4[%c4, %c0_44, %c0_45] : memref<9x128x128xf32, #tpu.memory_space<vmem>>, vector<1x128x128xf32>
    %44 = vector.shape_cast %43 : vector<1x128x128xf32> to vector<128x128xf32>
    %cst_46 = arith.constant dense<0.000000e+00> : vector<288x128xf32>
    %45 = tpu.matmul %42, %44, %cst_46 {dimension_numbers = #tpu.dot_dimension_numbers<[1], [0], [0], [1], [0, 0, 1, 1], [], []>} : vector<288x128xf32>, vector<128x128xf32>, vector<288x128xf32> -> vector<288x128xf32>
    %46 = arith.addf %35, %45 : vector<288x128xf32>
    %c0_47 = arith.constant 0 : index
    %c0_48 = arith.constant 0 : index
    %47 = vector.load %arg7[%c0_47, %c0_48] : memref<288x128xf32, #tpu.memory_space<vmem>>, vector<288x128xf32>
    %48 = arith.addf %47, %46 : vector<288x128xf32>
    %c0_49 = arith.constant 0 : index
    %c0_50 = arith.constant 0 : index
    %49 = vector.load %arg7[%c0_49, %c0_50] : memref<288x128xf32, #tpu.memory_space<vmem>>, vector<288x128xf32>
    tpu.vector_store %arg7[%c0_49, %c0_50], %48 {strides = array<i32>} : memref<288x128xf32, #tpu.memory_space<vmem>>, vector<288x128xf32>,
    %c0_51 = arith.constant 0 : index
    %c0_52 = arith.constant 0 : index
    %50 = vector.load %arg8[%c0_51, %c0_52] : memref<288x128xf32, #tpu.memory_space<vmem>>, vector<288x128xf32>
    %51 = arith.addf %50, %39 : vector<288x128xf32>
    %c0_53 = arith.constant 0 : index
    %c0_54 = arith.constant 0 : index
    %52 = vector.load %arg8[%c0_53, %c0_54] : memref<288x128xf32, #tpu.memory_space<vmem>>, vector<288x128xf32>
    tpu.vector_store %arg8[%c0_53, %c0_54], %51 {strides = array<i32>} : memref<288x128xf32, #tpu.memory_space<vmem>>, vector<288x128xf32>,
    %c0_55 = arith.constant 0 : index
    %c0_56 = arith.constant 0 : index
    %53 = vector.load %arg9[%c0_55, %c0_56] : memref<288x128xf32, #tpu.memory_space<vmem>>, vector<288x128xf32>
    %54 = arith.addf %53, %28 : vector<288x128xf32>
    %c0_57 = arith.constant 0 : index
    %c0_58 = arith.constant 0 : index
    %55 = vector.load %arg9[%c0_57, %c0_58] : memref<288x128xf32, #tpu.memory_space<vmem>>, vector<288x128xf32>
    tpu.vector_store %arg9[%c0_57, %c0_58], %54 {strides = array<i32>} : memref<288x128xf32, #tpu.memory_space<vmem>>, vector<288x128xf32>,
    %c0_59 = arith.constant 0 : index
    %c0_60 = arith.constant 0 : index
    %56 = vector.load %arg10[%c0_59, %c0_60] : memref<288x128xf32, #tpu.memory_space<vmem>>, vector<288x128xf32>
    %57 = arith.addf %56, %17 : vector<288x128xf32>
    %c0_61 = arith.constant 0 : index
    %c0_62 = arith.constant 0 : index
    %58 = vector.load %arg10[%c0_61, %c0_62] : memref<288x128xf32, #tpu.memory_space<vmem>>, vector<288x128xf32>
    tpu.vector_store %arg10[%c0_61, %c0_62], %57 {strides = array<i32>} : memref<288x128xf32, #tpu.memory_space<vmem>>, vector<288x128xf32>,
    %c0_i32_63 = arith.constant 0 : i32
    %59 = arith.cmpi eq, %arg2, %c0_i32_63 : i32
    %60 = arith.extui %59 : i1 to i32
    %c0_i32_64 = arith.constant 0 : i32
    %61 = arith.cmpi ne, %60, %c0_i32_64 : i32
    scf.if %61 {
      %c0_65 = arith.constant 0 : index
      %c0_66 = arith.constant 0 : index
      %62 = vector.load %arg7[%c0_65, %c0_66] : memref<288x128xf32, #tpu.memory_space<vmem>>, vector<288x128xf32>
      %c0_67 = arith.constant 0 : index
      %c0_68 = arith.constant 0 : index
      %63 = vector.load %arg5[%c0_67, %c0_68] : memref<1x128xf32, #tpu.memory_space<vmem>>, vector<1x128xf32>
      %64 = vector.broadcast %63 : vector<1x128xf32> to vector<288x128xf32>
      %65 = arith.addf %62, %64 : vector<288x128xf32>
      %c0_69 = arith.constant 0 : index
      %c0_70 = arith.constant 0 : index
      %66 = vector.load %arg8[%c0_69, %c0_70] : memref<288x128xf32, #tpu.memory_space<vmem>>, vector<288x128xf32>
      %c287_i32 = arith.constant 287 : i32
      %67 = tpu.dynamic_rotate %66 by %c287_i32 dim 0 : vector<288x128xf32>, i32 -> vector<288x128xf32>
      %68 = arith.addf %65, %67 : vector<288x128xf32>
      %c0_71 = arith.constant 0 : index
      %c0_72 = arith.constant 0 : index
      %69 = vector.load %arg9[%c0_71, %c0_72] : memref<288x128xf32, #tpu.memory_space<vmem>>, vector<288x128xf32>
      %c272_i32 = arith.constant 272 : i32
      %70 = tpu.dynamic_rotate %69 by %c272_i32 dim 0 : vector<288x128xf32>, i32 -> vector<288x128xf32>
      %71 = arith.addf %68, %70 : vector<288x128xf32>
      %c0_73 = arith.constant 0 : index
      %c0_74 = arith.constant 0 : index
      %72 = vector.load %arg10[%c0_73, %c0_74] : memref<288x128xf32, #tpu.memory_space<vmem>>, vector<288x128xf32>
      %c271_i32 = arith.constant 271 : i32
      %73 = tpu.dynamic_rotate %72 by %c271_i32 dim 0 : vector<288x128xf32>, i32 -> vector<288x128xf32>
      %74 = arith.addf %71, %73 : vector<288x128xf32>
      %75 = vector.shape_cast %74 : vector<288x128xf32> to vector<2x9x16x128xf32>
      %c0_75 = arith.constant 0 : index
      %c0_76 = arith.constant 0 : index
      %c0_77 = arith.constant 0 : index
      %c0_78 = arith.constant 0 : index
      %76 = vector.load %arg6[%c0_75, %c0_76, %c0_77, %c0_78] : memref<2x9x16x128xf32, #tpu.memory_space<vmem>>, vector<2x9x16x128xf32>
      tpu.vector_store %arg6[%c0_75, %c0_76, %c0_77, %c0_78], %75 {strides = array<i32>} : memref<2x9x16x128xf32, #tpu.memory_space<vmem>>, vector<2x9x16x128xf32>,
    } else {
    }
    return
  }
  func.func @transform_0(%arg0: i32, %arg1: i32, %arg2: i32) -> (i32, i32, i32, i32, i32) {
    %c0_i32 = arith.constant 0 : i32
    %c0_i32_0 = arith.constant 0 : i32
    %c0_i32_1 = arith.constant 0 : i32
    %c0_i32_2 = arith.constant 0 : i32
    return %c0_i32, %arg0, %c0_i32_0, %c0_i32_1, %arg2 : i32, i32, i32, i32, i32
  }
  func.func @transform_1(%arg0: i32, %arg1: i32, %arg2: i32) -> (i32, i32, i32) {
    %c0_i32 = arith.constant 0 : i32
    %c0_i32_0 = arith.constant 0 : i32
    return %c0_i32, %arg2, %arg1 : i32, i32, i32
  }
  func.func @transform_2(%arg0: i32, %arg1: i32, %arg2: i32) -> (i32, i32) {
    %c0_i32 = arith.constant 0 : i32
    %c0_i32_0 = arith.constant 0 : i32
    return %c0_i32, %arg1 : i32, i32
  }
  func.func @transform_3(%arg0: i32, %arg1: i32, %arg2: i32) -> (i32, i32, i32, i32) {
    %c0_i32 = arith.constant 0 : i32
    %c0_i32_0 = arith.constant 0 : i32
    %c0_i32_1 = arith.constant 0 : i32
    return %arg0, %c0_i32, %c0_i32_0, %arg1 : i32, i32, i32, i32
  }
}

module attributes {stable_mosaic.version = 11 : i64} {
  func.func @_conv3x3_s2_kernel(%arg0: i32, %arg1: i32, %arg2: i32, %arg3: memref<4x2x5x8x128xf32, #tpu.memory_space<vmem>>, %arg4: memref<9x128x128xf32, #tpu.memory_space<vmem>>, %arg5: memref<1x128xf32, #tpu.memory_space<vmem>>, %arg6: memref<2x5x8x128xf32, #tpu.memory_space<vmem>>, %arg7: memref<80x128xf32, #tpu.memory_space<vmem>>, %arg8: memref<80x128xf32, #tpu.memory_space<vmem>>, %arg9: memref<80x128xf32, #tpu.memory_space<vmem>>, %arg10: memref<80x128xf32, #tpu.memory_space<vmem>>) attributes {dimension_semantics = [#tpu.dimension_semantics<parallel>, #tpu.dimension_semantics<parallel>, #tpu.dimension_semantics<arbitrary>], iteration_bounds = array<i64: 1, 1, 1>, scalar_prefetch = 0 : i64, scratch_operands = 4 : i64, tpu.core_type = #tpu.core_type<tc>, window_params = [{transform_indices = @transform_0, window_bounds = array<i64: 4, 2, 5, 8, 128>}, {transform_indices = @transform_1, window_bounds = array<i64: 9, 128, 128>}, {transform_indices = @transform_2, window_bounds = array<i64: 1, 128>}, {transform_indices = @transform_3, window_bounds = array<i64: 2, 5, 8, 128>}]} {
    %c0_i32 = arith.constant 0 : i32
    %0 = arith.cmpi eq, %arg2, %c0_i32 : i32
    %1 = arith.extui %0 : i1 to i32
    %c0_i32_0 = arith.constant 0 : i32
    %2 = arith.cmpi ne, %1, %c0_i32_0 : i32
    scf.if %2 {
      %cst_69 = arith.constant 0.000000e+00 : f32
      %70 = vector.broadcast %cst_69 : f32 to vector<80x128xf32>
      %c0_70 = arith.constant 0 : index
      %c0_71 = arith.constant 0 : index
      %71 = vector.load %arg7[%c0_70, %c0_71] : memref<80x128xf32, #tpu.memory_space<vmem>>, vector<80x128xf32>
      tpu.vector_store %arg7[%c0_70, %c0_71], %70 {strides = array<i32>} : memref<80x128xf32, #tpu.memory_space<vmem>>, vector<80x128xf32>,
      %cst_72 = arith.constant 0.000000e+00 : f32
      %72 = vector.broadcast %cst_72 : f32 to vector<80x128xf32>
      %c0_73 = arith.constant 0 : index
      %c0_74 = arith.constant 0 : index
      %73 = vector.load %arg8[%c0_73, %c0_74] : memref<80x128xf32, #tpu.memory_space<vmem>>, vector<80x128xf32>
      tpu.vector_store %arg8[%c0_73, %c0_74], %72 {strides = array<i32>} : memref<80x128xf32, #tpu.memory_space<vmem>>, vector<80x128xf32>,
      %cst_75 = arith.constant 0.000000e+00 : f32
      %74 = vector.broadcast %cst_75 : f32 to vector<80x128xf32>
      %c0_76 = arith.constant 0 : index
      %c0_77 = arith.constant 0 : index
      %75 = vector.load %arg9[%c0_76, %c0_77] : memref<80x128xf32, #tpu.memory_space<vmem>>, vector<80x128xf32>
      tpu.vector_store %arg9[%c0_76, %c0_77], %74 {strides = array<i32>} : memref<80x128xf32, #tpu.memory_space<vmem>>, vector<80x128xf32>,
      %cst_78 = arith.constant 0.000000e+00 : f32
      %76 = vector.broadcast %cst_78 : f32 to vector<80x128xf32>
      %c0_79 = arith.constant 0 : index
      %c0_80 = arith.constant 0 : index
      %77 = vector.load %arg10[%c0_79, %c0_80] : memref<80x128xf32, #tpu.memory_space<vmem>>, vector<80x128xf32>
      tpu.vector_store %arg10[%c0_79, %c0_80], %76 {strides = array<i32>} : memref<80x128xf32, #tpu.memory_space<vmem>>, vector<80x128xf32>,
    } else {
    }
    %c0 = arith.constant 0 : index
    %c0_1 = arith.constant 0 : index
    %c0_2 = arith.constant 0 : index
    %c0_3 = arith.constant 0 : index
    %c0_4 = arith.constant 0 : index
    %3 = vector.load %arg3[%c0, %c0_1, %c0_2, %c0_3, %c0_4] : memref<4x2x5x8x128xf32, #tpu.memory_space<vmem>>, vector<1x2x5x8x128xf32>
    %4 = vector.shape_cast %3 : vector<1x2x5x8x128xf32> to vector<2x5x8x128xf32>
    %cst = arith.constant 0.000000e+00 : f32
    %5 = vector.broadcast %cst : f32 to vector<2x5x8x128xf32>
    %6 = arith.maximumf %4, %5 : vector<2x5x8x128xf32>
    %7 = vector.shape_cast %6 : vector<2x5x8x128xf32> to vector<80x128xf32>
    %c0_5 = arith.constant 0 : index
    %c0_6 = arith.constant 0 : index
    %c0_7 = arith.constant 0 : index
    %8 = vector.load %arg4[%c0_5, %c0_6, %c0_7] : memref<9x128x128xf32, #tpu.memory_space<vmem>>, vector<1x128x128xf32>
    %9 = vector.shape_cast %8 : vector<1x128x128xf32> to vector<128x128xf32>
    %cst_8 = arith.constant dense<0.000000e+00> : vector<80x128xf32>
    %10 = tpu.matmul %7, %9, %cst_8 {dimension_numbers = #tpu.dot_dimension_numbers<[1], [0], [0], [1], [0, 0, 1, 1], [], []>} : vector<80x128xf32>, vector<128x128xf32>, vector<80x128xf32> -> vector<80x128xf32>
    %c2 = arith.constant 2 : index
    %c0_9 = arith.constant 0 : index
    %c0_10 = arith.constant 0 : index
    %11 = vector.load %arg4[%c2, %c0_9, %c0_10] : memref<9x128x128xf32, #tpu.memory_space<vmem>>, vector<1x128x128xf32>
    %12 = vector.shape_cast %11 : vector<1x128x128xf32> to vector<128x128xf32>
    %cst_11 = arith.constant dense<0.000000e+00> : vector<80x128xf32>
    %13 = tpu.matmul %7, %12, %cst_11 {dimension_numbers = #tpu.dot_dimension_numbers<[1], [0], [0], [1], [0, 0, 1, 1], [], []>} : vector<80x128xf32>, vector<128x128xf32>, vector<80x128xf32> -> vector<80x128xf32>
    %c6 = arith.constant 6 : index
    %c0_12 = arith.constant 0 : index
    %c0_13 = arith.constant 0 : index
    %14 = vector.load %arg4[%c6, %c0_12, %c0_13] : memref<9x128x128xf32, #tpu.memory_space<vmem>>, vector<1x128x128xf32>
    %15 = vector.shape_cast %14 : vector<1x128x128xf32> to vector<128x128xf32>
    %cst_14 = arith.constant dense<0.000000e+00> : vector<80x128xf32>
    %16 = tpu.matmul %7, %15, %cst_14 {dimension_numbers = #tpu.dot_dimension_numbers<[1], [0], [0], [1], [0, 0, 1, 1], [], []>} : vector<80x128xf32>, vector<128x128xf32>, vector<80x128xf32> -> vector<80x128xf32>
    %c8 = arith.constant 8 : index
    %c0_15 = arith.constant 0 : index
    %c0_16 = arith.constant 0 : index
    %17 = vector.load %arg4[%c8, %c0_15, %c0_16] : memref<9x128x128xf32, #tpu.memory_space<vmem>>, vector<1x128x128xf32>
    %18 = vector.shape_cast %17 : vector<1x128x128xf32> to vector<128x128xf32>
    %cst_17 = arith.constant dense<0.000000e+00> : vector<80x128xf32>
    %19 = tpu.matmul %7, %18, %cst_17 {dimension_numbers = #tpu.dot_dimension_numbers<[1], [0], [0], [1], [0, 0, 1, 1], [], []>} : vector<80x128xf32>, vector<128x128xf32>, vector<80x128xf32> -> vector<80x128xf32>
    %c1 = arith.constant 1 : index
    %c0_18 = arith.constant 0 : index
    %c0_19 = arith.constant 0 : index
    %c0_20 = arith.constant 0 : index
    %c0_21 = arith.constant 0 : index
    %20 = vector.load %arg3[%c1, %c0_18, %c0_19, %c0_20, %c0_21] : memref<4x2x5x8x128xf32, #tpu.memory_space<vmem>>, vector<1x2x5x8x128xf32>
    %21 = vector.shape_cast %20 : vector<1x2x5x8x128xf32> to vector<2x5x8x128xf32>
    %cst_22 = arith.constant 0.000000e+00 : f32
    %22 = vector.broadcast %cst_22 : f32 to vector<2x5x8x128xf32>
    %23 = arith.maximumf %21, %22 : vector<2x5x8x128xf32>
    %24 = vector.shape_cast %23 : vector<2x5x8x128xf32> to vector<80x128xf32>
    %c1_23 = arith.constant 1 : index
    %c0_24 = arith.constant 0 : index
    %c0_25 = arith.constant 0 : index
    %25 = vector.load %arg4[%c1_23, %c0_24, %c0_25] : memref<9x128x128xf32, #tpu.memory_space<vmem>>, vector<1x128x128xf32>
    %26 = vector.shape_cast %25 : vector<1x128x128xf32> to vector<128x128xf32>
    %cst_26 = arith.constant dense<0.000000e+00> : vector<80x128xf32>
    %27 = tpu.matmul %24, %26, %cst_26 {dimension_numbers = #tpu.dot_dimension_numbers<[1], [0], [0], [1], [0, 0, 1, 1], [], []>} : vector<80x128xf32>, vector<128x128xf32>, vector<80x128xf32> -> vector<80x128xf32>
    %28 = arith.addf %10, %27 : vector<80x128xf32>
    %c7 = arith.constant 7 : index
    %c0_27 = arith.constant 0 : index
    %c0_28 = arith.constant 0 : index
    %29 = vector.load %arg4[%c7, %c0_27, %c0_28] : memref<9x128x128xf32, #tpu.memory_space<vmem>>, vector<1x128x128xf32>
    %30 = vector.shape_cast %29 : vector<1x128x128xf32> to vector<128x128xf32>
    %cst_29 = arith.constant dense<0.000000e+00> : vector<80x128xf32>
    %31 = tpu.matmul %24, %30, %cst_29 {dimension_numbers = #tpu.dot_dimension_numbers<[1], [0], [0], [1], [0, 0, 1, 1], [], []>} : vector<80x128xf32>, vector<128x128xf32>, vector<80x128xf32> -> vector<80x128xf32>
    %32 = arith.addf %16, %31 : vector<80x128xf32>
    %c2_30 = arith.constant 2 : index
    %c0_31 = arith.constant 0 : index
    %c0_32 = arith.constant 0 : index
    %c0_33 = arith.constant 0 : index
    %c0_34 = arith.constant 0 : index
    %33 = vector.load %arg3[%c2_30, %c0_31, %c0_32, %c0_33, %c0_34] : memref<4x2x5x8x128xf32, #tpu.memory_space<vmem>>, vector<1x2x5x8x128xf32>
    %34 = vector.shape_cast %33 : vector<1x2x5x8x128xf32> to vector<2x5x8x128xf32>
    %cst_35 = arith.constant 0.000000e+00 : f32
    %35 = vector.broadcast %cst_35 : f32 to vector<2x5x8x128xf32>
    %36 = arith.maximumf %34, %35 : vector<2x5x8x128xf32>
    %37 = vector.shape_cast %36 : vector<2x5x8x128xf32> to vector<80x128xf32>
    %c3 = arith.constant 3 : index
    %c0_36 = arith.constant 0 : index
    %c0_37 = arith.constant 0 : index
    %38 = vector.load %arg4[%c3, %c0_36, %c0_37] : memref<9x128x128xf32, #tpu.memory_space<vmem>>, vector<1x128x128xf32>
    %39 = vector.shape_cast %38 : vector<1x128x128xf32> to vector<128x128xf32>
    %cst_38 = arith.constant dense<0.000000e+00> : vector<80x128xf32>
    %40 = tpu.matmul %37, %39, %cst_38 {dimension_numbers = #tpu.dot_dimension_numbers<[1], [0], [0], [1], [0, 0, 1, 1], [], []>} : vector<80x128xf32>, vector<128x128xf32>, vector<80x128xf32> -> vector<80x128xf32>
    %41 = arith.addf %28, %40 : vector<80x128xf32>
    %c5 = arith.constant 5 : index
    %c0_39 = arith.constant 0 : index
    %c0_40 = arith.constant 0 : index
    %42 = vector.load %arg4[%c5, %c0_39, %c0_40] : memref<9x128x128xf32, #tpu.memory_space<vmem>>, vector<1x128x128xf32>
    %43 = vector.shape_cast %42 : vector<1x128x128xf32> to vector<128x128xf32>
    %cst_41 = arith.constant dense<0.000000e+00> : vector<80x128xf32>
    %44 = tpu.matmul %37, %43, %cst_41 {dimension_numbers = #tpu.dot_dimension_numbers<[1], [0], [0], [1], [0, 0, 1, 1], [], []>} : vector<80x128xf32>, vector<128x128xf32>, vector<80x128xf32> -> vector<80x128xf32>
    %45 = arith.addf %13, %44 : vector<80x128xf32>
    %c3_42 = arith.constant 3 : index
    %c0_43 = arith.constant 0 : index
    %c0_44 = arith.constant 0 : index
    %c0_45 = arith.constant 0 : index
    %c0_46 = arith.constant 0 : index
    %46 = vector.load %arg3[%c3_42, %c0_43, %c0_44, %c0_45, %c0_46] : memref<4x2x5x8x128xf32, #tpu.memory_space<vmem>>, vector<1x2x5x8x128xf32>
    %47 = vector.shape_cast %46 : vector<1x2x5x8x128xf32> to vector<2x5x8x128xf32>
    %cst_47 = arith.constant 0.000000e+00 : f32
    %48 = vector.broadcast %cst_47 : f32 to vector<2x5x8x128xf32>
    %49 = arith.maximumf %47, %48 : vector<2x5x8x128xf32>
    %50 = vector.shape_cast %49 : vector<2x5x8x128xf32> to vector<80x128xf32>
    %c4 = arith.constant 4 : index
    %c0_48 = arith.constant 0 : index
    %c0_49 = arith.constant 0 : index
    %51 = vector.load %arg4[%c4, %c0_48, %c0_49] : memref<9x128x128xf32, #tpu.memory_space<vmem>>, vector<1x128x128xf32>
    %52 = vector.shape_cast %51 : vector<1x128x128xf32> to vector<128x128xf32>
    %cst_50 = arith.constant dense<0.000000e+00> : vector<80x128xf32>
    %53 = tpu.matmul %50, %52, %cst_50 {dimension_numbers = #tpu.dot_dimension_numbers<[1], [0], [0], [1], [0, 0, 1, 1], [], []>} : vector<80x128xf32>, vector<128x128xf32>, vector<80x128xf32> -> vector<80x128xf32>
    %54 = arith.addf %41, %53 : vector<80x128xf32>
    %c0_51 = arith.constant 0 : index
    %c0_52 = arith.constant 0 : index
    %55 = vector.load %arg7[%c0_51, %c0_52] : memref<80x128xf32, #tpu.memory_space<vmem>>, vector<80x128xf32>
    %56 = arith.addf %55, %54 : vector<80x128xf32>
    %c0_53 = arith.constant 0 : index
    %c0_54 = arith.constant 0 : index
    %57 = vector.load %arg7[%c0_53, %c0_54] : memref<80x128xf32, #tpu.memory_space<vmem>>, vector<80x128xf32>
    tpu.vector_store %arg7[%c0_53, %c0_54], %56 {strides = array<i32>} : memref<80x128xf32, #tpu.memory_space<vmem>>, vector<80x128xf32>,
    %c0_55 = arith.constant 0 : index
    %c0_56 = arith.constant 0 : index
    %58 = vector.load %arg8[%c0_55, %c0_56] : memref<80x128xf32, #tpu.memory_space<vmem>>, vector<80x128xf32>
    %59 = arith.addf %58, %45 : vector<80x128xf32>
    %c0_57 = arith.constant 0 : index
    %c0_58 = arith.constant 0 : index
    %60 = vector.load %arg8[%c0_57, %c0_58] : memref<80x128xf32, #tpu.memory_space<vmem>>, vector<80x128xf32>
    tpu.vector_store %arg8[%c0_57, %c0_58], %59 {strides = array<i32>} : memref<80x128xf32, #tpu.memory_space<vmem>>, vector<80x128xf32>,
    %c0_59 = arith.constant 0 : index
    %c0_60 = arith.constant 0 : index
    %61 = vector.load %arg9[%c0_59, %c0_60] : memref<80x128xf32, #tpu.memory_space<vmem>>, vector<80x128xf32>
    %62 = arith.addf %61, %32 : vector<80x128xf32>
    %c0_61 = arith.constant 0 : index
    %c0_62 = arith.constant 0 : index
    %63 = vector.load %arg9[%c0_61, %c0_62] : memref<80x128xf32, #tpu.memory_space<vmem>>, vector<80x128xf32>
    tpu.vector_store %arg9[%c0_61, %c0_62], %62 {strides = array<i32>} : memref<80x128xf32, #tpu.memory_space<vmem>>, vector<80x128xf32>,
    %c0_63 = arith.constant 0 : index
    %c0_64 = arith.constant 0 : index
    %64 = vector.load %arg10[%c0_63, %c0_64] : memref<80x128xf32, #tpu.memory_space<vmem>>, vector<80x128xf32>
    %65 = arith.addf %64, %19 : vector<80x128xf32>
    %c0_65 = arith.constant 0 : index
    %c0_66 = arith.constant 0 : index
    %66 = vector.load %arg10[%c0_65, %c0_66] : memref<80x128xf32, #tpu.memory_space<vmem>>, vector<80x128xf32>
    tpu.vector_store %arg10[%c0_65, %c0_66], %65 {strides = array<i32>} : memref<80x128xf32, #tpu.memory_space<vmem>>, vector<80x128xf32>,
    %c0_i32_67 = arith.constant 0 : i32
    %67 = arith.cmpi eq, %arg2, %c0_i32_67 : i32
    %68 = arith.extui %67 : i1 to i32
    %c0_i32_68 = arith.constant 0 : i32
    %69 = arith.cmpi ne, %68, %c0_i32_68 : i32
    scf.if %69 {
      %c0_69 = arith.constant 0 : index
      %c0_70 = arith.constant 0 : index
      %70 = vector.load %arg7[%c0_69, %c0_70] : memref<80x128xf32, #tpu.memory_space<vmem>>, vector<80x128xf32>
      %c0_71 = arith.constant 0 : index
      %c0_72 = arith.constant 0 : index
      %71 = vector.load %arg5[%c0_71, %c0_72] : memref<1x128xf32, #tpu.memory_space<vmem>>, vector<1x128xf32>
      %72 = vector.broadcast %71 : vector<1x128xf32> to vector<80x128xf32>
      %73 = arith.addf %70, %72 : vector<80x128xf32>
      %c0_73 = arith.constant 0 : index
      %c0_74 = arith.constant 0 : index
      %74 = vector.load %arg8[%c0_73, %c0_74] : memref<80x128xf32, #tpu.memory_space<vmem>>, vector<80x128xf32>
      %c79_i32 = arith.constant 79 : i32
      %75 = tpu.dynamic_rotate %74 by %c79_i32 dim 0 : vector<80x128xf32>, i32 -> vector<80x128xf32>
      %76 = arith.addf %73, %75 : vector<80x128xf32>
      %c0_75 = arith.constant 0 : index
      %c0_76 = arith.constant 0 : index
      %77 = vector.load %arg9[%c0_75, %c0_76] : memref<80x128xf32, #tpu.memory_space<vmem>>, vector<80x128xf32>
      %c72_i32 = arith.constant 72 : i32
      %78 = tpu.dynamic_rotate %77 by %c72_i32 dim 0 : vector<80x128xf32>, i32 -> vector<80x128xf32>
      %79 = arith.addf %76, %78 : vector<80x128xf32>
      %c0_77 = arith.constant 0 : index
      %c0_78 = arith.constant 0 : index
      %80 = vector.load %arg10[%c0_77, %c0_78] : memref<80x128xf32, #tpu.memory_space<vmem>>, vector<80x128xf32>
      %c71_i32 = arith.constant 71 : i32
      %81 = tpu.dynamic_rotate %80 by %c71_i32 dim 0 : vector<80x128xf32>, i32 -> vector<80x128xf32>
      %82 = arith.addf %79, %81 : vector<80x128xf32>
      %83 = vector.shape_cast %82 : vector<80x128xf32> to vector<2x5x8x128xf32>
      %c0_79 = arith.constant 0 : index
      %c0_80 = arith.constant 0 : index
      %c0_81 = arith.constant 0 : index
      %c0_82 = arith.constant 0 : index
      %84 = vector.load %arg6[%c0_79, %c0_80, %c0_81, %c0_82] : memref<2x5x8x128xf32, #tpu.memory_space<vmem>>, vector<2x5x8x128xf32>
      tpu.vector_store %arg6[%c0_79, %c0_80, %c0_81, %c0_82], %83 {strides = array<i32>} : memref<2x5x8x128xf32, #tpu.memory_space<vmem>>, vector<2x5x8x128xf32>,
    } else {
    }
    return
  }
  func.func @transform_0(%arg0: i32, %arg1: i32, %arg2: i32) -> (i32, i32, i32, i32, i32) {
    %c0_i32 = arith.constant 0 : i32
    %c0_i32_0 = arith.constant 0 : i32
    %c0_i32_1 = arith.constant 0 : i32
    %c0_i32_2 = arith.constant 0 : i32
    return %c0_i32, %arg0, %c0_i32_0, %c0_i32_1, %arg2 : i32, i32, i32, i32, i32
  }
  func.func @transform_1(%arg0: i32, %arg1: i32, %arg2: i32) -> (i32, i32, i32) {
    %c0_i32 = arith.constant 0 : i32
    %c0_i32_0 = arith.constant 0 : i32
    return %c0_i32, %arg2, %arg1 : i32, i32, i32
  }
  func.func @transform_2(%arg0: i32, %arg1: i32, %arg2: i32) -> (i32, i32) {
    %c0_i32 = arith.constant 0 : i32
    %c0_i32_0 = arith.constant 0 : i32
    return %c0_i32, %arg1 : i32, i32
  }
  func.func @transform_3(%arg0: i32, %arg1: i32, %arg2: i32) -> (i32, i32, i32, i32) {
    %c0_i32 = arith.constant 0 : i32
    %c0_i32_0 = arith.constant 0 : i32
    %c0_i32_1 = arith.constant 0 : i32
    return %arg0, %c0_i32, %c0_i32_0, %arg1 : i32, i32, i32, i32
  }
}

</mosaic_0001>

<bundles_post_ra>
// kernel: _last_level_p6p7_impl.3
= control target key start
LH: loop header
LB: loop body
LE: loop exit
PB: predicated region body
PF: predicated region fallthrough
CT: control target
= control target key end

     0   :  { %s3662_s1 = inlined_call_operand.vmem [shape: f32[9,128,128], index: 1, kind: input, shape index: {}]   ;;  %s3663_s0 = inlined_call_operand.vmem [shape: f32[4,2,5,8,128], index: 0, kind: input, shape index: {}]   ;;  %s3664_s2 = inlined_call_operand.vmem [shape: f32[1,128], index: 2, kind: input, shape index: {}]   ;;  %s3665_s3 = inlined_call_operand.vmem [shape: f32[2,5,8,128], index: 3, kind: output, shape index: {}]  }
   0x1   :  { %v1647_v0 = vld [vmem:[%s3662_s1 + $0x400] sm:$0xff]  ;;  %v1648_v1 = vld [vmem:[%s3662_s1 + $0x408] sm:$0xff]  ;;  %v1649_v5 = vld [vmem:[%s3662_s1 + $0x410] sm:$0xff] }
   0x2   :  { %v1673_v2 = vld [vmem:[%s3662_s1 + $0x80] sm:$0xff]  ;;  %v2431_v3 = vpack.c.bf16 %v1648_v1, %v1647_v0  ;;  %v1674_v4 = vld [vmem:[%s3662_s1 + $0x88] sm:$0xff]  ;;  %v1650_v6 = vld [vmem:[%s3662_s1 + $0x418] sm:$0xff] }
   0x3   :  { %v2463_v7 = vpack.c.bf16 %v1674_v4, %v1673_v2  ;;  %v2435_v8 = vpack.c.bf16 %v1650_v6, %v1649_v5  ;;  %v1675_v9 = vld [vmem:[%s3662_s1 + $0x90] sm:$0xff]  ;;  %v1676_v10 = vld [vmem:[%s3662_s1 + $0x98] sm:$0xff]  ;;  %v1651_v11 = vld [vmem:[%s3662_s1 + $0x420] sm:$0xff] }
   0x4   :  { %2432 = vmatprep.subr.bf16.mxu0 %v2431_v3  ;;  %v2467_v12 = vpack.c.bf16 %v1676_v10, %v1675_v9  ;;  %v1652_v13 = vld [vmem:[%s3662_s1 + $0x428] sm:$0xff]  ;;  %v1677_v14 = vld [vmem:[%s3662_s1 + $0xa0] sm:$0xff]  ;;  %v1653_v18 = vld [vmem:[%s3662_s1 + $0x430] sm:$0xff] }
   0x5   :  { %v1678_v15 = vld [vmem:[%s3662_s1 + $0xa8] sm:$0xff]  ;;  %2464 = vmatprep.subr.bf16.mxu1 %v2463_v7  ;;  %2434 = vmatpush3.bf16.msra.mxu0 %v2431_v3  ;;  %v2439_v16 = vpack.c.bf16 %v1652_v13, %v1651_v11  ;;  %v1654_v19 = vld [vmem:[%s3662_s1 + $0x438] sm:$0xff]  ;;  %v1679_v20 = vld [vmem:[%s3662_s1 + $0xb0] sm:$0xff] }
   0x6   :  { %2466 = vmatpush3.bf16.msra.mxu1 %v2463_v7  ;;  %2436 = vmatprep.subr.bf16.mxu0 %v2435_v8  ;;  %v2471_v17 = vpack.c.bf16 %v1678_v15, %v1677_v14  ;;  %v1680_v21 = vld [vmem:[%s3662_s1 + $0xb8] sm:$0xff]  ;;  %v2443_v22 = vpack.c.bf16 %v1654_v19, %v1653_v18  ;;  %v1655_v24 = vld [vmem:[%s3662_s1 + $0x440] sm:$0xff]  ;;  %v1656_v25 = vld [vmem:[%s3662_s1 + $0x448] sm:$0xff] }
   0x7   :  { %2468 = vmatprep.subr.bf16.mxu1 %v2467_v12  ;;  %v2475_v23 = vpack.c.bf16 %v1680_v21, %v1679_v20  ;;  %v58_v26 = vld [vmem:[%s3663_s0] sm:$0xff]  ;;  %v1682_v28 = vld [vmem:[%s3662_s1 + $0xc8] sm:$0xff]  ;;  %v2857_v30 = vld [vmem:[%s3663_s0 + $0x50] sm:$0xff]  ;;  %v2447_v32 = vpack.c.bf16 %v1656_v25, %v1655_v24 }
   0x8   :  { %v1681_v27 = vld [vmem:[%s3662_s1 + $0xc0] sm:$0xff]  ;;  %v2852_v29 = vmax.f32 %v58_v26, 0.0  ;;  %v271_v31 = vmax.f32 %v2857_v30, 0.0  ;;  %v1657_v34 = vld [vmem:[%s3662_s1 + $0x450] sm:$0xff]  ;;  %v1658_v35 = vld [vmem:[%s3662_s1 + $0x458] sm:$0xff] }
   0x9   :  { %2438 = vmatpush3.bf16.msra.mxu0 %v2435_v8  ;;  %v2479_v33 = vpack.c.bf16 %v1682_v28, %v1681_v27  ;;  %v1683_v36 = vld [vmem:[%s3662_s1 + $0xd0] sm:$0xff]  ;;  %v1684_v37 = vld [vmem:[%s3662_s1 + $0xd8] sm:$0xff]  ;;  %v2451_v38 = vpack.c.bf16 %v1658_v35, %v1657_v34  ;;  %v1659_v40 = vld [vmem:[%s3662_s1 + $0x460] sm:$0xff] }
   0xa   :  { %2470 = vmatpush3.bf16.msra.mxu1 %v2467_v12  ;;  %2440 = vmatprep.subr.bf16.mxu0 %v2439_v16  ;;  %v2483_v39 = vpack.c.bf16 %v1684_v37, %v1683_v36  ;;  %v1660_v41 = vld [vmem:[%s3662_s1 + $0x468] sm:$0xff]  ;;  %v1685_v42 = vld [vmem:[%s3662_s1 + $0xe0] sm:$0xff]  ;;  %v1661_v46 = vld [vmem:[%s3662_s1 + $0x470] sm:$0xff] }
   0xb   :  { %2472 = vmatprep.subr.bf16.mxu1 %v2471_v17  ;;  %2040 = vmatprep.mubr.f32.mxu0 %v2852_v29  ;;  %v1686_v43 = vld [vmem:[%s3662_s1 + $0xe8] sm:$0xff]  ;;  %v2455_v44 = vpack.c.bf16 %v1660_v41, %v1659_v40  ;;  %v1662_v47 = vld [vmem:[%s3662_s1 + $0x478] sm:$0xff]  ;;  %v1687_v48 = vld [vmem:[%s3662_s1 + $0xf0] sm:$0xff] }
   0xc   :  { %2087 = vmatprep.mubr.f32.mxu1 %v271_v31  ;;  %v2487_v45 = vpack.c.bf16 %v1686_v43, %v1685_v42  ;;  %v1688_v49 = vld [vmem:[%s3662_s1 + $0xf8] sm:$0xff]  ;;  %v2459_v50 = vpack.c.bf16 %v1662_v47, %v1661_v46  ;;  %v1689_v52 = vld [vmem:[%s3662_s1 + $0x380] sm:$0xff]  ;;  %v1690_v53 = vld [vmem:[%s3662_s1 + $0x388] sm:$0xff] }
   0xd   :  { %2442 = vmatpush3.bf16.msra.mxu0 %v2439_v16  ;;  %v2491_v51 = vpack.c.bf16 %v1688_v49, %v1687_v48  ;;  %v78_v54 = vld [vmem:[%s3662_s1] sm:$0xff]  ;;  %v79_v55 = vld [vmem:[%s3662_s1 + $0x8] sm:$0xff]  ;;  %v2527_v57 = vpack.c.bf16 %v1690_v53, %v1689_v52  ;;  %v2917_v58 = vld [vmem:[%s3663_s0 + $0x58] sm:$0xff] }
   0xe   :  { %2474 = vmatpush3.bf16.msra.mxu1 %v2471_v17  ;;  %2444 = vmatprep.subr.bf16.mxu0 %v2443_v22  ;;  %v59_v56 = vld [vmem:[%s3663_s0 + $0x8] sm:$0xff]  ;;  %v2495_v59 = vpack.c.bf16 %v79_v55, %v78_v54  ;;  %v60_v60 = vld [vmem:[%s3663_s0 + $0x10] sm:$0xff]  ;;  %v81_v63 = vld [vmem:[%s3662_s1 + $0x18] sm:$0xff]  ;;  %v272_v2 = vmax.f32 %v2917_v58, 0.0 }
   0xf   :  { %2476 = vmatprep.subr.bf16.mxu1 %v2475_v23  ;;  %v80_v61 = vld [vmem:[%s3662_s1 + $0x10] sm:$0xff]  ;;  %v2925_v62 = vmax.f32 %v59_v56, 0.0  ;;  %v1692_v1 = vld [vmem:[%s3662_s1 + $0x398] sm:$0xff]  ;;  %v2943_v4 = vld [vmem:[%s3663_s0 + $0x60] sm:$0xff]  ;;  %v2945_v5 = vmax.f32 %v60_v60, 0.0 }
  0x10   :  { %v1691_v0 = vld [vmem:[%s3662_s1 + $0x390] sm:$0xff]  ;;  %v61_v3 = vld [vmem:[%s3663_s0 + $0x18] sm:$0xff]  ;;  %v62_v6 = vld [vmem:[%s3663_s0 + $0x20] sm:$0xff]  ;;  %v2499_v7 = vpack.c.bf16 %v81_v63, %v80_v61  ;;  %v273_v14 = vmax.f32 %v2943_v4, 0.0 }
  0x11   :  { %2446 = vmatpush3.bf16.msra.mxu0 %v2443_v22  ;;  %v2531_v8 = vpack.c.bf16 %v1692_v1, %v1691_v0  ;;  %v1693_v9 = vld [vmem:[%s3662_s1 + $0x3a0] sm:$0xff]  ;;  %v1694_v10 = vld [vmem:[%s3662_s1 + $0x3a8] sm:$0xff]  ;;  %v2957_v11 = vmax.f32 %v61_v3, 0.0  ;;  %v2973_v16 = vmax.f32 %v62_v6, 0.0  ;;  %v2981_v18 = vld [vmem:[%s3663_s0 + $0x70] sm:$0xff] }
  0x12   :  { %2478 = vmatpush3.bf16.msra.mxu1 %v2475_v23  ;;  %2448 = vmatprep.subr.bf16.mxu0 %v2447_v32  ;;  %v82_v12 = vld [vmem:[%s3662_s1 + $0x20] sm:$0xff]  ;;  %v83_v13 = vld [vmem:[%s3662_s1 + $0x28] sm:$0xff]  ;;  %v2535_v19 = vpack.c.bf16 %v1694_v10, %v1693_v9  ;;  %v64_v20 = vld [vmem:[%s3663_s0 + $0x30] sm:$0xff]  ;;  %v275_v28 = vmax.f32 %v2981_v18, 0.0 }
  0x13   :  { %2480 = vmatprep.subr.bf16.mxu1 %v2479_v33  ;;  %v2969_v15 = vld [vmem:[%s3663_s0 + $0x68] sm:$0xff]  ;;  %v2503_v21 = vpack.c.bf16 %v83_v13, %v82_v12  ;;  %v1695_v22 = vld [vmem:[%s3662_s1 + $0x3b0] sm:$0xff]  ;;  %v1696_v23 = vld [vmem:[%s3662_s1 + $0x3b8] sm:$0xff] }
  0x14   :  { %v63_v17 = vld [vmem:[%s3663_s0 + $0x28] sm:$0xff]  ;;  %v274_v24 = vmax.f32 %v2969_v15, 0.0  ;;  %v84_v26 = vld [vmem:[%s3662_s1 + $0x30] sm:$0xff]  ;;  %v85_v27 = vld [vmem:[%s3662_s1 + $0x38] sm:$0xff]  ;;  %v2539_v36 = vpack.c.bf16 %v1696_v23, %v1695_v22 }
  0x15   :  { %2450 = vmatpush3.bf16.msra.mxu0 %v2447_v32  ;;  %v2995_v25 = vmax.f32 %v63_v17, 0.0  ;;  %v3009_v32 = vld [vmem:[%s3663_s0 + $0x78] sm:$0xff]  ;;  %v3020_v35 = vld [vmem:[%s3663_s0 + $0x80] sm:$0xff]  ;;  %v1698_v40 = vld [vmem:[%s3662_s1 + $0x3c8] sm:$0xff] }
  0x16   :  { %2482 = vmatpush3.bf16.msra.mxu1 %v2479_v33  ;;  %2452 = vmatprep.subr.bf16.mxu0 %v2451_v38  ;;  %v3012_v33 = vmax.f32 %v64_v20, 0.0  ;;  %v65_v34 = vld [vmem:[%s3663_s0 + $0x38] sm:$0xff]  ;;  %v66_v37 = vld [vmem:[%s3663_s0 + $0x40] sm:$0xff]  ;;  %v276_v41 = vmax.f32 %v3009_v32, 0.0  ;;  %v3049_v46 = vld [vmem:[%s3663_s0 + $0x88] sm:$0xff] }
  0x17   :  { %2484 = vmatprep.subr.bf16.mxu1 %v2483_v39  ;;  %v3035_v42 = vmax.f32 %v65_v34, 0.0  ;;  %v86_v43 = vld [vmem:[%s3662_s1 + $0x40] sm:$0xff]  ;;  %v3052_v47 = vmax.f32 %v66_v37, 0.0  ;;  %v67_v48 = vld [vmem:[%s3663_s0 + $0x48] sm:$0xff]  ;;  %v3060_v49 = vld [vmem:[%s3663_s0 + $0x90] sm:$0xff]  ;;  %v278_v54 = vmax.f32 %v3049_v46, 0.0 }
  0x18   :  { %v1699_v52 = vld [vmem:[%s3662_s1 + $0x3d0] sm:$0xff]  ;;  %v1700_v53 = vld [vmem:[%s3662_s1 + $0x3d8] sm:$0xff]  ;;  %v3072_v55 = vmax.f32 %v67_v48, 0.0  ;;  %v1701_v0 = vld [vmem:[%s3662_s1 + $0x3e0] sm:$0xff] }
  0x19   :  { %2454 = vmatpush3.bf16.msra.mxu0 %v2451_v38  ;;  %v2507_v38 = vpack.c.bf16 %v85_v27, %v84_v26  ;;  %v88_v56 = vld [vmem:[%s3662_s1 + $0x50] sm:$0xff]  ;;  %v3086_v60 = vld [vmem:[%s3663_s0 + $0x98] sm:$0xff]  ;;  %v2547_v61 = vpack.c.bf16 %v1700_v53, %v1699_v52  ;;  %v1702_v1 = vld [vmem:[%s3662_s1 + $0x3e8] sm:$0xff] }
  0x1a   :  { %2486 = vmatpush3.bf16.msra.mxu1 %v2483_v39  ;;  %2456 = vmatprep.subr.bf16.mxu0 %v2455_v44  ;;  %v1697_v39 = vld [vmem:[%s3662_s1 + $0x3c0] sm:$0xff]  ;;  %v280_v3 = vmax.f32 %v3086_v60, 0.0  ;;  %v1703_v10 = vld [vmem:[%s3662_s1 + $0x3f0] sm:$0xff]  ;;  %v1704_v12 = vld [vmem:[%s3662_s1 + $0x3f8] sm:$0xff] }
  0x1b   :  { %2488 = vmatprep.subr.bf16.mxu1 %v2487_v45  ;;  %v90_v6 = vld [vmem:[%s3662_s1 + $0x60] sm:$0xff]  ;;  %v92_v30 = vld [vmem:[%s3662_s1 + $0x70] sm:$0xff]  ;;  %v2555_v13 = vpack.c.bf16 %v1704_v12, %v1703_v10  ;;  %v1632_v20 = vld [vmem:[%s3662_s1 + $0x308] sm:$0xff] }
  0x1c   :  { %v1716_v22 = vld [vmem:[%s3662_s1 + $0x188] sm:$0xff]  ;;  %v1633_v27 = vld [vmem:[%s3662_s1 + $0x310] sm:$0xff]  ;;  %v1634_v34 = vld [vmem:[%s3662_s1 + $0x318] sm:$0xff] }
  0x1d   :  { %2458 = vmatpush3.bf16.msra.mxu0 %v2455_v44  ;;  %v87_v44 = vld [vmem:[%s3662_s1 + $0x48] sm:$0xff]  ;;  %v1718_v37 = vld [vmem:[%s3662_s1 + $0x198] sm:$0xff]  ;;  %v1637_v58 = vld [vmem:[%s3662_s1 + $0x330] sm:$0xff] }
  0x1e   :  { %2490 = vmatpush3.bf16.msra.mxu1 %v2487_v45  ;;  %2460 = vmatprep.subr.bf16.mxu0 %v2459_v50  ;;  %v277_v45 = vmax.f32 %v3020_v35, 0.0  ;;  %v1720_v48 = vld [vmem:[%s3662_s1 + $0x1a8] sm:$0xff]  ;;  %v1721_v52 = vld [vmem:[%s3662_s1 + $0x1b0] sm:$0xff]  ;;  %v1722_v53 = vld [vmem:[%s3662_s1 + $0x1b8] sm:$0xff] }
  0x1f   :  { %2492 = vmatprep.subr.bf16.mxu1 %v2491_v51  ;;  %v1723_v15 = vld [vmem:[%s3662_s1 + $0x1c0] sm:$0xff]  ;;  %v1725_v32 = vld [vmem:[%s3662_s1 + $0x1d0] sm:$0xff]  ;;  %v1644_v46 = vld [vmem:[%s3662_s1 + $0x368] sm:$0xff] }
  0x20   :  { %v3220_v35 = vld [vmem:[%s3663_s0 + $0xa0] sm:$0xff]  ;;  %v1729_v60 = vld [vmem:[%s3662_s1 + $0x1f0] sm:$0xff] }
  0x21   :  { %2462 = vmatpush3.bf16.msra.mxu0 %v2459_v50  ;;  %v2543_v50 = vpack.c.bf16 %v1698_v40, %v1697_v39  ;;  %v1635_v40 = vld [vmem:[%s3662_s1 + $0x320] sm:$0xff] }
  0x22   :  { %2494 = vmatpush3.bf16.msra.mxu1 %v2491_v51  ;;  %2528 = vmatprep.subr.bf16.mxu0 %v2527_v57  ;;  %v2511_v51 = vpack.c.bf16 %v87_v44, %v86_v43  ;;  %v1636_v43 = vld [vmem:[%s3662_s1 + $0x328] sm:$0xff]  ;;  %v1719_v44 = vld [vmem:[%s3662_s1 + $0x1a0] sm:$0xff] }
  0x23   :  { %2496 = vmatprep.subr.bf16.mxu1 %v2495_v59 }
  0x24   :  { %2041 = vmatmul.mubr.f32.vlgmr.msra.gmra.mrb[0].mxu0 %v2925_v62 }
  0x25   :  { %2088 = vmatmul.mubr.f32.vlgmr.msra.gmra.mrb[0].mxu1 %v272_v2  ;;  %2530 = vmatpush3.bf16.msra.mxu0 %v2527_v57  ;;  %v89_v57 = vld [vmem:[%s3662_s1 + $0x58] sm:$0xff] }
  0x26   :  { %2498 = vmatpush3.bf16.msra.mxu1 %v2495_v59  ;;  %2043 = vmatprep.mubr.f32.mxu0 %v2945_v5  ;;  %v279_v59 = vmax.f32 %v3060_v49, 0.0  ;;  %v2515_v63 = vpack.c.bf16 %v89_v57, %v88_v56  ;;  %v1639_v56 = vld [vmem:[%s3662_s1 + $0x340] sm:$0xff]  ;;  %v1640_v57 = vld [vmem:[%s3662_s1 + $0x348] sm:$0xff] }
  0x27   :  { %2500 = vmatprep.subr.bf16.mxu1 %v2499_v7  ;;  %2532 = vmatprep.subr.bf16.mxu0 %v2531_v8  ;;  %v2575_v18 = vpack.c.bf16 %v1640_v57, %v1639_v56  ;;  %v1764_v56 = vld [vmem:[%s3662_s1 + $0x238] sm:$0xff] }
  0x28   :  { %2044 = vmatmul.mubr.f32.gmra.mrb[2].mxu0 %v2957_v11  ;;  %2090 = vmatprep.mubr.f32.mxu1 %v273_v14 }
  0x29   :  { %2534 = vmatpush3.bf16.msra.mxu0 %v2531_v8  ;;  %2046 = vmatprep.mubr.f32.mxu0 %v2973_v16  ;;  %v2551_v8 = vpack.c.bf16 %v1702_v1, %v1701_v0  ;;  %v1643_v1 = vld [vmem:[%s3662_s1 + $0x360] sm:$0xff] }
  0x2a   :  { %2502 = vmatpush3.bf16.msra.mxu1 %v2499_v7  ;;  %2536 = vmatprep.subr.bf16.mxu0 %v2535_v19  ;;  %v91_v7 = vld [vmem:[%s3662_s1 + $0x68] sm:$0xff]  ;;  %v2583_v49 = vpack.c.bf16 %v1644_v46, %v1643_v1  ;;  %v3368_v1 = vld [vmem:[%s3663_s0 + $0xd8] sm:$0xff]  ;;  %v3374_v46 = vld [vmem:[%s3663_s0 + $0xe0] sm:$0xff] }
  0x2b   :  { %2504 = vmatprep.subr.bf16.mxu1 %v2503_v21  ;;  %2091 = vmatmul.mubr.f32.gmra.mrb[2].mxu1 %v274_v24  ;;  %v2519_v9 = vpack.c.bf16 %v91_v7, %v90_v6  ;;  %v1728_v6 = vld [vmem:[%s3662_s1 + $0x1e8] sm:$0xff]  ;;  %v786_v7 = vmax.f32 %v3220_v35, 0.0  ;;  %v1771_v35 = vld [vmem:[%s3662_s1 + $0x270] sm:$0xff] }
  0x2c   :  { %2047 = vmatmul.mubr.f32.gmra.mrb[4].mxu0 %v2995_v25  ;;  %2093 = vmatprep.mubr.f32.mxu1 %v275_v28 }
  0x2d   :  { %2538 = vmatpush3.bf16.msra.mxu0 %v2535_v19  ;;  %2049 = vmatprep.mubr.f32.mxu0 %v3012_v33  ;;  %v1631_v19 = vld [vmem:[%s3662_s1 + $0x300] sm:$0xff] }
  0x2e   :  { %2506 = vmatpush3.bf16.msra.mxu1 %v2503_v21  ;;  %2540 = vmatprep.subr.bf16.mxu0 %v2539_v36  ;;  %v1715_v21 = vld [vmem:[%s3662_s1 + $0x180] sm:$0xff]  ;;  %v2559_v23 = vpack.c.bf16 %v1632_v20, %v1631_v19  ;;  %v3271_v20 = vld [vmem:[%s3663_s0 + $0xa8] sm:$0xff] }
  0x2f   :  { %2508 = vmatprep.subr.bf16.mxu1 %v2507_v38  ;;  %2094 = vmatmul.mubr.f32.gmra.mrb[4].mxu1 %v276_v41  ;;  %v2591_v26 = vpack.c.bf16 %v1716_v22, %v1715_v21  ;;  %v1733_v22 = vld [vmem:[%s3662_s1 + $0x290] sm:$0xff] }
  0x30   :  { %2050 = vmatmul.mubr.f32.gmra.mrb[6].mxu0 %v3035_v42  ;;  %2096 = vmatprep.mubr.f32.mxu1 %v277_v45 }
  0x31   :  { %2542 = vmatpush3.bf16.msra.mxu0 %v2539_v36  ;;  %2052 = vmatprep.mubr.f32.mxu0 %v3052_v47  ;;  %v1717_v36 = vld [vmem:[%s3662_s1 + $0x190] sm:$0xff] }
  0x32   :  { %2510 = vmatpush3.bf16.msra.mxu1 %v2507_v38  ;;  %2544 = vmatprep.subr.bf16.mxu0 %v2543_v50  ;;  %v2563_v38 = vpack.c.bf16 %v1634_v34, %v1633_v27  ;;  %v2595_v39 = vpack.c.bf16 %v1718_v37, %v1717_v36  ;;  %v1760_v27 = vld [vmem:[%s3662_s1 + $0x218] sm:$0xff]  ;;  %v787_v34 = vmax.f32 %v3271_v20, 0.0  ;;  %v3289_v36 = vld [vmem:[%s3663_s0 + $0xb0] sm:$0xff] }
  0x33   :  { %2512 = vmatprep.subr.bf16.mxu1 %v2511_v51  ;;  %2097 = vmatmul.mubr.f32.gmra.mrb[6].mxu1 %v278_v54  ;;  %v1621_v20 = vld [vmem:[%s3662_s1 + $0x130] sm:$0xff] }
  0x34   :  { %2053 = vmatmul.mubr.f32.gmra.mrb[8].mxu0 %v3072_v55  ;;  %2099 = vmatprep.mubr.f32.mxu1 %v279_v59 }
  0x35   :  { %2546 = vmatpush3.bf16.msra.mxu0 %v2543_v50  ;;  %2181 = vmatprep.mubr.f32.mxu0 %v271_v31  ;;  %v93_v31 = vld [vmem:[%s3662_s1 + $0x78] sm:$0xff]  ;;  %v2567_v50 = vpack.c.bf16 %v1636_v43, %v1635_v40  ;;  %v1736_v40 = vld [vmem:[%s3662_s1 + $0x2a8] sm:$0xff]  ;;  %v1761_v43 = vld [vmem:[%s3662_s1 + $0x220] sm:$0xff] }
  0x36   :  { %2514 = vmatpush3.bf16.msra.mxu1 %v2511_v51  ;;  %2548 = vmatprep.subr.bf16.mxu0 %v2547_v61  ;;  %v2523_v17 = vpack.c.bf16 %v93_v31, %v92_v30  ;;  %v2599_v51 = vpack.c.bf16 %v1720_v48, %v1719_v44  ;;  %v1731_v30 = vld [vmem:[%s3662_s1 + $0x280] sm:$0xff]  ;;  %v1732_v31 = vld [vmem:[%s3662_s1 + $0x288] sm:$0xff]  ;;  %v788_v48 = vmax.f32 %v3289_v36, 0.0 }
  0x37   :  { %2516 = vmatprep.subr.bf16.mxu1 %v2515_v63  ;;  %2100 = vmatmul.mubr.f32.gmra.mrb[8].mxu1 %v280_v3  ;;  %v2623_v19 = vpack.c.bf16 %v1732_v31, %v1731_v30  ;;  %v1762_v44 = vld [vmem:[%s3662_s1 + $0x228] sm:$0xff]  ;;  %v1623_v36 = vld [vmem:[%s3662_s1 + $0x140] sm:$0xff] }
  0x38   :  { %2134 = vmatprep.mubr.f32.mxu1 %v2852_v29 }
  0x39   :  { %2550 = vmatpush3.bf16.msra.mxu0 %v2547_v61  ;;  %v1641_v61 = vld [vmem:[%s3662_s1 + $0x350] sm:$0xff] }
  0x3a   :  { %2518 = vmatpush3.bf16.msra.mxu1 %v2515_v63  ;;  %2552 = vmatprep.subr.bf16.mxu0 %v2551_v8  ;;  %v1642_v63 = vld [vmem:[%s3662_s1 + $0x358] sm:$0xff] }
  0x3b   :  { %2520 = vmatprep.subr.bf16.mxu1 %v2519_v9 }
  0x3d   :  { %2554 = vmatpush3.bf16.msra.mxu0 %v2551_v8  ;;  %v1645_v8 = vld [vmem:[%s3662_s1 + $0x370] sm:$0xff] }
  0x3e   :  { %2522 = vmatpush3.bf16.msra.mxu1 %v2519_v9  ;;  %2556 = vmatprep.subr.bf16.mxu0 %v2555_v13  ;;  %v1646_v9 = vld [vmem:[%s3662_s1 + $0x378] sm:$0xff] }
  0x3f   :  { %2524 = vmatprep.subr.bf16.mxu1 %v2523_v17  ;;  %v2587_v10 = vpack.c.bf16 %v1646_v9, %v1645_v8  ;;  %v793_v8 = vmax.f32 %v3368_v1, 0.0  ;;  %v1767_v9 = vld [vmem:[%s3662_s1 + $0x250] sm:$0xff]  ;;  %v1630_v1 = vld [vmem:[%s3662_s1 + $0x178] sm:$0xff] }
  0x41   :  { %2558 = vmatpush3.bf16.msra.mxu0 %v2555_v13  ;;  %v1757_v13 = vld [vmem:[%s3662_s1 + $0x200] sm:$0xff] }
  0x42   :  { %2526 = vmatpush3.bf16.msra.mxu1 %v2523_v17  ;;  %2560 = vmatprep.subr.bf16.mxu0 %v2559_v23  ;;  %v1758_v17 = vld [vmem:[%s3662_s1 + $0x208] sm:$0xff] }
  0x43   :  { %2592 = vmatprep.subr.bf16.mxu1 %v2591_v26  ;;  %v2687_v21 = vpack.c.bf16 %v1758_v17, %v1757_v13  ;;  %v1743_v13 = vld [vmem:[%s3662_s1 + $0x2e0] sm:$0xff]  ;;  %v1744_v17 = vld [vmem:[%s3662_s1 + $0x2e8] sm:$0xff] }
  0x44   :  { %2182 = vmatmul.mubr.f32.vlgmr.msra.gmra.mrb[10].mxu0 %v272_v2  ;;  %v1638_v2 = vld [vmem:[%s3662_s1 + $0x338] sm:$0xff] }
  0x45   :  { %2135 = vmatmul.mubr.f32.vlgmr.msra.gmra.mrb[0].mxu1 %v2925_v62  ;;  %2562 = vmatpush3.bf16.msra.mxu0 %v2559_v23  ;;  %v2571_v4 = vpack.c.bf16 %v1638_v2, %v1637_v58  ;;  %v1734_v23 = vld [vmem:[%s3662_s1 + $0x298] sm:$0xff]  ;;  %v2695_v2 = vpack.c.bf16 %v1762_v44, %v1761_v43  ;;  %v1615_v43 = vld [vmem:[%s3662_s1 + $0x100] sm:$0xff]  ;;  %v1616_v44 = vld [vmem:[%s3662_s1 + $0x108] sm:$0xff] }
  0x46   :  { %2594 = vmatpush3.bf16.msra.mxu1 %v2591_v26  ;;  %2564 = vmatprep.subr.bf16.mxu0 %v2563_v38  ;;  %v1759_v26 = vld [vmem:[%s3662_s1 + $0x210] sm:$0xff]  ;;  %v2627_v37 = vpack.c.bf16 %v1734_v23, %v1733_v22  ;;  %v1770_v22 = vld [vmem:[%s3662_s1 + $0x268] sm:$0xff] }
  0x47   :  { %2596 = vmatprep.subr.bf16.mxu1 %v2595_v39  ;;  %2184 = vmatprep.mubr.f32.mxu0 %v273_v14  ;;  %v2603_v14 = vpack.c.bf16 %v1722_v53, %v1721_v52  ;;  %v1737_v52 = vld [vmem:[%s3662_s1 + $0x2b0] sm:$0xff]  ;;  %v1738_v53 = vld [vmem:[%s3662_s1 + $0x2b8] sm:$0xff] }
  0x48   :  { %2137 = vmatprep.mubr.f32.mxu1 %v2945_v5  ;;  %2185 = vmatmul.mubr.f32.gmra.mrb[12].mxu0 %v274_v24  ;;  %v1724_v24 = vld [vmem:[%s3662_s1 + $0x1c8] sm:$0xff] }
  0x49   :  { %2566 = vmatpush3.bf16.msra.mxu0 %v2563_v38  ;;  %2138 = vmatmul.mubr.f32.gmra.mrb[2].mxu1 %v2957_v11  ;;  %v2691_v38 = vpack.c.bf16 %v1760_v27, %v1759_v26  ;;  %v2647_v26 = vpack.c.bf16 %v1744_v17, %v1743_v13  ;;  %v1755_v13 = vld [vmem:[%s3663_s0 + $0x130] sm:$0xff] }
  0x4a   :  { %2598 = vmatpush3.bf16.msra.mxu1 %v2595_v39  ;;  %2568 = vmatprep.subr.bf16.mxu0 %v2567_v50  ;;  %v1735_v39 = vld [vmem:[%s3662_s1 + $0x2a0] sm:$0xff] }
  0x4b   :  { %2600 = vmatprep.subr.bf16.mxu1 %v2599_v51  ;;  %2187 = vmatprep.mubr.f32.mxu0 %v275_v28  ;;  %v2607_v28 = vpack.c.bf16 %v1724_v24, %v1723_v15  ;;  %v2631_v58 = vpack.c.bf16 %v1736_v40, %v1735_v39  ;;  %v3338_v15 = vld [vmem:[%s3663_s0 + $0xc8] sm:$0xff]  ;;  %v3344_v24 = vld [vmem:[%s3663_s0 + $0xd0] sm:$0xff] }
  0x4c   :  { %2140 = vmatprep.mubr.f32.mxu1 %v2973_v16  ;;  %2188 = vmatmul.mubr.f32.gmra.mrb[14].mxu0 %v276_v41  ;;  %v1726_v41 = vld [vmem:[%s3662_s1 + $0x1d8] sm:$0xff] }
  0x4d   :  { %2570 = vmatpush3.bf16.msra.mxu0 %v2567_v50  ;;  %2141 = vmatmul.mubr.f32.gmra.mrb[4].mxu1 %v2995_v25  ;;  %v2611_v0 = vpack.c.bf16 %v1726_v41, %v1725_v32  ;;  %v3308_v50 = vld [vmem:[%s3663_s0 + $0xb8] sm:$0xff]  ;;  %v791_v32 = vmax.f32 %v3338_v15, 0.0  ;;  %v1765_v41 = vld [vmem:[%s3662_s1 + $0x240] sm:$0xff] }
  0x4e   :  { %2602 = vmatpush3.bf16.msra.mxu1 %v2599_v51  ;;  %2572 = vmatprep.subr.bf16.mxu0 %v2571_v4  ;;  %v3315_v51 = vld [vmem:[%s3663_s0 + $0xc0] sm:$0xff] }
  0x4f   :  { %2604 = vmatprep.subr.bf16.mxu1 %v2603_v14  ;;  %2190 = vmatprep.mubr.f32.mxu0 %v277_v45  ;;  %v2579_v45 = vpack.c.bf16 %v1642_v63, %v1641_v61  ;;  %v790_v57 = vmax.f32 %v3315_v51, 0.0  ;;  %v1739_v61 = vld [vmem:[%s3662_s1 + $0x2c0] sm:$0xff]  ;;  %v1740_v63 = vld [vmem:[%s3662_s1 + $0x2c8] sm:$0xff]  ;;  %v1626_v51 = vld [vmem:[%s3662_s1 + $0x158] sm:$0xff] }
  0x50   :  { %2143 = vmatprep.mubr.f32.mxu1 %v3012_v33  ;;  %2191 = vmatmul.mubr.f32.gmra.mrb[16].mxu0 %v278_v54  ;;  %v1727_v54 = vld [vmem:[%s3662_s1 + $0x1e0] sm:$0xff] }
  0x51   :  { %2574 = vmatpush3.bf16.msra.mxu0 %v2571_v4  ;;  %2144 = vmatmul.mubr.f32.gmra.mrb[6].mxu1 %v3035_v42  ;;  %v789_v4 = vmax.f32 %v3308_v50, 0.0 }
  0x52   :  { %2606 = vmatpush3.bf16.msra.mxu1 %v2603_v14  ;;  %2576 = vmatprep.subr.bf16.mxu0 %v2575_v18  ;;  %v1763_v14 = vld [vmem:[%s3662_s1 + $0x230] sm:$0xff] }
  0x53   :  { %2608 = vmatprep.subr.bf16.mxu1 %v2607_v28  ;;  %2193 = vmatprep.mubr.f32.mxu0 %v279_v59  ;;  %v2615_v59 = vpack.c.bf16 %v1728_v6, %v1727_v54  ;;  %v2639_v54 = vpack.c.bf16 %v1740_v63, %v1739_v61  ;;  %v1750_v61 = vld [vmem:[%s3663_s0 + $0x108] sm:$0xff]  ;;  %v1751_v63 = vld [vmem:[%s3663_s0 + $0x110] sm:$0xff] }
  0x54   :  { %2146 = vmatprep.mubr.f32.mxu1 %v3052_v47  ;;  %2194 = vmatmul.mubr.f32.gmra.mrb[18].mxu0 %v280_v3  ;;  %v1730_v3 = vld [vmem:[%s3662_s1 + $0x1f8] sm:$0xff] }
  0x55   :  { %2578 = vmatpush3.bf16.msra.mxu0 %v2575_v18  ;;  %2147 = vmatmul.mubr.f32.gmra.mrb[8].mxu1 %v3072_v55  ;;  %v2619_v12 = vpack.c.bf16 %v1730_v3, %v1729_v60  ;;  %v2635_v18 = vpack.c.bf16 %v1738_v53, %v1737_v52  ;;  %v1768_v60 = vld [vmem:[%s3662_s1 + $0x258] sm:$0xff]  ;;  %v794_v3 = vmax.f32 %v3374_v46, 0.0  ;;  %v1749_v52 = vld [vmem:[%s3663_s0 + $0x100] sm:$0xff]  ;;  %v1617_v53 = vld [vmem:[%s3662_s1 + $0x110] sm:$0xff] }
  0x56   :  { %2610 = vmatpush3.bf16.msra.mxu1 %v2607_v28  ;;  %2580 = vmatprep.subr.bf16.mxu0 %v2579_v45  ;;  %v2699_v28 = vpack.c.bf16 %v1764_v56, %v1763_v14  ;;  %v2707_v31 = vpack.c.bf16 %v1768_v60, %v1767_v9  ;;  %v1618_v14 = vld [vmem:[%s3662_s1 + $0x118] sm:$0xff]  ;;  %v1753_v9 = vld [vmem:[%s3663_s0 + $0x120] sm:$0xff] }
  0x57   :  { %2612 = vmatprep.subr.bf16.mxu1 %v2611_v0  ;;  %2228 = vmatprep.mubr.f32.mxu0 %v2852_v29 }
  0x58   :  { %2275 = vmatprep.mubr.f32.mxu1 %v786_v7 }
  0x59   :  { %2582 = vmatpush3.bf16.msra.mxu0 %v2579_v45  ;;  %v1766_v45 = vld [vmem:[%s3662_s1 + $0x248] sm:$0xff] }
  0x5a   :  { %2614 = vmatpush3.bf16.msra.mxu1 %v2611_v0  ;;  %2584 = vmatprep.subr.bf16.mxu0 %v2583_v49  ;;  %v792_v0 = vmax.f32 %v3344_v24, 0.0  ;;  %v2703_v6 = vpack.c.bf16 %v1766_v45, %v1765_v41  ;;  %v1619_v41 = vld [vmem:[%s3662_s1 + $0x120] sm:$0xff]  ;;  %v1620_v45 = vld [vmem:[%s3662_s1 + $0x128] sm:$0xff] }
  0x5b   :  { %2616 = vmatprep.subr.bf16.mxu1 %v2615_v59 }
  0x5d   :  { %2586 = vmatpush3.bf16.msra.mxu0 %v2583_v49  ;;  %v1741_v49 = vld [vmem:[%s3662_s1 + $0x2d0] sm:$0xff] }
  0x5e   :  { %2618 = vmatpush3.bf16.msra.mxu1 %v2615_v59  ;;  %2588 = vmatprep.subr.bf16.mxu0 %v2587_v10  ;;  %v1742_v59 = vld [vmem:[%s3662_s1 + $0x2d8] sm:$0xff] }
  0x5f   :  { %2620 = vmatprep.subr.bf16.mxu1 %v2619_v12  ;;  %v2643_v30 = vpack.c.bf16 %v1742_v59, %v1741_v49  ;;  %v2663_v49 = vpack.c.bf16 %v1620_v45, %v1619_v41  ;;  %v1752_v59 = vld [vmem:[%s3663_s0 + $0x118] sm:$0xff] }
  0x60   :  { %v1201_v60 = vmax.f32 %v1752_v59, 0.0 }
  0x61   :  { %2590 = vmatpush3.bf16.msra.mxu0 %v2587_v10  ;;  %v3398_v10 = vld [vmem:[%s3663_s0 + $0xe8] sm:$0xff] }
  0x62   :  { %2622 = vmatpush3.bf16.msra.mxu1 %v2619_v12  ;;  %2624 = vmatprep.subr.bf16.mxu0 %v2623_v19  ;;  %v1747_v12 = vld [vmem:[%s3663_s0 + $0xf0] sm:$0xff] }
  0x63   :  { %2688 = vmatprep.subr.bf16.mxu1 %v2687_v21  ;;  %v1196_v23 = vmax.f32 %v1747_v12, 0.0  ;;  %v1202_v12 = vmax.f32 %v1753_v9, 0.0 }
  0x64   :  { %2229 = vmatmul.mubr.f32.vlgmr.msra.gmra.mrb[10].mxu0 %v2925_v62 }
  0x65   :  { %2276 = vmatmul.mubr.f32.vlgmr.msra.gmra.mrb[0].mxu1 %v787_v34  ;;  %2626 = vmatpush3.bf16.msra.mxu0 %v2623_v19  ;;  %v795_v19 = vmax.f32 %v3398_v10, 0.0 }
  0x66   :  { %2690 = vmatpush3.bf16.msra.mxu1 %v2687_v21  ;;  %2231 = vmatprep.mubr.f32.mxu0 %v2945_v5  ;;  %v1769_v21 = vld [vmem:[%s3662_s1 + $0x260] sm:$0xff] }
  0x67   :  { %2628 = vmatprep.subr.bf16.mxu0 %v2627_v37  ;;  %2692 = vmatprep.subr.bf16.mxu1 %v2691_v38  ;;  %v2711_v27 = vpack.c.bf16 %v1770_v22, %v1769_v21  ;;  %v1756_v21 = vld [vmem:[%s3663_s0 + $0x138] sm:$0xff]  ;;  %v1625_v22 = vld [vmem:[%s3662_s1 + $0x150] sm:$0xff] }
  0x68   :  { %2232 = vmatmul.mubr.f32.gmra.mrb[12].mxu0 %v2957_v11  ;;  %2278 = vmatprep.mubr.f32.mxu1 %v788_v48  ;;  %v2675_v15 = vpack.c.bf16 %v1626_v51, %v1625_v22 }
  0x69   :  { %2630 = vmatpush3.bf16.msra.mxu0 %v2627_v37  ;;  %2234 = vmatprep.mubr.f32.mxu0 %v2973_v16  ;;  %v1745_v37 = vld [vmem:[%s3662_s1 + $0x2f0] sm:$0xff] }
  0x6a   :  { %2694 = vmatpush3.bf16.msra.mxu1 %v2691_v38  ;;  %2632 = vmatprep.subr.bf16.mxu0 %v2631_v58  ;;  %v1746_v38 = vld [vmem:[%s3662_s1 + $0x2f8] sm:$0xff] }
  0x6b   :  { %2696 = vmatprep.subr.bf16.mxu1 %v2695_v2  ;;  %2279 = vmatmul.mubr.f32.gmra.mrb[2].mxu1 %v789_v4  ;;  %v2651_v39 = vpack.c.bf16 %v1746_v38, %v1745_v37 }
  0x6c   :  { %2235 = vmatmul.mubr.f32.gmra.mrb[14].mxu0 %v2995_v25  ;;  %2281 = vmatprep.mubr.f32.mxu1 %v790_v57 }
  0x6d   :  { %2634 = vmatpush3.bf16.msra.mxu0 %v2631_v58  ;;  %2237 = vmatprep.mubr.f32.mxu0 %v3012_v33  ;;  %v2655_v58 = vpack.c.bf16 %v1616_v44, %v1615_v43 }
  0x6e   :  { %2698 = vmatpush3.bf16.msra.mxu1 %v2695_v2  ;;  %2636 = vmatprep.subr.bf16.mxu0 %v2635_v18  ;;  %v1748_v2 = vld [vmem:[%s3663_s0 + $0xf8] sm:$0xff] }
  0x6f   :  { %2700 = vmatprep.subr.bf16.mxu1 %v2699_v28  ;;  %2282 = vmatmul.mubr.f32.gmra.mrb[4].mxu1 %v791_v32  ;;  %v1197_v56 = vmax.f32 %v1748_v2, 0.0 }
  0x70   :  { %2238 = vmatmul.mubr.f32.gmra.mrb[16].mxu0 %v3035_v42  ;;  %2284 = vmatprep.mubr.f32.mxu1 %v792_v0 }
  0x71   :  { %2638 = vmatpush3.bf16.msra.mxu0 %v2635_v18  ;;  %2240 = vmatprep.mubr.f32.mxu0 %v3052_v47  ;;  %v1198_v18 = vmax.f32 %v1749_v52, 0.0 }
  0x72   :  { %2702 = vmatpush3.bf16.msra.mxu1 %v2699_v28  ;;  %2640 = vmatprep.subr.bf16.mxu0 %v2639_v54  ;;  %v2659_v28 = vpack.c.bf16 %v1618_v14, %v1617_v53 }
  0x73   :  { %2704 = vmatprep.subr.bf16.mxu1 %v2703_v6  ;;  %2285 = vmatmul.mubr.f32.gmra.mrb[6].mxu1 %v793_v8 }
  0x74   :  { %2241 = vmatmul.mubr.f32.gmra.mrb[18].mxu0 %v3072_v55  ;;  %2287 = vmatprep.mubr.f32.mxu1 %v794_v3 }
  0x75   :  { %2642 = vmatpush3.bf16.msra.mxu0 %v2639_v54  ;;  %2322 = vmatprep.mubr.f32.mxu0 %v786_v7  ;;  %v1772_v7 = vld [vmem:[%s3662_s1 + $0x278] sm:$0xff]  ;;  %v1199_v54 = vmax.f32 %v1750_v61, 0.0 }
  0x76   :  { %2706 = vmatpush3.bf16.msra.mxu1 %v2703_v6  ;;  %2644 = vmatprep.subr.bf16.mxu0 %v2643_v30  ;;  %v2715_v40 = vpack.c.bf16 %v1772_v7, %v1771_v35  ;;  %v1200_v6 = vmax.f32 %v1751_v63, 0.0 }
  0x77   :  { %2708 = vmatprep.subr.bf16.mxu1 %v2707_v31  ;;  %2288 = vmatmul.mubr.f32.gmra.mrb[8].mxu1 %v795_v19 }
  0x78   :  { %2416 = vmatprep.mubr.f32.mxu1 %v1196_v23  ;;  %v1628_v23 = vld [vmem:[%s3662_s1 + $0x168] sm:$0xff] }
  0x79   :  { %2646 = vmatpush3.bf16.msra.mxu0 %v2643_v30 }
  0x7a   :  { %2710 = vmatpush3.bf16.msra.mxu1 %v2707_v31  ;;  %2648 = vmatprep.subr.bf16.mxu0 %v2647_v26  ;;  %v1754_v31 = vld [vmem:[%s3663_s0 + $0x128] sm:$0xff] }
  0x7b   :  { %2712 = vmatprep.subr.bf16.mxu1 %v2711_v27  ;;  %v1203_v50 = vmax.f32 %v1754_v31, 0.0 }
  0x7d   :  { %2650 = vmatpush3.bf16.msra.mxu0 %v2647_v26 }
  0x7e   :  { %2714 = vmatpush3.bf16.msra.mxu1 %v2711_v27  ;;  %2652 = vmatprep.subr.bf16.mxu0 %v2651_v39 }
  0x7f   :  { %2716 = vmatprep.subr.bf16.mxu1 %v2715_v40 }
  0x81   :  { %2654 = vmatpush3.bf16.msra.mxu0 %v2651_v39 }
  0x82   :  { %2718 = vmatpush3.bf16.msra.mxu1 %v2715_v40  ;;  %2656 = vmatprep.subr.bf16.mxu0 %v2655_v58 }
  0x84   :  { %2323 = vmatmul.mubr.f32.vlgmr.msra.gmra.mrb[20].mxu0 %v787_v34  ;;  %v1622_v34 = vld [vmem:[%s3662_s1 + $0x138] sm:$0xff] }
  0x85   :  { %2417 = vmatmul.mubr.f32.vlgmr.msra.gmra.mrb[0].mxu1 %v1197_v56  ;;  %2658 = vmatpush3.bf16.msra.mxu0 %v2655_v58  ;;  %v2667_v30 = vpack.c.bf16 %v1622_v34, %v1621_v20 }
  0x86   :  { %2419 = vmatprep.mubr.f32.mxu1 %v1198_v18  ;;  %2660 = vmatprep.subr.bf16.mxu0 %v2659_v28 }
  0x87   :  { %2325 = vmatprep.mubr.f32.mxu0 %v788_v48  ;;  %v1624_v48 = vld [vmem:[%s3662_s1 + $0x148] sm:$0xff] }
  0x88   :  { %2326 = vmatmul.mubr.f32.gmra.mrb[22].mxu0 %v789_v4  ;;  %v1204_v4 = vmax.f32 %v1755_v13, 0.0  ;;  %v2671_v17 = vpack.c.bf16 %v1624_v48, %v1623_v36 }
  0x89   :  { %2420 = vmatmul.mubr.f32.gmra.mrb[2].mxu1 %v1199_v54  ;;  %2662 = vmatpush3.bf16.msra.mxu0 %v2659_v28 }
  0x8a   :  { %2422 = vmatprep.mubr.f32.mxu1 %v1200_v6  ;;  %2664 = vmatprep.subr.bf16.mxu0 %v2663_v49 }
  0x8b   :  { %2328 = vmatprep.mubr.f32.mxu0 %v790_v57  ;;  %v1205_v57 = vmax.f32 %v1756_v21, 0.0 }
  0x8c   :  { %2329 = vmatmul.mubr.f32.gmra.mrb[24].mxu0 %v791_v32  ;;  %v1627_v32 = vld [vmem:[%s3662_s1 + $0x160] sm:$0xff] }
  0x8d   :  { %2423 = vmatmul.mubr.f32.gmra.mrb[4].mxu1 %v1201_v60  ;;  %2666 = vmatpush3.bf16.msra.mxu0 %v2663_v49  ;;  %v2679_v24 = vpack.c.bf16 %v1628_v23, %v1627_v32 }
  0x8e   :  { %2425 = vmatprep.mubr.f32.mxu1 %v1202_v12  ;;  %2668 = vmatprep.subr.bf16.mxu0 %v2667_v30 }
  0x8f   :  { %2331 = vmatprep.mubr.f32.mxu0 %v792_v0  ;;  %v1629_v0 = vld [vmem:[%s3662_s1 + $0x170] sm:$0xff] }
  0x90   :  { %2332 = vmatmul.mubr.f32.gmra.mrb[26].mxu0 %v793_v8  ;;  %v2683_v46 = vpack.c.bf16 %v1630_v1, %v1629_v0 }
  0x91   :  { %2426 = vmatmul.mubr.f32.gmra.mrb[6].mxu1 %v1203_v50  ;;  %2670 = vmatpush3.bf16.msra.mxu0 %v2667_v30 }
  0x92   :  { %2428 = vmatprep.mubr.f32.mxu1 %v1204_v4  ;;  %2672 = vmatprep.subr.bf16.mxu0 %v2671_v17 }
  0x93   :  { %2334 = vmatprep.mubr.f32.mxu0 %v794_v3 }
  0x94   :  { %2335 = vmatmul.mubr.f32.gmra.mrb[28].mxu0 %v795_v19 }
  0x95   :  { %2429 = vmatmul.mubr.f32.gmra.mrb[8].mxu1 %v1205_v57  ;;  %2674 = vmatpush3.bf16.msra.mxu0 %v2671_v17  ;;  %v1773_v17 = vld [vmem:[%s3664_s2] ss:$0 sm:$0xff] }
  0x96   :  { %2676 = vmatprep.subr.bf16.mxu0 %v2675_v15  ;;  %2369 = vmatprep.mubr.f32.mxu0 %v2852_v29  ;;  %v1518_v29 = vlaneseq }
  0x98   :  { %v3541_v8 = vshrl.u32 %v1518_v29, 7 }
  0x99   :  { %2678 = vmatpush3.bf16.msra.mxu0 %v2675_v15 }
  0x9a   :  { %2680 = vmatprep.subr.bf16.mxu0 %v2679_v24  ;;  %vm1520_vm0 = vcmp.lt.s32.totalorder %v3541_v8, 7 }
  0x9d   :  { %2682 = vmatpush3.bf16.msra.mxu0 %v2679_v24 }
  0x9e   :  { %2684 = vmatprep.subr.bf16.mxu0 %v2683_v46 }
  0xa1   :  { %2686 = vmatpush3.bf16.msra.mxu0 %v2683_v46 }
  0xa4   :  { %2370 = vmatmul.mubr.f32.vlgmr.msra.gmra.mrb[20].mxu0 %v2925_v62 }
  0xa5   :  { %2372 = vmatprep.mubr.f32.mxu0 %v2945_v5 }
  0xa8   :  { %2373 = vmatmul.mubr.f32.gmra.mrb[22].mxu0 %v2957_v11 }
  0xa9   :  { %2375 = vmatprep.mubr.f32.mxu0 %v2973_v16 }
  0xac   :  { %2376 = vmatmul.mubr.f32.gmra.mrb[24].mxu0 %v2995_v25 }
  0xad   :  { %2378 = vmatprep.mubr.f32.mxu0 %v3012_v33 }
  0xb0   :  { %2379 = vmatmul.mubr.f32.gmra.mrb[26].mxu0 %v3035_v42 }
  0xb1   :  { %2381 = vmatprep.mubr.f32.mxu0 %v3052_v47 }
  0xb4   :  { %2382 = vmatmul.mubr.f32.gmra.mrb[28].mxu0 %v3072_v55 }
  0xf7   :  { %v2042_v62 = vpop.f32.mrb[0].mxu0 }
  0xf8   :  { %v1572_v3 = vrot.slane %v2042_v62, 1  ;;  %v211_v5 = vpop.f32.mrb[1].mxu0 }
  0xf9   :  { %v1571_v11 = vrot.slane %v211_v5, 1 }
  0xfb   :  { %v3546_v16 = vsel %vm1520_vm0, %v1571_v11, %v1572_v3  ;;  %v2045_v25 = vpop.f32.mrb[2].mxu0 }
  0xfc   :  { %v1574_v33 = vrot.slane %v2045_v25, 1  ;;  %v221_v42 = vpop.f32.mrb[3].mxu0 }
  0xfd   :  { %v1573_v10 = vrot.slane %v221_v42, 1 }
  0xff   :  { %v3550_v47 = vsel %vm1520_vm0, %v1573_v10, %v1574_v33  ;;  %v1588_v55 = vsel %vm1520_vm0, %v1572_v3, %v1573_v10  ;;  %v2048_v19 = vpop.f32.mrb[4].mxu0 }
 0x100   :  { %v1576_v26 = vrot.slane %v2048_v19, 1  ;;  %v231_v27 = vpop.f32.mrb[5].mxu0 }
 0x101   :  { %v1575_v37 = vrot.slane %v231_v27, 1 }
 0x103   :  { %v3556_v38 = vsel %vm1520_vm0, %v1575_v37, %v1576_v26  ;;  %v3560_v35 = vsel %vm1520_vm0, %v1574_v33, %v1575_v37  ;;  %v2051_v7 = vpop.f32.mrb[6].mxu0 }
 0x104   :  { %v1578_v39 = vrot.slane %v2051_v7, 1  ;;  %v241_v40 = vpop.f32.mrb[7].mxu0 }
 0x105   :  { %v1577_v43 = vrot.slane %v241_v40, 1 }
 0x107   :  { %v3564_v44 = vsel %vm1520_vm0, %v1577_v43, %v1578_v39  ;;  %v3568_v58 = vsel %vm1520_vm0, %v1576_v26, %v1577_v43  ;;  %v2054_v2 = vpop.f32.mrb[8].mxu0 }
 0x108   :  { %v1580_v52 = vrot.slane %v2054_v2, 1  ;;  %v251_v53 = vpop.f32.mrb[9].mxu0 }
 0x109   :  { %v1579_v14 = vrot.slane %v251_v53, 1 }
 0x10a   :  { %v3572_v56 = vsel %vm1520_vm0, %v1580_v52, %v1571_v11 }
 0x10b   :  { %v3576_v18 = vsel %vm1520_vm0, %v1579_v14, %v1580_v52  ;;  %v3580_v28 = vsel %vm1520_vm0, %v1578_v39, %v1579_v14 }
 0x137   :  { %v2230_v61 = vpop.f32.mrb[10].mxu0 }
 0x138   :  { %v3582_v63 = vpop.f32.mrb[11].mxu0 }
 0x13b   :  { %v2233_v41 = vpop.f32.mrb[12].mxu0 }
 0x13c   :  { %v736_v45 = vpop.f32.mrb[13].mxu0 }
 0x13f   :  { %v2236_v54 = vpop.f32.mrb[14].mxu0 }
 0x140   :  { %v746_v6 = vpop.f32.mrb[15].mxu0 }
 0x143   :  { %v3584_v49 = vpop.f32.mrb[16].mxu0 }
 0x144   :  { %v3586_v59 = vpop.f32.mrb[17].mxu0 }
 0x147   :  { %v3588_v9 = vpop.f32.mrb[18].mxu0 }
 0x148   :  { %v3590_v20 = vpop.f32.mrb[19].mxu0 }
 0x158   :  { %v2418_v34 = vpop.f32.mrb[0].mxu1 }
 0x159   :  { %v1289_v60 = vpop.f32.mrb[1].mxu1  ;;  %v1489_v29 = vadd.f32 %v2418_v34, %v1773_v17 }
 0x15a   :  { %v1488_v15 = vadd.f32 %v1773_v17, %v1289_v60 }
 0x15c   :  { %v2421_v12 = vpop.f32.mrb[2].mxu1 }
 0x15d   :  { %v1299_v30 = vpop.f32.mrb[3].mxu1  ;;  %v1491_v37 = vadd.f32 %v2421_v12, %v1773_v17 }
 0x15e   :  { %v1490_v62 = vadd.f32 %v1773_v17, %v1299_v30 }
 0x160   :  { %v2424_v31 = vpop.f32.mrb[4].mxu1 }
 0x161   :  { %v1309_v13 = vpop.f32.mrb[5].mxu1  ;;  %v1493_v30 = vadd.f32 %v2424_v31, %v1773_v17 }
 0x162   :  { %v1492_v7 = vadd.f32 %v1773_v17, %v1309_v13 }
 0x164   :  { %v2427_v36 = vpop.f32.mrb[6].mxu1 }
 0x165   :  { %v1319_v48 = vpop.f32.mrb[7].mxu1 }
 0x166   :  { %v1494_v13 = vadd.f32 %v1773_v17, %v1319_v48 }
 0x168   :  { %v2430_v50 = vpop.f32.mrb[8].mxu1 }
 0x169   :  { %v3592_v4 = vpop.f32.mrb[9].mxu1 }
 0x177   :  { %v2371_v21 = vpop.f32.mrb[20].mxu0 }
 0x178   :  { %v1509_v22 = vrot.slane %v2371_v21, 1  ;;  %v1136_v51 = vpop.f32.mrb[21].mxu0 }
 0x179   :  { %v1508_v57 = vrot.slane %v1136_v51, 1 }
 0x17b   :  { %v1529_v32 = vsel %vm1520_vm0, %v1508_v57, %v1509_v22  ;;  %v2374_v23 = vpop.f32.mrb[22].mxu0 }
 0x17c   :  { %v1531_v24 = vadd.f32 %v1529_v32, %v1488_v15  ;;  %v1511_v0 = vrot.slane %v2374_v23, 1  ;;  %v1146_v1 = vpop.f32.mrb[23].mxu0 }
 0x17d   :  { %v1510_v46 = vrot.slane %v1146_v1, 1 }
 0x17e   :  { %v1551_v3 = vadd.f32 %v2230_v61, %v1531_v24  ;;  %v1495_v24 = vadd.f32 %v2427_v36, %v1773_v17 }
 0x17f   :  { %v1527_v5 = vsel %vm1520_vm0, %v1510_v46, %v1511_v0  ;;  %v1528_v11 = vsel %vm1520_vm0, %v1509_v22, %v1510_v46  ;;  %v2377_v25 = vpop.f32.mrb[24].mxu0 }
 0x180   :  { %v1591_v33 = vadd.f32 %v1588_v55, %v1551_v3  ;;  %v1532_v42 = vadd.f32 %v1528_v11, %v1489_v29  ;;  %v1533_v10 = vadd.f32 %v1527_v5, %v1490_v62  ;;  %v1513_v19 = vrot.slane %v2377_v25, 1  ;;  %v1156_v26 = vpop.f32.mrb[25].mxu0 }
 0x181   :  { %v1512_v27 = vrot.slane %v1156_v26, 1 }
 0x182   :  { %1601 = vst [vmem:[%s3665_s3] sm:$0xff] %v1591_v33  ;;  %v1552_v39 = vadd.f32 %v1532_v42, %v736_v45  ;;  %v1553_v40 = vadd.f32 %v2233_v41, %v1533_v10 }
 0x183   :  { %v1525_v43 = vsel %vm1520_vm0, %v1512_v27, %v1513_v19  ;;  %v1526_v2 = vsel %vm1520_vm0, %v1511_v0, %v1512_v27  ;;  %v2380_v55 = vpop.f32.mrb[26].mxu0  ;;  %v1497_v0 = vadd.f32 %v2430_v50, %v1773_v17 }
 0x184   :  { %v1592_v52 = vadd.f32 %v3550_v47, %v1552_v39  ;;  %v1593_v53 = vadd.f32 %v3560_v35, %v1553_v40  ;;  %v1534_v14 = vadd.f32 %v1526_v2, %v1491_v37  ;;  %v1535_v61 = vadd.f32 %v1525_v43, %v1492_v7  ;;  %v1166_v34 = vpop.f32.mrb[27].mxu0 }
 0x185   :  { %v1515_v60 = vrot.slane %v2380_v55, 1  ;;  %v1514_v12 = vrot.slane %v1166_v34, 1 }
 0x186   :  { %1602 = vst [vmem:[%s3665_s3 + $0x8] sm:$0xff] %v1592_v52  ;;  %1603 = vst [vmem:[%s3665_s3 + $0x10] sm:$0xff] %v1593_v53  ;;  %v1554_v41 = vadd.f32 %v1534_v14, %v746_v6  ;;  %v1555_v45 = vadd.f32 %v2236_v54, %v1535_v61 }
 0x187   :  { %v1523_v47 = vsel %vm1520_vm0, %v1514_v12, %v1515_v60  ;;  %v1524_v35 = vsel %vm1520_vm0, %v1513_v19, %v1514_v12  ;;  %v2383_v21 = vpop.f32.mrb[28].mxu0 }
 0x188   :  { %v1594_v31 = vadd.f32 %v3556_v38, %v1554_v41  ;;  %v1595_v48 = vadd.f32 %v3568_v58, %v1555_v45  ;;  %v1536_v22 = vadd.f32 %v1524_v35, %v1493_v30  ;;  %v1537_v51 = vadd.f32 %v1523_v47, %v1494_v13  ;;  %v1176_v15 = vpop.f32.mrb[29].mxu0 }
 0x189   :  { %v1517_v32 = vrot.slane %v2383_v21, 1  ;;  %v1516_v23 = vrot.slane %v1176_v15, 1  ;;  %v1496_v58 = vadd.f32 %v1773_v17, %v3592_v4 }
 0x18a   :  { %1604 = vst [vmem:[%s3665_s3 + $0x18] sm:$0xff] %v1594_v31  ;;  %1605 = vst [vmem:[%s3665_s3 + $0x20] sm:$0xff] %v1595_v48  ;;  %v1556_v54 = vadd.f32 %v1536_v22, %v3586_v59  ;;  %v1557_v38 = vadd.f32 %v3584_v49, %v1537_v51 }
 0x18b   :  { %v1530_v6 = vsel %vm1520_vm0, %v1517_v32, %v1508_v57  ;;  %v1521_v36 = vsel %vm1520_vm0, %v1516_v23, %v1517_v32  ;;  %v1522_v50 = vsel %vm1520_vm0, %v1515_v60, %v1516_v23 }
 0x18c   :  { %v1596_v1 = vadd.f32 %v3564_v44, %v1556_v54  ;;  %v1597_v46 = vadd.f32 %v3580_v28, %v1557_v38  ;;  %v1540_v29 = vadd.f32 %v1530_v6, %v1497_v0  ;;  %v1538_v62 = vadd.f32 %v1522_v50, %v1495_v24 }
 0x18d   :  { %v1539_v59 = vadd.f32 %v1521_v36, %v1496_v58 }
 0x18e   :  { %1606 = vst [vmem:[%s3665_s3 + $0x28] sm:$0xff] %v1596_v1  ;;  %1607 = vst [vmem:[%s3665_s3 + $0x30] sm:$0xff] %v1597_v46  ;;  %v1560_v49 = vadd.f32 %v1540_v29, %v3582_v63  ;;  %v1558_v8 = vadd.f32 %v1538_v62, %v3590_v20 }
 0x18f   :  { %v1559_v4 = vadd.f32 %v3588_v9, %v1539_v59 }
 0x190   :  { %v1600_v44 = vadd.f32 %v3546_v16, %v1560_v49  ;;  %v1598_v28 = vadd.f32 %v3576_v18, %v1558_v8 }
 0x191   :  { %v1599_v17 = vadd.f32 %v3572_v56, %v1559_v4 }
 0x192   :  { %1610 = vst [vmem:[%s3665_s3 + $0x48] sm:$0xff] %v1600_v44  ;;  %1608 = vst [vmem:[%s3665_s3 + $0x38] sm:$0xff] %v1598_v28 }
 0x193   :  { %1609 = vst [vmem:[%s3665_s3 + $0x40] sm:$0xff] %v1599_v17 }

// kernel: _last_level_p6p7_impl.2
= control target key start
LH: loop header
LB: loop body
LE: loop exit
PB: predicated region body
PF: predicated region fallthrough
CT: control target
= control target key end

     0   :  { %s7646_s1 = inlined_call_operand.vmem [shape: f32[9,128,128], index: 1, kind: input, shape index: {}]   ;;  %s7647_s0 = inlined_call_operand.vmem [shape: f32[4,2,9,16,128], index: 0, kind: input, shape index: {}]   ;;  %s7648_s2 = inlined_call_operand.vmem [shape: f32[1,128], index: 2, kind: input, shape index: {}]   ;;  %s7649_s3 = inlined_call_operand.vmem [shape: f32[2,9,16,128], index: 3, kind: output, shape index: {}]  }
   0x1   :  { %v3687_v0 = vld [vmem:[%s7646_s1 + $0x400] sm:$0xff]  ;;  %v3688_v1 = vld [vmem:[%s7646_s1 + $0x408] sm:$0xff]  ;;  %v3689_v5 = vld [vmem:[%s7646_s1 + $0x410] sm:$0xff] }
   0x2   :  { %v198_v2 = vld [vmem:[%s7646_s1] sm:$0xff]  ;;  %v5134_v3 = vpack.c.bf16 %v3688_v1, %v3687_v0  ;;  %v199_v4 = vld [vmem:[%s7646_s1 + $0x8] sm:$0xff]  ;;  %v3690_v6 = vld [vmem:[%s7646_s1 + $0x418] sm:$0xff] }
   0x3   :  { %v5800_v7 = vpack.c.bf16 %v199_v4, %v198_v2  ;;  %v5138_v8 = vpack.c.bf16 %v3690_v6, %v3689_v5  ;;  %v200_v9 = vld [vmem:[%s7646_s1 + $0x10] sm:$0xff]  ;;  %v201_v10 = vld [vmem:[%s7646_s1 + $0x18] sm:$0xff]  ;;  %v3691_v11 = vld [vmem:[%s7646_s1 + $0x420] sm:$0xff] }
   0x4   :  { %5135 = vmatprep.subr.bf16.mxu0 %v5134_v3  ;;  %v5811_v12 = vpack.c.bf16 %v201_v10, %v200_v9  ;;  %v3692_v13 = vld [vmem:[%s7646_s1 + $0x428] sm:$0xff]  ;;  %v202_v14 = vld [vmem:[%s7646_s1 + $0x20] sm:$0xff]  ;;  %v3693_v18 = vld [vmem:[%s7646_s1 + $0x430] sm:$0xff] }
   0x5   :  { %v203_v15 = vld [vmem:[%s7646_s1 + $0x28] sm:$0xff]  ;;  %5422 = vmatprep.subr.bf16.mxu1 %v5800_v7  ;;  %5137 = vmatpush3.bf16.msra.mxu0 %v5134_v3  ;;  %v5142_v16 = vpack.c.bf16 %v3692_v13, %v3691_v11  ;;  %v3694_v19 = vld [vmem:[%s7646_s1 + $0x438] sm:$0xff]  ;;  %v204_v20 = vld [vmem:[%s7646_s1 + $0x30] sm:$0xff] }
   0x6   :  { %5430 = vmatpush3.bf16.msra.mxu1 %v5800_v7  ;;  %5139 = vmatprep.subr.bf16.mxu0 %v5138_v8  ;;  %v5825_v17 = vpack.c.bf16 %v203_v15, %v202_v14  ;;  %v205_v21 = vld [vmem:[%s7646_s1 + $0x38] sm:$0xff]  ;;  %v5146_v22 = vpack.c.bf16 %v3694_v19, %v3693_v18  ;;  %v3695_v24 = vld [vmem:[%s7646_s1 + $0x440] sm:$0xff]  ;;  %v3696_v25 = vld [vmem:[%s7646_s1 + $0x448] sm:$0xff] }
   0x7   :  { %5423 = vmatprep.subr.bf16.mxu1 %v5811_v12  ;;  %v5841_v23 = vpack.c.bf16 %v205_v21, %v204_v20  ;;  %v5852_v26 = vld [vmem:[%s7647_s0] sm:$0xff]  ;;  %v207_v28 = vld [vmem:[%s7646_s1 + $0x48] sm:$0xff]  ;;  %v5864_v29 = vld [vmem:[%s7647_s0 + $0x90] sm:$0xff]  ;;  %v5150_v30 = vpack.c.bf16 %v3696_v25, %v3695_v24 }
   0x8   :  { %v206_v27 = vld [vmem:[%s7646_s1 + $0x40] sm:$0xff]  ;;  %4392 = vmatprep.mubr.f32.mxu0 %v5852_v26  ;;  %4591 = vmatprep.mubr.f32.mxu1 %v5864_v29  ;;  %v3697_v32 = vld [vmem:[%s7646_s1 + $0x450] sm:$0xff]  ;;  %v3698_v33 = vld [vmem:[%s7646_s1 + $0x458] sm:$0xff] }
   0x9   :  { %5141 = vmatpush3.bf16.msra.mxu0 %v5138_v8  ;;  %v5869_v31 = vpack.c.bf16 %v207_v28, %v206_v27  ;;  %v208_v34 = vld [vmem:[%s7646_s1 + $0x50] sm:$0xff]  ;;  %v209_v35 = vld [vmem:[%s7646_s1 + $0x58] sm:$0xff]  ;;  %v5154_v36 = vpack.c.bf16 %v3698_v33, %v3697_v32  ;;  %v3699_v38 = vld [vmem:[%s7646_s1 + $0x460] sm:$0xff] }
   0xa   :  { %5431 = vmatpush3.bf16.msra.mxu1 %v5811_v12  ;;  %5143 = vmatprep.subr.bf16.mxu0 %v5142_v16  ;;  %v5885_v37 = vpack.c.bf16 %v209_v35, %v208_v34  ;;  %v3700_v39 = vld [vmem:[%s7646_s1 + $0x468] sm:$0xff]  ;;  %v210_v40 = vld [vmem:[%s7646_s1 + $0x60] sm:$0xff]  ;;  %v3701_v44 = vld [vmem:[%s7646_s1 + $0x470] sm:$0xff] }
   0xb   :  { %5424 = vmatprep.subr.bf16.mxu1 %v5825_v17  ;;  %v211_v41 = vld [vmem:[%s7646_s1 + $0x68] sm:$0xff]  ;;  %v5158_v42 = vpack.c.bf16 %v3700_v39, %v3699_v38  ;;  %v3702_v45 = vld [vmem:[%s7646_s1 + $0x478] sm:$0xff]  ;;  %v212_v46 = vld [vmem:[%s7646_s1 + $0x70] sm:$0xff] }
   0xc   :  { %v5901_v43 = vpack.c.bf16 %v211_v41, %v210_v40  ;;  %v213_v47 = vld [vmem:[%s7646_s1 + $0x78] sm:$0xff]  ;;  %v5162_v48 = vpack.c.bf16 %v3702_v45, %v3701_v44  ;;  %v3739_v50 = vld [vmem:[%s7646_s1 + $0x80] sm:$0xff]  ;;  %v3740_v51 = vld [vmem:[%s7646_s1 + $0x88] sm:$0xff] }
   0xd   :  { %5145 = vmatpush3.bf16.msra.mxu0 %v5142_v16  ;;  %v5917_v49 = vpack.c.bf16 %v213_v47, %v212_v46  ;;  %v3755_v52 = vld [vmem:[%s7646_s1 + $0x380] sm:$0xff]  ;;  %v3756_v53 = vld [vmem:[%s7646_s1 + $0x388] sm:$0xff]  ;;  %v5166_v54 = vpack.c.bf16 %v3740_v51, %v3739_v50  ;;  %v3757_v56 = vld [vmem:[%s7646_s1 + $0x390] sm:$0xff] }
   0xe   :  { %5432 = vmatpush3.bf16.msra.mxu1 %v5825_v17  ;;  %5147 = vmatprep.subr.bf16.mxu0 %v5146_v22  ;;  %v5230_v55 = vpack.c.bf16 %v3756_v53, %v3755_v52  ;;  %v3758_v57 = vld [vmem:[%s7646_s1 + $0x398] sm:$0xff]  ;;  %v5942_v58 = vld [vmem:[%s7647_s0 + $0x8] sm:$0xff]  ;;  %v3741_v59 = vld [vmem:[%s7646_s1 + $0x90] sm:$0xff] }
   0xf   :  { %5425 = vmatprep.subr.bf16.mxu1 %v5841_v23  ;;  %v3742_v60 = vld [vmem:[%s7646_s1 + $0x98] sm:$0xff]  ;;  %v5959_v62 = vld [vmem:[%s7647_s0 + $0x10] sm:$0xff]  ;;  %v5964_v63 = vld [vmem:[%s7647_s0 + $0xa0] sm:$0xff]  ;;  %v5234_v0 = vpack.c.bf16 %v3758_v57, %v3757_v56 }
  0x10   :  { %v5954_v61 = vld [vmem:[%s7647_s0 + $0x98] sm:$0xff]  ;;  %v3759_v1 = vld [vmem:[%s7646_s1 + $0x3a0] sm:$0xff]  ;;  %v3760_v2 = vld [vmem:[%s7646_s1 + $0x3a8] sm:$0xff]  ;;  %v5170_v3 = vpack.c.bf16 %v3742_v60, %v3741_v59 }
  0x11   :  { %5149 = vmatpush3.bf16.msra.mxu0 %v5146_v22  ;;  %v5978_v4 = vld [vmem:[%s7647_s0 + $0x18] sm:$0xff]  ;;  %v3743_v5 = vld [vmem:[%s7646_s1 + $0xa0] sm:$0xff]  ;;  %v3744_v6 = vld [vmem:[%s7646_s1 + $0xa8] sm:$0xff]  ;;  %v5238_v11 = vpack.c.bf16 %v3760_v2, %v3759_v1 }
  0x12   :  { %5433 = vmatpush3.bf16.msra.mxu1 %v5841_v23  ;;  %5151 = vmatprep.subr.bf16.mxu0 %v5150_v30  ;;  %v5990_v8 = vld [vmem:[%s7647_s0 + $0xa8] sm:$0xff]  ;;  %v5995_v9 = vld [vmem:[%s7647_s0 + $0x20] sm:$0xff]  ;;  %v6000_v10 = vld [vmem:[%s7647_s0 + $0xb0] sm:$0xff]  ;;  %v5174_v15 = vpack.c.bf16 %v3744_v6, %v3743_v5 }
  0x13   :  { %5426 = vmatprep.subr.bf16.mxu1 %v5869_v31  ;;  %v3761_v13 = vld [vmem:[%s7646_s1 + $0x3b0] sm:$0xff]  ;;  %v3762_v14 = vld [vmem:[%s7646_s1 + $0x3b8] sm:$0xff]  ;;  %v6014_v16 = vld [vmem:[%s7647_s0 + $0x28] sm:$0xff] }
  0x14   :  { %v3745_v18 = vld [vmem:[%s7646_s1 + $0xb0] sm:$0xff]  ;;  %v3746_v19 = vld [vmem:[%s7646_s1 + $0xb8] sm:$0xff]  ;;  %v6036_v22 = vld [vmem:[%s7647_s0 + $0xc0] sm:$0xff]  ;;  %v5242_v24 = vpack.c.bf16 %v3762_v14, %v3761_v13 }
  0x15   :  { %5153 = vmatpush3.bf16.msra.mxu0 %v5150_v30  ;;  %v6026_v20 = vld [vmem:[%s7647_s0 + $0xb8] sm:$0xff]  ;;  %v6031_v21 = vld [vmem:[%s7647_s0 + $0x30] sm:$0xff]  ;;  %v3763_v25 = vld [vmem:[%s7646_s1 + $0x3c0] sm:$0xff]  ;;  %v5178_v28 = vpack.c.bf16 %v3746_v19, %v3745_v18 }
  0x16   :  { %5434 = vmatpush3.bf16.msra.mxu1 %v5869_v31  ;;  %5155 = vmatprep.subr.bf16.mxu0 %v5154_v36  ;;  %v3764_v27 = vld [vmem:[%s7646_s1 + $0x3c8] sm:$0xff]  ;;  %v6050_v30 = vld [vmem:[%s7647_s0 + $0x38] sm:$0xff]  ;;  %v3747_v32 = vld [vmem:[%s7646_s1 + $0xc0] sm:$0xff] }
  0x17   :  { %5427 = vmatprep.subr.bf16.mxu1 %v5885_v37  ;;  %v3748_v33 = vld [vmem:[%s7646_s1 + $0xc8] sm:$0xff]  ;;  %v6067_v35 = vld [vmem:[%s7647_s0 + $0x40] sm:$0xff]  ;;  %v5246_v38 = vpack.c.bf16 %v3764_v27, %v3763_v25  ;;  %v3765_v39 = vld [vmem:[%s7646_s1 + $0x3d0] sm:$0xff] }
  0x18   :  { %v6062_v34 = vld [vmem:[%s7647_s0 + $0xc8] sm:$0xff]  ;;  %v3766_v40 = vld [vmem:[%s7646_s1 + $0x3d8] sm:$0xff]  ;;  %v5182_v41 = vpack.c.bf16 %v3748_v33, %v3747_v32  ;;  %v3749_v44 = vld [vmem:[%s7646_s1 + $0xd0] sm:$0xff] }
  0x19   :  { %5157 = vmatpush3.bf16.msra.mxu0 %v5154_v36  ;;  %v6072_v36 = vld [vmem:[%s7647_s0 + $0xd0] sm:$0xff]  ;;  %v3750_v45 = vld [vmem:[%s7646_s1 + $0xd8] sm:$0xff]  ;;  %v5250_v50 = vpack.c.bf16 %v3766_v40, %v3765_v39  ;;  %v3767_v51 = vld [vmem:[%s7646_s1 + $0x3e0] sm:$0xff] }
  0x1a   :  { %5435 = vmatpush3.bf16.msra.mxu1 %v5885_v37  ;;  %5159 = vmatprep.subr.bf16.mxu0 %v5158_v42  ;;  %v6098_v46 = vld [vmem:[%s7647_s0 + $0xd8] sm:$0xff]  ;;  %v6103_v47 = vld [vmem:[%s7647_s0 + $0x50] sm:$0xff]  ;;  %v3768_v52 = vld [vmem:[%s7646_s1 + $0x3e8] sm:$0xff]  ;;  %v5186_v53 = vpack.c.bf16 %v3750_v45, %v3749_v44 }
  0x1b   :  { %5428 = vmatprep.subr.bf16.mxu1 %v5901_v43  ;;  %v3752_v56 = vld [vmem:[%s7646_s1 + $0xe8] sm:$0xff]  ;;  %v6139_v59 = vld [vmem:[%s7647_s0 + $0x60] sm:$0xff]  ;;  %v6144_v60 = vld [vmem:[%s7647_s0 + $0xf0] sm:$0xff] }
  0x1c   :  { %v6134_v57 = vld [vmem:[%s7647_s0 + $0xe8] sm:$0xff]  ;;  %v3769_v1 = vld [vmem:[%s7646_s1 + $0x3f0] sm:$0xff]  ;;  %v3770_v2 = vld [vmem:[%s7646_s1 + $0x3f8] sm:$0xff] }
  0x1d   :  { %5161 = vmatpush3.bf16.msra.mxu0 %v5158_v42  ;;  %v6086_v42 = vld [vmem:[%s7647_s0 + $0x48] sm:$0xff]  ;;  %v3753_v6 = vld [vmem:[%s7646_s1 + $0xf0] sm:$0xff]  ;;  %v6170_v13 = vld [vmem:[%s7647_s0 + $0xf8] sm:$0xff]  ;;  %v5258_v18 = vpack.c.bf16 %v3770_v2, %v3769_v1 }
  0x1e   :  { %5436 = vmatpush3.bf16.msra.mxu1 %v5901_v43  ;;  %5163 = vmatprep.subr.bf16.mxu0 %v5162_v48  ;;  %v6158_v5 = vld [vmem:[%s7647_s0 + $0x68] sm:$0xff]  ;;  %7654 = vst [vmem:[#allocation6_spill] sm:$0xff] %v6170_v13  ;;  %v6175_v14 = vld [vmem:[%s7647_s0 + $0x70] sm:$0xff]  ;;  %v3671_v19 = vld [vmem:[%s7646_s1 + $0x300] sm:$0xff] }
  0x1f   :  { %5429 = vmatprep.subr.bf16.mxu1 %v5917_v49  ;;  %v6194_v27 = vld [vmem:[%s7647_s0 + $0x78] sm:$0xff]  ;;  %v6205_v32 = vld [vmem:[%s7647_s0 + $0x80] sm:$0xff]  ;;  %v6210_v33 = vld [vmem:[%s7647_s0 + $0x110] sm:$0xff] }
  0x20   :  { %7656 = vst [vmem:[#allocation8_spill] sm:$0xff] %v6210_v33  ;;  %v6218_v39 = vld [vmem:[%s7647_s0 + $0x88] sm:$0xff]  ;;  %v6224_v40 = vld [vmem:[%s7647_s0 + $0x118] sm:$0xff]  ;;  %v3673_v44 = vld [vmem:[%s7646_s1 + $0x310] sm:$0xff] }
  0x21   :  { %5165 = vmatpush3.bf16.msra.mxu0 %v5162_v48  ;;  %v6108_v48 = vld [vmem:[%s7647_s0 + $0xe0] sm:$0xff]  ;;  %v3674_v45 = vld [vmem:[%s7646_s1 + $0x318] sm:$0xff]  ;;  %v3677_v2 = vld [vmem:[%s7646_s1 + $0x330] sm:$0xff] }
  0x22   :  { %5437 = vmatpush3.bf16.msra.mxu1 %v5917_v49  ;;  %5167 = vmatprep.subr.bf16.mxu0 %v5166_v54 }
  0x23   :  { %5231 = vmatprep.subr.bf16.mxu1 %v5230_v55 }
  0x24   :  { %4393 = vmatmul.mubr.f32.vlgmr.msra.gmra.mrb[0].mxu0 %v5942_v58 }
  0x25   :  { %4592 = vmatmul.mubr.f32.vlgmr.msra.gmra.mrb[0].mxu1 %v5954_v61  ;;  %4395 = vmatprep.mubr.f32.mxu0 %v5959_v62 }
  0x26   :  { %5233 = vmatpush3.bf16.msra.mxu1 %v5230_v55  ;;  %4594 = vmatprep.mubr.f32.mxu1 %v5964_v63  ;;  %v3751_v55 = vld [vmem:[%s7646_s1 + $0xe0] sm:$0xff] }
  0x27   :  { %5235 = vmatprep.subr.bf16.mxu1 %v5234_v0  ;;  %5169 = vmatpush3.bf16.msra.mxu0 %v5166_v54  ;;  %v6122_v54 = vld [vmem:[%s7647_s0 + $0x58] sm:$0xff] }
  0x28   :  { %4396 = vmatmul.mubr.f32.gmra.mrb[2].mxu0 %v5978_v4  ;;  %5171 = vmatprep.subr.bf16.mxu0 %v5170_v3 }
  0x29   :  { %4595 = vmatmul.mubr.f32.gmra.mrb[2].mxu1 %v5990_v8  ;;  %4398 = vmatprep.mubr.f32.mxu0 %v5995_v9 }
  0x2a   :  { %5237 = vmatpush3.bf16.msra.mxu1 %v5234_v0  ;;  %4597 = vmatprep.mubr.f32.mxu1 %v6000_v10  ;;  %v5254_v0 = vpack.c.bf16 %v3768_v52, %v3767_v51  ;;  %v6252_v51 = vld [vmem:[%s7647_s0 + $0x130] sm:$0xff]  ;;  %v5266_v52 = vpack.c.bf16 %v3674_v45, %v3673_v44 }
  0x2b   :  { %5239 = vmatprep.subr.bf16.mxu1 %v5238_v11  ;;  %5173 = vmatpush3.bf16.msra.mxu0 %v5170_v3  ;;  %v5190_v3 = vpack.c.bf16 %v3752_v56, %v3751_v55  ;;  %v3676_v55 = vld [vmem:[%s7646_s1 + $0x328] sm:$0xff]  ;;  %v6267_v56 = vld [vmem:[%s7647_s0 + $0x138] sm:$0xff]  ;;  %v3681_v45 = vld [vmem:[%s7646_s1 + $0x350] sm:$0xff] }
  0x2c   :  { %4399 = vmatmul.mubr.f32.gmra.mrb[4].mxu0 %v6014_v16  ;;  %5175 = vmatprep.subr.bf16.mxu0 %v5174_v15 }
  0x2d   :  { %4598 = vmatmul.mubr.f32.gmra.mrb[4].mxu1 %v6026_v20  ;;  %4401 = vmatprep.mubr.f32.mxu0 %v6031_v21 }
  0x2e   :  { %4600 = vmatprep.mubr.f32.mxu1 %v6036_v22  ;;  %5241 = vmatpush3.bf16.msra.mxu1 %v5238_v11  ;;  %v3754_v11 = vld [vmem:[%s7646_s1 + $0xf8] sm:$0xff] }
  0x2f   :  { %5243 = vmatprep.subr.bf16.mxu1 %v5242_v24  ;;  %5177 = vmatpush3.bf16.msra.mxu0 %v5174_v15  ;;  %v6180_v15 = vld [vmem:[%s7647_s0 + $0x100] sm:$0xff]  ;;  %v5194_v25 = vpack.c.bf16 %v3754_v11, %v3753_v6  ;;  %v6287_v6 = vld [vmem:[%s7647_s0 + $0x148] sm:$0xff]  ;;  %v6292_v11 = vld [vmem:[%s7647_s0 + $0x150] sm:$0xff] }
  0x30   :  { %4402 = vmatmul.mubr.f32.gmra.mrb[6].mxu0 %v6050_v30  ;;  %5179 = vmatprep.subr.bf16.mxu0 %v5178_v28  ;;  %7655 = vst [vmem:[#allocation7_spill] sm:$0xff] %v6180_v15 }
  0x31   :  { %4601 = vmatmul.mubr.f32.gmra.mrb[6].mxu1 %v6062_v34  ;;  %4404 = vmatprep.mubr.f32.mxu0 %v6067_v35 }
  0x32   :  { %4603 = vmatprep.mubr.f32.mxu1 %v6072_v36  ;;  %5245 = vmatpush3.bf16.msra.mxu1 %v5242_v24  ;;  %v3672_v24 = vld [vmem:[%s7646_s1 + $0x308] sm:$0xff] }
  0x33   :  { %5247 = vmatprep.subr.bf16.mxu1 %v5246_v38  ;;  %5181 = vmatpush3.bf16.msra.mxu0 %v5178_v28  ;;  %v6200_v28 = vld [vmem:[%s7647_s0 + $0x108] sm:$0xff] }
  0x34   :  { %4405 = vmatmul.mubr.f32.gmra.mrb[8].mxu0 %v6086_v42  ;;  %5183 = vmatprep.subr.bf16.mxu0 %v5182_v41 }
  0x35   :  { %4604 = vmatmul.mubr.f32.gmra.mrb[8].mxu1 %v6098_v46  ;;  %4407 = vmatprep.mubr.f32.mxu0 %v6103_v47 }
  0x36   :  { %4606 = vmatprep.mubr.f32.mxu1 %v6108_v48  ;;  %5249 = vmatpush3.bf16.msra.mxu1 %v5246_v38  ;;  %v5262_v38 = vpack.c.bf16 %v3672_v24, %v3671_v19  ;;  %v3679_v19 = vld [vmem:[%s7646_s1 + $0x340] sm:$0xff]  ;;  %v3680_v24 = vld [vmem:[%s7646_s1 + $0x348] sm:$0xff] }
  0x37   :  { %5251 = vmatprep.subr.bf16.mxu1 %v5250_v50  ;;  %5185 = vmatpush3.bf16.msra.mxu0 %v5182_v41  ;;  %v6229_v41 = vld [vmem:[%s7647_s0 + $0x120] sm:$0xff]  ;;  %v5278_v44 = vpack.c.bf16 %v3680_v24, %v3679_v19 }
  0x38   :  { %4408 = vmatmul.mubr.f32.gmra.mrb[10].mxu0 %v6122_v54  ;;  %5187 = vmatprep.subr.bf16.mxu0 %v5186_v53  ;;  %v6352_v19 = vld [vmem:[%s7647_s0 + $0x180] sm:$0xff] }
  0x39   :  { %4607 = vmatmul.mubr.f32.gmra.mrb[10].mxu1 %v6134_v57  ;;  %4410 = vmatprep.mubr.f32.mxu0 %v6139_v59 }
  0x3a   :  { %4609 = vmatprep.mubr.f32.mxu1 %v6144_v60  ;;  %5253 = vmatpush3.bf16.msra.mxu1 %v5250_v50  ;;  %v6247_v50 = vld [vmem:[%s7647_s0 + $0x128] sm:$0xff] }
  0x3b   :  { %5255 = vmatprep.subr.bf16.mxu1 %v5254_v0  ;;  %5189 = vmatpush3.bf16.msra.mxu0 %v5186_v53  ;;  %v3675_v53 = vld [vmem:[%s7646_s1 + $0x320] sm:$0xff] }
  0x3c   :  { %4411 = vmatmul.mubr.f32.gmra.mrb[12].mxu0 %v6158_v5  ;;  %5191 = vmatprep.subr.bf16.mxu0 %v5190_v3  ;;  %v5270_v1 = vpack.c.bf16 %v3676_v55, %v3675_v53  ;;  %v6327_v53 = vld [vmem:[%s7647_s0 + $0x168] sm:$0xff]  ;;  %v6332_v55 = vld [vmem:[%s7647_s0 + $0x170] sm:$0xff] }
  0x3d   :  { %4610 = vmatmul.mubr.f32.gmra.mrb[12].mxu1 %v6170_v13  ;;  %4413 = vmatprep.mubr.f32.mxu0 %v6175_v14 }
  0x3e   :  { %4612 = vmatprep.mubr.f32.mxu1 %v6180_v15  ;;  %5257 = vmatpush3.bf16.msra.mxu1 %v5254_v0  ;;  %v6272_v0 = vld [vmem:[%s7647_s0 + $0x140] sm:$0xff] }
  0x3f   :  { %5259 = vmatprep.subr.bf16.mxu1 %v5258_v18  ;;  %5193 = vmatpush3.bf16.msra.mxu0 %v5190_v3  ;;  %v3678_v3 = vld [vmem:[%s7646_s1 + $0x338] sm:$0xff] }
  0x40   :  { %4414 = vmatmul.mubr.f32.gmra.mrb[14].mxu0 %v6194_v27  ;;  %5195 = vmatprep.subr.bf16.mxu0 %v5194_v25 }
  0x41   :  { %4613 = vmatmul.mubr.f32.gmra.mrb[14].mxu1 %v6200_v28  ;;  %4416 = vmatprep.mubr.f32.mxu0 %v6205_v32 }
  0x42   :  { %4615 = vmatprep.mubr.f32.mxu1 %v6210_v33  ;;  %5261 = vmatpush3.bf16.msra.mxu1 %v5258_v18  ;;  %v5274_v18 = vpack.c.bf16 %v3678_v3, %v3677_v2  ;;  %v3683_v2 = vld [vmem:[%s7646_s1 + $0x360] sm:$0xff]  ;;  %v3684_v3 = vld [vmem:[%s7646_s1 + $0x368] sm:$0xff] }
  0x43   :  { %5263 = vmatprep.subr.bf16.mxu1 %v5262_v38  ;;  %5197 = vmatpush3.bf16.msra.mxu0 %v5194_v25  ;;  %v6307_v25 = vld [vmem:[%s7647_s0 + $0x158] sm:$0xff]  ;;  %v5286_v24 = vpack.c.bf16 %v3684_v3, %v3683_v2  ;;  %v6372_v2 = vld [vmem:[%s7647_s0 + $0x190] sm:$0xff] }
  0x44   :  { %4417 = vmatmul.mubr.f32.gmra.mrb[16].mxu0 %v6218_v39  ;;  %5199 = vmatprep.subr.bf16.mxu0 %v5800_v7 }
  0x45   :  { %4616 = vmatmul.mubr.f32.gmra.mrb[16].mxu1 %v6224_v40  ;;  %4419 = vmatprep.mubr.f32.mxu0 %v5864_v29 }
  0x46   :  { %4650 = vmatprep.mubr.f32.mxu1 %v6229_v41 }
  0x48   :  { %4420 = vmatmul.mubr.f32.gmra.mrb[18].mxu0 %v5954_v61 }
  0x49   :  { %4422 = vmatprep.mubr.f32.mxu0 %v5964_v63 }
  0x4c   :  { %4423 = vmatmul.mubr.f32.gmra.mrb[20].mxu0 %v5990_v8 }
  0x4d   :  { %4651 = vmatmul.mubr.f32.vlgmr.msra.gmra.mrb[16].mxu1 %v6247_v50  ;;  %4425 = vmatprep.mubr.f32.mxu0 %v6000_v10 }
  0x4e   :  { %5265 = vmatpush3.bf16.msra.mxu1 %v5262_v38  ;;  %4653 = vmatprep.mubr.f32.mxu1 %v6252_v51  ;;  %v6312_v38 = vld [vmem:[%s7647_s0 + $0x160] sm:$0xff] }
  0x4f   :  { %5267 = vmatprep.subr.bf16.mxu1 %v5266_v52 }
  0x50   :  { %4426 = vmatmul.mubr.f32.gmra.mrb[22].mxu0 %v6026_v20 }
  0x51   :  { %4654 = vmatmul.mubr.f32.gmra.mrb[18].mxu1 %v6267_v56  ;;  %4428 = vmatprep.mubr.f32.mxu0 %v6036_v22 }
  0x52   :  { %4656 = vmatprep.mubr.f32.mxu1 %v6272_v0  ;;  %5269 = vmatpush3.bf16.msra.mxu1 %v5266_v52  ;;  %v3682_v52 = vld [vmem:[%s7646_s1 + $0x358] sm:$0xff] }
  0x53   :  { %5271 = vmatprep.subr.bf16.mxu1 %v5270_v1 }
  0x54   :  { %4429 = vmatmul.mubr.f32.gmra.mrb[24].mxu0 %v6062_v34 }
  0x55   :  { %4657 = vmatmul.mubr.f32.gmra.mrb[20].mxu1 %v6287_v6  ;;  %4431 = vmatprep.mubr.f32.mxu0 %v6072_v36 }
  0x56   :  { %4659 = vmatprep.mubr.f32.mxu1 %v6292_v11  ;;  %5273 = vmatpush3.bf16.msra.mxu1 %v5270_v1  ;;  %v5282_v1 = vpack.c.bf16 %v3682_v52, %v3681_v45  ;;  %v3685_v45 = vld [vmem:[%s7646_s1 + $0x370] sm:$0xff]  ;;  %v3686_v52 = vld [vmem:[%s7646_s1 + $0x378] sm:$0xff] }
  0x57   :  { %5275 = vmatprep.subr.bf16.mxu1 %v5274_v18  ;;  %v5290_v3 = vpack.c.bf16 %v3686_v52, %v3685_v45  ;;  %v6392_v45 = vld [vmem:[%s7647_s0 + $0x1a0] sm:$0xff] }
  0x58   :  { %4432 = vmatmul.mubr.f32.gmra.mrb[26].mxu0 %v6098_v46 }
  0x59   :  { %4660 = vmatmul.mubr.f32.gmra.mrb[22].mxu1 %v6307_v25  ;;  %4434 = vmatprep.mubr.f32.mxu0 %v6108_v48 }
  0x5a   :  { %4662 = vmatprep.mubr.f32.mxu1 %v6312_v38  ;;  %5277 = vmatpush3.bf16.msra.mxu1 %v5274_v18  ;;  %v6347_v18 = vld [vmem:[%s7647_s0 + $0x178] sm:$0xff] }
  0x5b   :  { %5279 = vmatprep.subr.bf16.mxu1 %v5278_v44 }
  0x5c   :  { %4435 = vmatmul.mubr.f32.gmra.mrb[28].mxu0 %v6134_v57 }
  0x5d   :  { %4663 = vmatmul.mubr.f32.gmra.mrb[24].mxu1 %v6327_v53  ;;  %4437 = vmatprep.mubr.f32.mxu0 %v6144_v60 }
  0x5e   :  { %4665 = vmatprep.mubr.f32.mxu1 %v6332_v55  ;;  %5281 = vmatpush3.bf16.msra.mxu1 %v5278_v44  ;;  %v6367_v44 = vld [vmem:[%s7647_s0 + $0x188] sm:$0xff] }
  0x5f   :  { %5283 = vmatprep.subr.bf16.mxu1 %v5282_v1 }
  0x60   :  { %4438 = vmatmul.mubr.f32.gmra.mrb[30].mxu0 %v6170_v13  ;;  %v3808_v13 = vld [vmem:[%s7646_s1 + $0x188] sm:$0xff] }
  0x61   :  { %4666 = vmatmul.mubr.f32.gmra.mrb[26].mxu1 %v6347_v18  ;;  %4440 = vmatprep.mubr.f32.mxu0 %v6180_v15  ;;  %v3807_v15 = vld [vmem:[%s7646_s1 + $0x180] sm:$0xff] }
  0x62   :  { %4668 = vmatprep.mubr.f32.mxu1 %v6352_v19  ;;  %5285 = vmatpush3.bf16.msra.mxu1 %v5282_v1  ;;  %v6387_v1 = vld [vmem:[%s7647_s0 + $0x198] sm:$0xff]  ;;  %v6394_v52 = vpack.c.bf16 %v3808_v13, %v3807_v15  ;;  %v6424_v15 = vld [vmem:[%s7647_s0 + $0x1c0] sm:$0xff] }
  0x63   :  { %5287 = vmatprep.subr.bf16.mxu1 %v5286_v24  ;;  %v6418_v13 = vld [vmem:[%s7647_s0 + $0x1b8] sm:$0xff] }
  0x64   :  { %4441 = vmatmul.mubr.f32.gmra.mrb[32].mxu0 %v6200_v28 }
  0x65   :  { %4669 = vmatmul.mubr.f32.gmra.mrb[28].mxu1 %v6367_v44  ;;  %4443 = vmatprep.mubr.f32.mxu0 %v6210_v33  ;;  %v6408_v33 = vld [vmem:[%s7647_s0 + $0x1b0] sm:$0xff] }
  0x66   :  { %4671 = vmatprep.mubr.f32.mxu1 %v6372_v2  ;;  %5289 = vmatpush3.bf16.msra.mxu1 %v5286_v24  ;;  %v6403_v24 = vld [vmem:[%s7647_s0 + $0x1a8] sm:$0xff] }
  0x67   :  { %5291 = vmatprep.subr.bf16.mxu1 %v5290_v3 }
  0x68   :  { %4444 = vmatmul.mubr.f32.gmra.mrb[34].mxu0 %v6224_v40 }
  0x69   :  { %4672 = vmatmul.mubr.f32.gmra.mrb[30].mxu1 %v6387_v1  ;;  %4478 = vmatprep.mubr.f32.mxu0 %v6229_v41  ;;  %v6434_v41 = vld [vmem:[%s7647_s0 + $0x1c8] sm:$0xff] }
  0x6a   :  { %4674 = vmatprep.mubr.f32.mxu1 %v6392_v45  ;;  %5293 = vmatpush3.bf16.msra.mxu1 %v5290_v3  ;;  %v3813_v3 = vld [vmem:[%s7646_s1 + $0x1b0] sm:$0xff] }
  0x6b   :  { %5295 = vmatprep.subr.bf16.mxu1 %v6394_v52 }
  0x6c   :  { %4479 = vmatmul.mubr.f32.vlgmr.msra.gmra.mrb[36].mxu0 %v6247_v50  ;;  %v6450_v50 = vld [vmem:[%s7647_s0 + $0x1d8] sm:$0xff] }
  0x6d   :  { %4675 = vmatmul.mubr.f32.gmra.mrb[32].mxu1 %v6403_v24  ;;  %4481 = vmatprep.mubr.f32.mxu0 %v6252_v51  ;;  %v6466_v51 = vld [vmem:[%s7647_s0 + $0x1e8] sm:$0xff] }
  0x6e   :  { %4677 = vmatprep.mubr.f32.mxu1 %v6408_v33  ;;  %5201 = vmatpush3.bf16.msra.mxu0 %v5800_v7  ;;  %v6440_v7 = vld [vmem:[%s7647_s0 + $0x1d0] sm:$0xff] }
  0x6f   :  { %5203 = vmatprep.subr.bf16.mxu0 %v5811_v12 }
  0x70   :  { %4482 = vmatmul.mubr.f32.gmra.mrb[38].mxu0 %v6267_v56  ;;  %v6482_v56 = vld [vmem:[%s7647_s0 + $0x1f8] sm:$0xff] }
  0x71   :  { %4678 = vmatmul.mubr.f32.gmra.mrb[34].mxu1 %v6418_v13  ;;  %4484 = vmatprep.mubr.f32.mxu0 %v6272_v0  ;;  %v6498_v0 = vld [vmem:[%s7647_s0 + $0x208] sm:$0xff] }
  0x72   :  { %4680 = vmatprep.mubr.f32.mxu1 %v6424_v15  ;;  %5205 = vmatpush3.bf16.msra.mxu0 %v5811_v12  ;;  %v6456_v12 = vld [vmem:[%s7647_s0 + $0x1e0] sm:$0xff] }
  0x73   :  { %5207 = vmatprep.subr.bf16.mxu0 %v5825_v17 }
  0x74   :  { %4485 = vmatmul.mubr.f32.gmra.mrb[40].mxu0 %v6287_v6  ;;  %v3823_v6 = vld [vmem:[%s7646_s1 + $0x280] sm:$0xff] }
  0x75   :  { %4681 = vmatmul.mubr.f32.gmra.mrb[0].mxu1 %v6434_v41  ;;  %4487 = vmatprep.mubr.f32.mxu0 %v6292_v11  ;;  %v3824_v11 = vld [vmem:[%s7646_s1 + $0x288] sm:$0xff] }
  0x76   :  { %4683 = vmatprep.mubr.f32.mxu1 %v6440_v7  ;;  %5209 = vmatpush3.bf16.msra.mxu0 %v5825_v17  ;;  %v6472_v17 = vld [vmem:[%s7647_s0 + $0x1f0] sm:$0xff] }
  0x77   :  { %5211 = vmatprep.subr.bf16.mxu0 %v5841_v23 }
  0x78   :  { %4488 = vmatmul.mubr.f32.gmra.mrb[42].mxu0 %v6307_v25  ;;  %v6526_v25 = vld [vmem:[%s7647_s0 + $0x220] sm:$0xff] }
  0x79   :  { %4684 = vmatmul.mubr.f32.gmra.mrb[2].mxu1 %v6450_v50  ;;  %4490 = vmatprep.mubr.f32.mxu0 %v6312_v38  ;;  %v6529_v38 = vpack.c.bf16 %v3824_v11, %v3823_v6  ;;  %v3825_v11 = vld [vmem:[%s7646_s1 + $0x290] sm:$0xff] }
  0x7a   :  { %4686 = vmatprep.mubr.f32.mxu1 %v6456_v12  ;;  %5213 = vmatpush3.bf16.msra.mxu0 %v5841_v23  ;;  %v6488_v23 = vld [vmem:[%s7647_s0 + $0x200] sm:$0xff] }
  0x7b   :  { %5215 = vmatprep.subr.bf16.mxu0 %v5869_v31 }
  0x7c   :  { %4491 = vmatmul.mubr.f32.gmra.mrb[44].mxu0 %v6327_v53  ;;  %v6544_v53 = vld [vmem:[%s7647_s0 + $0x230] sm:$0xff] }
  0x7d   :  { %4687 = vmatmul.mubr.f32.gmra.mrb[4].mxu1 %v6466_v51  ;;  %4493 = vmatprep.mubr.f32.mxu0 %v6332_v55  ;;  %v6554_v55 = vld [vmem:[%s7647_s0 + $0x238] sm:$0xff] }
  0x7e   :  { %4689 = vmatprep.mubr.f32.mxu1 %v6472_v17  ;;  %5217 = vmatpush3.bf16.msra.mxu0 %v5869_v31  ;;  %v6504_v31 = vld [vmem:[%s7647_s0 + $0x210] sm:$0xff] }
  0x7f   :  { %5219 = vmatprep.subr.bf16.mxu0 %v5885_v37 }
  0x80   :  { %4494 = vmatmul.mubr.f32.gmra.mrb[46].mxu0 %v6347_v18  ;;  %v3810_v18 = vld [vmem:[%s7646_s1 + $0x198] sm:$0xff] }
  0x81   :  { %4690 = vmatmul.mubr.f32.gmra.mrb[6].mxu1 %v6482_v56  ;;  %4496 = vmatprep.mubr.f32.mxu0 %v6352_v19  ;;  %v3811_v19 = vld [vmem:[%s7646_s1 + $0x1a0] sm:$0xff] }
  0x82   :  { %4692 = vmatprep.mubr.f32.mxu1 %v6488_v23  ;;  %5221 = vmatpush3.bf16.msra.mxu0 %v5885_v37  ;;  %v6520_v37 = vld [vmem:[%s7647_s0 + $0x218] sm:$0xff] }
  0x83   :  { %5223 = vmatprep.subr.bf16.mxu0 %v5901_v43 }
  0x84   :  { %4497 = vmatmul.mubr.f32.gmra.mrb[48].mxu0 %v6367_v44  ;;  %v3812_v44 = vld [vmem:[%s7646_s1 + $0x1a8] sm:$0xff] }
  0x85   :  { %4693 = vmatmul.mubr.f32.gmra.mrb[8].mxu1 %v6498_v0  ;;  %4499 = vmatprep.mubr.f32.mxu0 %v6372_v2  ;;  %v5302_v2 = vpack.c.bf16 %v3812_v44, %v3811_v19  ;;  %v3776_v19 = vld [vmem:[%s7647_s0 + $0x268] sm:$0xff]  ;;  %v3661_v44 = vld [vmem:[%s7646_s1 + $0x130] sm:$0xff] }
  0x86   :  { %4695 = vmatprep.mubr.f32.mxu1 %v6504_v31  ;;  %5225 = vmatpush3.bf16.msra.mxu0 %v5901_v43  ;;  %v6538_v43 = vld [vmem:[%s7647_s0 + $0x228] sm:$0xff] }
  0x87   :  { %5227 = vmatprep.subr.bf16.mxu0 %v5917_v49 }
  0x88   :  { %4500 = vmatmul.mubr.f32.gmra.mrb[50].mxu0 %v6387_v1  ;;  %v3814_v1 = vld [vmem:[%s7646_s1 + $0x1b8] sm:$0xff] }
  0x89   :  { %4696 = vmatmul.mubr.f32.gmra.mrb[10].mxu1 %v6520_v37  ;;  %4502 = vmatprep.mubr.f32.mxu0 %v6392_v45  ;;  %v5306_v45 = vpack.c.bf16 %v3814_v1, %v3813_v3  ;;  %v3777_v3 = vld [vmem:[%s7647_s0 + $0x270] sm:$0xff] }
  0x8a   :  { %4698 = vmatprep.mubr.f32.mxu1 %v6526_v25  ;;  %5229 = vmatpush3.bf16.msra.mxu0 %v5917_v49  ;;  %v3809_v49 = vld [vmem:[%s7646_s1 + $0x190] sm:$0xff] }
  0x8b   :  { %5327 = vmatprep.subr.bf16.mxu0 %v6529_v38 }
  0x8c   :  { %4503 = vmatmul.mubr.f32.gmra.mrb[52].mxu0 %v6403_v24  ;;  %v3816_v24 = vld [vmem:[%s7646_s1 + $0x1c8] sm:$0xff] }
  0x8d   :  { %4699 = vmatmul.mubr.f32.gmra.mrb[12].mxu1 %v6538_v43  ;;  %4505 = vmatprep.mubr.f32.mxu0 %v6408_v33  ;;  %v5298_v33 = vpack.c.bf16 %v3810_v18, %v3809_v49  ;;  %v3879_v49 = vld [vmem:[%s7646_s1 + $0x220] sm:$0xff]  ;;  %v3880_v18 = vld [vmem:[%s7646_s1 + $0x228] sm:$0xff] }
  0x8e   :  { %4701 = vmatprep.mubr.f32.mxu1 %v6544_v53  ;;  %v5398_v1 = vpack.c.bf16 %v3880_v18, %v3879_v49 }
  0x90   :  { %4506 = vmatmul.mubr.f32.gmra.mrb[54].mxu0 %v6418_v13 }
  0x91   :  { %4702 = vmatmul.mubr.f32.gmra.mrb[14].mxu1 %v6554_v55  ;;  %4508 = vmatprep.mubr.f32.mxu0 %v6424_v15  ;;  %v3817_v15 = vld [vmem:[%s7646_s1 + $0x1d0] sm:$0xff] }
  0x92   :  { %4736 = vmatprep.mubr.f32.mxu1 %v5852_v26 }
  0x94   :  { %4509 = vmatmul.mubr.f32.gmra.mrb[56].mxu0 %v6434_v41  ;;  %v3818_v41 = vld [vmem:[%s7646_s1 + $0x1d8] sm:$0xff] }
  0x95   :  { %4737 = vmatmul.mubr.f32.vlgmr.msra.gmra.mrb[16].mxu1 %v5942_v58  ;;  %4511 = vmatprep.mubr.f32.mxu0 %v6440_v7  ;;  %v5314_v7 = vpack.c.bf16 %v3818_v41, %v3817_v15  ;;  %v3663_v15 = vld [vmem:[%s7646_s1 + $0x140] sm:$0xff]  ;;  %v3664_v41 = vld [vmem:[%s7646_s1 + $0x148] sm:$0xff] }
  0x96   :  { %5297 = vmatpush3.bf16.msra.mxu1 %v6394_v52  ;;  %4739 = vmatprep.mubr.f32.mxu1 %v5959_v62  ;;  %v3815_v52 = vld [vmem:[%s7646_s1 + $0x1c0] sm:$0xff] }
  0x97   :  { %5299 = vmatprep.subr.bf16.mxu1 %v5298_v33  ;;  %v5310_v13 = vpack.c.bf16 %v3816_v24, %v3815_v52  ;;  %v3882_v52 = vld [vmem:[%s7646_s1 + $0x238] sm:$0xff] }
  0x98   :  { %4512 = vmatmul.mubr.f32.gmra.mrb[58].mxu0 %v6450_v50  ;;  %v3819_v50 = vld [vmem:[%s7646_s1 + $0x1e0] sm:$0xff] }
  0x99   :  { %4740 = vmatmul.mubr.f32.gmra.mrb[18].mxu1 %v5978_v4  ;;  %4514 = vmatprep.mubr.f32.mxu0 %v6456_v12  ;;  %v3820_v12 = vld [vmem:[%s7646_s1 + $0x1e8] sm:$0xff] }
  0x9a   :  { %4742 = vmatprep.mubr.f32.mxu1 %v5995_v9  ;;  %5301 = vmatpush3.bf16.msra.mxu1 %v5298_v33 }
  0x9b   :  { %5303 = vmatprep.subr.bf16.mxu1 %v5302_v2 }
  0x9c   :  { %4515 = vmatmul.mubr.f32.gmra.mrb[60].mxu0 %v6466_v51  ;;  %v5318_v51 = vpack.c.bf16 %v3820_v12, %v3819_v50  ;;  %v3883_v12 = vld [vmem:[%s7646_s1 + $0x240] sm:$0xff] }
  0x9d   :  { %4743 = vmatmul.mubr.f32.gmra.mrb[20].mxu1 %v6014_v16  ;;  %4517 = vmatprep.mubr.f32.mxu0 %v6472_v17  ;;  %v3821_v17 = vld [vmem:[%s7646_s1 + $0x1f0] sm:$0xff] }
  0x9e   :  { %4745 = vmatprep.mubr.f32.mxu1 %v6031_v21  ;;  %5305 = vmatpush3.bf16.msra.mxu1 %v5302_v2  ;;  %v3662_v2 = vld [vmem:[%s7646_s1 + $0x138] sm:$0xff] }
  0x9f   :  { %5307 = vmatprep.subr.bf16.mxu1 %v5306_v45  ;;  %v5370_v24 = vpack.c.bf16 %v3662_v2, %v3661_v44  ;;  %v3794_v2 = vld [vmem:[%s7647_s0 + $0x2f8] sm:$0xff] }
  0xa0   :  { %4518 = vmatmul.mubr.f32.gmra.mrb[62].mxu0 %v6482_v56  ;;  %v3822_v56 = vld [vmem:[%s7646_s1 + $0x1f8] sm:$0xff] }
  0xa1   :  { %4746 = vmatmul.mubr.f32.gmra.mrb[22].mxu1 %v6050_v30  ;;  %4520 = vmatprep.mubr.f32.mxu0 %v6488_v23  ;;  %v5322_v23 = vpack.c.bf16 %v3822_v56, %v3821_v17  ;;  %v5374_v17 = vpack.c.bf16 %v3664_v41, %v3663_v15  ;;  %v3780_v56 = vld [vmem:[%s7647_s0 + $0x288] sm:$0xff] }
  0xa2   :  { %4748 = vmatprep.mubr.f32.mxu1 %v6067_v35  ;;  %5309 = vmatpush3.bf16.msra.mxu1 %v5306_v45  ;;  %v3881_v45 = vld [vmem:[%s7646_s1 + $0x230] sm:$0xff]  ;;  %v3796_v41 = vld [vmem:[%s7647_s0 + $0x308] sm:$0xff] }
  0xa3   :  { %5311 = vmatprep.subr.bf16.mxu1 %v5310_v13  ;;  %v5402_v50 = vpack.c.bf16 %v3882_v52, %v3881_v45 }
  0xa4   :  { %4521 = vmatmul.mubr.f32.gmra.mrb[64].mxu0 %v6498_v0  ;;  %v3875_v0 = vld [vmem:[%s7646_s1 + $0x200] sm:$0xff] }
  0xa5   :  { %4749 = vmatmul.mubr.f32.gmra.mrb[24].mxu1 %v6086_v42  ;;  %4523 = vmatprep.mubr.f32.mxu0 %v6504_v31  ;;  %v3876_v31 = vld [vmem:[%s7646_s1 + $0x208] sm:$0xff] }
  0xa6   :  { %4751 = vmatprep.mubr.f32.mxu1 %v6103_v47  ;;  %5313 = vmatpush3.bf16.msra.mxu1 %v5310_v13  ;;  %v6637_v6 = vpack.c.bf16 %v3876_v31, %v3875_v0  ;;  %v3778_v13 = vld [vmem:[%s7647_s0 + $0x278] sm:$0xff]  ;;  %v3781_v31 = vld [vmem:[%s7647_s0 + $0x290] sm:$0xff] }
  0xa7   :  { %5315 = vmatprep.subr.bf16.mxu1 %v5314_v7  ;;  %v3666_v0 = vld [vmem:[%s7646_s1 + $0x158] sm:$0xff] }
  0xa8   :  { %4524 = vmatmul.mubr.f32.gmra.mrb[66].mxu0 %v6520_v37  ;;  %v3826_v37 = vld [vmem:[%s7646_s1 + $0x298] sm:$0xff] }
  0xa9   :  { %4752 = vmatmul.mubr.f32.gmra.mrb[26].mxu1 %v6122_v54  ;;  %4526 = vmatprep.mubr.f32.mxu0 %v6526_v25  ;;  %v5330_v25 = vpack.c.bf16 %v3826_v37, %v3825_v11  ;;  %v3885_v11 = vld [vmem:[%s7646_s1 + $0x250] sm:$0xff]  ;;  %v3886_v37 = vld [vmem:[%s7646_s1 + $0x258] sm:$0xff] }
  0xaa   :  { %4754 = vmatprep.mubr.f32.mxu1 %v6139_v59  ;;  %5317 = vmatpush3.bf16.msra.mxu1 %v5314_v7  ;;  %v3779_v7 = vld [vmem:[%s7647_s0 + $0x280] sm:$0xff] }
  0xab   :  { %5319 = vmatprep.subr.bf16.mxu1 %v5318_v51 }
  0xac   :  { %4527 = vmatmul.mubr.f32.gmra.mrb[68].mxu0 %v6538_v43  ;;  %v3827_v43 = vld [vmem:[%s7646_s1 + $0x2a0] sm:$0xff] }
  0xad   :  { %4755 = vmatmul.mubr.f32.gmra.mrb[28].mxu1 %v6158_v5  ;;  %4529 = vmatprep.mubr.f32.mxu0 %v6544_v53  ;;  %v3828_v53 = vld [vmem:[%s7646_s1 + $0x2a8] sm:$0xff] }
  0xae   :  { %4757 = vmatprep.mubr.f32.mxu1 %v6175_v14  ;;  %5321 = vmatpush3.bf16.msra.mxu1 %v5318_v51  ;;  %v3884_v51 = vld [vmem:[%s7646_s1 + $0x248] sm:$0xff] }
  0xaf   :  { %5323 = vmatprep.subr.bf16.mxu1 %v5322_v23 }
  0xb0   :  { %4530 = vmatmul.mubr.f32.gmra.mrb[70].mxu0 %v6554_v55  ;;  %v3830_v55 = vld [vmem:[%s7646_s1 + $0x2b8] sm:$0xff] }
  0xb1   :  { %4758 = vmatmul.mubr.f32.gmra.mrb[30].mxu1 %v6194_v27  ;;  %4564 = vmatprep.mubr.f32.mxu0 %v5852_v26  ;;  %v5334_v26 = vpack.c.bf16 %v3828_v53, %v3827_v43  ;;  %v3782_v43 = vld [vmem:[%s7647_s0 + $0x298] sm:$0xff]  ;;  %v3667_v53 = vld [vmem:[%s7646_s1 + $0x160] sm:$0xff] }
  0xb2   :  { %4760 = vmatprep.mubr.f32.mxu1 %v6205_v32  ;;  %5325 = vmatpush3.bf16.msra.mxu1 %v5322_v23  ;;  %v3665_v23 = vld [vmem:[%s7646_s1 + $0x150] sm:$0xff] }
  0xb3   :  { %5391 = vmatprep.subr.bf16.mxu1 %v6637_v6 }
  0xb4   :  { %4565 = vmatmul.mubr.f32.vlgmr.msra.gmra.mrb[36].mxu0 %v5942_v58  ;;  %v3829_v58 = vld [vmem:[%s7646_s1 + $0x2b0] sm:$0xff] }
  0xb5   :  { %4761 = vmatmul.mubr.f32.gmra.mrb[32].mxu1 %v6218_v39  ;;  %4567 = vmatprep.mubr.f32.mxu0 %v5959_v62  ;;  %v3831_v62 = vld [vmem:[%s7646_s1 + $0x2c0] sm:$0xff] }
  0xb6   :  { %4763 = vmatprep.mubr.f32.mxu1 %v5864_v29  ;;  %5329 = vmatpush3.bf16.msra.mxu0 %v6529_v38  ;;  %v5338_v29 = vpack.c.bf16 %v3830_v55, %v3829_v58  ;;  %v3775_v38 = vld [vmem:[%s7647_s0 + $0x260] sm:$0xff]  ;;  %v5410_v55 = vpack.c.bf16 %v3886_v37, %v3885_v11 }
  0xb7   :  { %5331 = vmatprep.subr.bf16.mxu0 %v5330_v25  ;;  %v3783_v58 = vld [vmem:[%s7647_s0 + $0x2a0] sm:$0xff] }
  0xb8   :  { %4568 = vmatmul.mubr.f32.gmra.mrb[38].mxu0 %v5978_v4  ;;  %v3832_v4 = vld [vmem:[%s7646_s1 + $0x2c8] sm:$0xff] }
  0xb9   :  { %4764 = vmatmul.mubr.f32.gmra.mrb[34].mxu1 %v5954_v61  ;;  %4570 = vmatprep.mubr.f32.mxu0 %v5995_v9  ;;  %v5342_v61 = vpack.c.bf16 %v3832_v4, %v3831_v62  ;;  %v3834_v9 = vld [vmem:[%s7646_s1 + $0x2d8] sm:$0xff]  ;;  %v3888_v62 = vld [vmem:[%s7646_s1 + $0x268] sm:$0xff] }
  0xba   :  { %4766 = vmatprep.mubr.f32.mxu1 %v5964_v63  ;;  %5333 = vmatpush3.bf16.msra.mxu0 %v5330_v25  ;;  %v3833_v63 = vld [vmem:[%s7646_s1 + $0x2d0] sm:$0xff]  ;;  %v5378_v25 = vpack.c.bf16 %v3666_v0, %v3665_v23  ;;  %v3798_v0 = vld [vmem:[%s7647_s0 + $0x318] sm:$0xff] }
  0xbb   :  { %5335 = vmatprep.subr.bf16.mxu0 %v5334_v26 }
  0xbc   :  { %4571 = vmatmul.mubr.f32.gmra.mrb[40].mxu0 %v6014_v16  ;;  %v3836_v16 = vld [vmem:[%s7646_s1 + $0x2e8] sm:$0xff] }
  0xbd   :  { %4767 = vmatmul.mubr.f32.gmra.mrb[0].mxu1 %v5990_v8  ;;  %4573 = vmatprep.mubr.f32.mxu0 %v6031_v21  ;;  %v5346_v8 = vpack.c.bf16 %v3834_v9, %v3833_v63  ;;  %v3837_v21 = vld [vmem:[%s7646_s1 + $0x2f0] sm:$0xff]  ;;  %v3670_v9 = vld [vmem:[%s7646_s1 + $0x178] sm:$0xff] }
  0xbe   :  { %4769 = vmatprep.mubr.f32.mxu1 %v6000_v10  ;;  %5337 = vmatpush3.bf16.msra.mxu0 %v5334_v26  ;;  %v3835_v10 = vld [vmem:[%s7646_s1 + $0x2e0] sm:$0xff]  ;;  %v3668_v26 = vld [vmem:[%s7646_s1 + $0x168] sm:$0xff]  ;;  %v3669_v63 = vld [vmem:[%s7646_s1 + $0x170] sm:$0xff] }
  0xbf   :  { %5339 = vmatprep.subr.bf16.mxu0 %v5338_v29  ;;  %v5382_v4 = vpack.c.bf16 %v3668_v26, %v3667_v53  ;;  %v3800_v26 = vld [vmem:[%s7647_s0 + $0x328] sm:$0xff] }
  0xc0   :  { %4574 = vmatmul.mubr.f32.gmra.mrb[42].mxu0 %v6050_v30 }
  0xc1   :  { %4770 = vmatmul.mubr.f32.gmra.mrb[2].mxu1 %v6026_v20  ;;  %4576 = vmatprep.mubr.f32.mxu0 %v6067_v35  ;;  %v5350_v20 = vpack.c.bf16 %v3836_v16, %v3835_v10  ;;  %v3656_v35 = vld [vmem:[%s7646_s1 + $0x108] sm:$0xff]  ;;  %v3324_v16 = vlaneseq }
  0xc2   :  { %4772 = vmatprep.mubr.f32.mxu1 %v6036_v22  ;;  %5341 = vmatpush3.bf16.msra.mxu0 %v5338_v29  ;;  %v3838_v22 = vld [vmem:[%s7646_s1 + $0x2f8] sm:$0xff]  ;;  %v3887_v29 = vld [vmem:[%s7646_s1 + $0x260] sm:$0xff] }
  0xc3   :  { %5343 = vmatprep.subr.bf16.mxu0 %v5342_v61  ;;  %v5354_v30 = vpack.c.bf16 %v3838_v22, %v3837_v21  ;;  %v5414_v10 = vpack.c.bf16 %v3888_v62, %v3887_v29  ;;  %v3890_v21 = vld [vmem:[%s7646_s1 + $0x278] sm:$0xff]  ;;  %v5386_v22 = vpack.c.bf16 %v3670_v9, %v3669_v63 }
  0xc4   :  { %4577 = vmatmul.mubr.f32.gmra.mrb[44].mxu0 %v6086_v42  ;;  %v7657_v42 = vld [vmem:[#allocation6_spill] sm:$0xff]  ;;  %v3802_v9 = vld [vmem:[%s7647_s0 + $0x338] sm:$0xff] }
  0xc5   :  { %4773 = vmatmul.mubr.f32.gmra.mrb[4].mxu1 %v6062_v34  ;;  %4579 = vmatprep.mubr.f32.mxu0 %v6103_v47  ;;  %v3655_v34 = vld [vmem:[%s7646_s1 + $0x100] sm:$0xff] }
  0xc6   :  { %4775 = vmatprep.mubr.f32.mxu1 %v6072_v36  ;;  %5345 = vmatpush3.bf16.msra.mxu0 %v5342_v61  ;;  %v5358_v36 = vpack.c.bf16 %v3656_v35, %v3655_v34  ;;  %v3771_v47 = vld [vmem:[%s7647_s0 + $0x240] sm:$0xff]  ;;  %v3784_v61 = vld [vmem:[%s7647_s0 + $0x2a8] sm:$0xff] }
  0xc7   :  { %5347 = vmatprep.subr.bf16.mxu0 %v5346_v8  ;;  %v3787_v34 = vld [vmem:[%s7647_s0 + $0x2c0] sm:$0xff] }
  0xc8   :  { %4580 = vmatmul.mubr.f32.gmra.mrb[46].mxu0 %v6122_v54  ;;  %v3658_v54 = vld [vmem:[%s7646_s1 + $0x118] sm:$0xff] }
  0xc9   :  { %4776 = vmatmul.mubr.f32.gmra.mrb[6].mxu1 %v6098_v46  ;;  %4582 = vmatprep.mubr.f32.mxu0 %v6139_v59  ;;  %v7658_v46 = vld [vmem:[#allocation7_spill] sm:$0xff]  ;;  %v7659_v59 = vld [vmem:[#allocation8_spill] sm:$0xff] }
  0xca   :  { %4778 = vmatprep.mubr.f32.mxu1 %v6108_v48  ;;  %5349 = vmatpush3.bf16.msra.mxu0 %v5346_v8  ;;  %v3657_v48 = vld [vmem:[%s7646_s1 + $0x110] sm:$0xff] }
  0xcb   :  { %5351 = vmatprep.subr.bf16.mxu0 %v5350_v20  ;;  %v3785_v8 = vld [vmem:[%s7647_s0 + $0x2b0] sm:$0xff] }
  0xcc   :  { %4583 = vmatmul.mubr.f32.gmra.mrb[48].mxu0 %v6158_v5  ;;  %v5362_v5 = vpack.c.bf16 %v3658_v54, %v3657_v48 }
  0xcd   :  { %4779 = vmatmul.mubr.f32.gmra.mrb[8].mxu1 %v6134_v57  ;;  %4585 = vmatprep.mubr.f32.mxu0 %v6175_v14  ;;  %v3772_v57 = vld [vmem:[%s7647_s0 + $0x248] sm:$0xff]  ;;  %v3877_v14 = vld [vmem:[%s7646_s1 + $0x210] sm:$0xff] }
  0xce   :  { %4781 = vmatprep.mubr.f32.mxu1 %v6144_v60  ;;  %5353 = vmatpush3.bf16.msra.mxu0 %v5350_v20  ;;  %v3773_v60 = vld [vmem:[%s7647_s0 + $0x250] sm:$0xff] }
  0xcf   :  { %5355 = vmatprep.subr.bf16.mxu0 %v5354_v30  ;;  %v3889_v20 = vld [vmem:[%s7646_s1 + $0x270] sm:$0xff] }
  0xd0   :  { %4586 = vmatmul.mubr.f32.gmra.mrb[50].mxu0 %v6194_v27  ;;  %v3878_v27 = vld [vmem:[%s7646_s1 + $0x218] sm:$0xff]  ;;  %v5418_v35 = vpack.c.bf16 %v3890_v21, %v3889_v20 }
  0xd1   :  { %4782 = vmatmul.mubr.f32.gmra.mrb[10].mxu1 %v7657_v42  ;;  %4588 = vmatprep.mubr.f32.mxu0 %v6205_v32  ;;  %v3659_v32 = vld [vmem:[%s7646_s1 + $0x120] sm:$0xff]  ;;  %v3788_v42 = vld [vmem:[%s7647_s0 + $0x2c8] sm:$0xff] }
  0xd2   :  { %4784 = vmatprep.mubr.f32.mxu1 %v7658_v46  ;;  %5357 = vmatpush3.bf16.msra.mxu0 %v5354_v30  ;;  %v3786_v30 = vld [vmem:[%s7647_s0 + $0x2b8] sm:$0xff]  ;;  %v3789_v46 = vld [vmem:[%s7647_s0 + $0x2d0] sm:$0xff] }
  0xd3   :  { %5359 = vmatprep.subr.bf16.mxu0 %v5358_v36 }
  0xd4   :  { %4589 = vmatmul.mubr.f32.gmra.mrb[52].mxu0 %v6218_v39  ;;  %v3660_v39 = vld [vmem:[%s7646_s1 + $0x128] sm:$0xff] }
  0xd5   :  { %4785 = vmatmul.mubr.f32.gmra.mrb[12].mxu1 %v6200_v28  ;;  %4908 = vmatprep.mubr.f32.mxu0 %v3771_v47  ;;  %v3774_v28 = vld [vmem:[%s7647_s0 + $0x258] sm:$0xff]  ;;  %v5366_v33 = vpack.c.bf16 %v3660_v39, %v3659_v32  ;;  %v3792_v39 = vld [vmem:[%s7647_s0 + $0x2e8] sm:$0xff] }
  0xd6   :  { %4787 = vmatprep.mubr.f32.mxu1 %v7659_v59  ;;  %v3790_v59 = vld [vmem:[%s7647_s0 + $0x2d8] sm:$0xff] }
  0xd8   :  { %4909 = vmatmul.mubr.f32.vlgmr.msra.gmra.mrb[72].mxu0 %v3772_v57 }
  0xd9   :  { %4788 = vmatmul.mubr.f32.gmra.mrb[14].mxu1 %v6224_v40  ;;  %4911 = vmatprep.mubr.f32.mxu0 %v3773_v60  ;;  %v5394_v40 = vpack.c.bf16 %v3878_v27, %v3877_v14 }
  0xda   :  { %4822 = vmatprep.mubr.f32.mxu1 %v3771_v47  ;;  %5361 = vmatpush3.bf16.msra.mxu0 %v5358_v36  ;;  %v6865_v36 = vshrl.u32 %v3324_v16, 7 }
  0xdb   :  { %5363 = vmatprep.subr.bf16.mxu0 %v5362_v5 }
  0xdc   :  { %4912 = vmatmul.mubr.f32.gmra.mrb[74].mxu0 %v3774_v28  ;;  %vm3326_vm0 = vcmp.lt.s32.totalorder %v6865_v36, 7 }
  0xdd   :  { %4823 = vmatmul.mubr.f32.vlgmr.msra.gmra.mrb[18].mxu1 %v3772_v57  ;;  %4914 = vmatprep.mubr.f32.mxu0 %v3775_v38 }
  0xde   :  { %5393 = vmatpush3.bf16.msra.mxu1 %v6637_v6  ;;  %4825 = vmatprep.mubr.f32.mxu1 %v3773_v60  ;;  %v5406_v6 = vpack.c.bf16 %v3884_v51, %v3883_v12  ;;  %v3791_v60 = vld [vmem:[%s7647_s0 + $0x2e0] sm:$0xff] }
  0xdf   :  { %5395 = vmatprep.subr.bf16.mxu1 %v5394_v40  ;;  %5365 = vmatpush3.bf16.msra.mxu0 %v5362_v5 }
  0xe0   :  { %4915 = vmatmul.mubr.f32.gmra.mrb[76].mxu0 %v3776_v19  ;;  %5367 = vmatprep.subr.bf16.mxu0 %v5366_v33 }
  0xe1   :  { %4826 = vmatmul.mubr.f32.gmra.mrb[20].mxu1 %v3774_v28  ;;  %4917 = vmatprep.mubr.f32.mxu0 %v3777_v3 }
  0xe2   :  { %4828 = vmatprep.mubr.f32.mxu1 %v3775_v38  ;;  %5397 = vmatpush3.bf16.msra.mxu1 %v5394_v40  ;;  %v3793_v38 = vld [vmem:[%s7647_s0 + $0x2f0] sm:$0xff] }
  0xe3   :  { %5399 = vmatprep.subr.bf16.mxu1 %v5398_v1  ;;  %5369 = vmatpush3.bf16.msra.mxu0 %v5366_v33 }
  0xe4   :  { %4918 = vmatmul.mubr.f32.gmra.mrb[78].mxu0 %v3778_v13  ;;  %5371 = vmatprep.subr.bf16.mxu0 %v5370_v24 }
  0xe5   :  { %4829 = vmatmul.mubr.f32.gmra.mrb[22].mxu1 %v3776_v19  ;;  %4920 = vmatprep.mubr.f32.mxu0 %v3779_v7 }
  0xe6   :  { %4831 = vmatprep.mubr.f32.mxu1 %v3777_v3  ;;  %5401 = vmatpush3.bf16.msra.mxu1 %v5398_v1  ;;  %v3795_v3 = vld [vmem:[%s7647_s0 + $0x300] sm:$0xff] }
  0xe7   :  { %5403 = vmatprep.subr.bf16.mxu1 %v5402_v50  ;;  %5373 = vmatpush3.bf16.msra.mxu0 %v5370_v24 }
  0xe8   :  { %4921 = vmatmul.mubr.f32.gmra.mrb[80].mxu0 %v3780_v56  ;;  %5375 = vmatprep.subr.bf16.mxu0 %v5374_v17 }
  0xe9   :  { %4832 = vmatmul.mubr.f32.gmra.mrb[24].mxu1 %v3778_v13  ;;  %4923 = vmatprep.mubr.f32.mxu0 %v3781_v31 }
  0xea   :  { %4834 = vmatprep.mubr.f32.mxu1 %v3779_v7  ;;  %5405 = vmatpush3.bf16.msra.mxu1 %v5402_v50  ;;  %v3797_v7 = vld [vmem:[%s7647_s0 + $0x310] sm:$0xff] }
  0xeb   :  { %5407 = vmatprep.subr.bf16.mxu1 %v5406_v6  ;;  %5377 = vmatpush3.bf16.msra.mxu0 %v5374_v17 }
  0xec   :  { %4924 = vmatmul.mubr.f32.gmra.mrb[82].mxu0 %v3782_v43  ;;  %5379 = vmatprep.subr.bf16.mxu0 %v5378_v25 }
  0xed   :  { %4835 = vmatmul.mubr.f32.gmra.mrb[26].mxu1 %v3780_v56  ;;  %4926 = vmatprep.mubr.f32.mxu0 %v3783_v58 }
  0xee   :  { %4837 = vmatprep.mubr.f32.mxu1 %v3781_v31  ;;  %5409 = vmatpush3.bf16.msra.mxu1 %v5406_v6  ;;  %v3799_v31 = vld [vmem:[%s7647_s0 + $0x320] sm:$0xff] }
  0xef   :  { %5411 = vmatprep.subr.bf16.mxu1 %v5410_v55  ;;  %5381 = vmatpush3.bf16.msra.mxu0 %v5378_v25 }
  0xf0   :  { %4927 = vmatmul.mubr.f32.gmra.mrb[84].mxu0 %v3784_v61  ;;  %5383 = vmatprep.subr.bf16.mxu0 %v5382_v4 }
  0xf1   :  { %4838 = vmatmul.mubr.f32.gmra.mrb[28].mxu1 %v3782_v43  ;;  %4929 = vmatprep.mubr.f32.mxu0 %v3785_v8 }
  0xf2   :  { %4840 = vmatprep.mubr.f32.mxu1 %v3783_v58  ;;  %5413 = vmatpush3.bf16.msra.mxu1 %v5410_v55  ;;  %v3801_v58 = vld [vmem:[%s7647_s0 + $0x330] sm:$0xff] }
  0xf3   :  { %5415 = vmatprep.subr.bf16.mxu1 %v5414_v10  ;;  %5385 = vmatpush3.bf16.msra.mxu0 %v5382_v4 }
  0xf4   :  { %4930 = vmatmul.mubr.f32.gmra.mrb[86].mxu0 %v3786_v30  ;;  %5387 = vmatprep.subr.bf16.mxu0 %v5386_v22 }
  0xf5   :  { %4841 = vmatmul.mubr.f32.gmra.mrb[30].mxu1 %v3784_v61  ;;  %4932 = vmatprep.mubr.f32.mxu0 %v3787_v34 }
  0xf6   :  { %4843 = vmatprep.mubr.f32.mxu1 %v3785_v8  ;;  %5417 = vmatpush3.bf16.msra.mxu1 %v5414_v10  ;;  %v3803_v8 = vld [vmem:[%s7647_s0 + $0x340] sm:$0xff] }
  0xf7   :  { %v4394_v47 = vpop.f32.mrb[0].mxu0  ;;  %5419 = vmatprep.subr.bf16.mxu1 %v5418_v35  ;;  %5389 = vmatpush3.bf16.msra.mxu0 %v5386_v22 }
  0xf8   :  { %4933 = vmatmul.mubr.f32.gmra.mrb[88].mxu0 %v3788_v42  ;;  %v3508_v48 = vrot.slane %v4394_v47, 1  ;;  %v6873_v54 = vpop.f32.mrb[1].mxu0 }
  0xf9   :  { %4844 = vmatmul.mubr.f32.gmra.mrb[32].mxu1 %v3786_v30  ;;  %v3507_v57 = vrot.slane %v6873_v54, 1  ;;  %4935 = vmatprep.mubr.f32.mxu0 %v3789_v46  ;;  %v3855_v54 = vld [vmem:[%s7647_s0 + $0x3e0] sm:$0xff] }
  0xfa   :  { %4846 = vmatprep.mubr.f32.mxu1 %v3787_v34  ;;  %5421 = vmatpush3.bf16.msra.mxu1 %v5418_v35  ;;  %v3804_v34 = vld [vmem:[%s7647_s0 + $0x348] sm:$0xff]  ;;  %v3805_v35 = vld [vmem:[%s7647_s0 + $0x350] sm:$0xff] }
  0xfb   :  { %v6887_v5 = vsel %vm3326_vm0, %v3507_v57, %v3508_v48  ;;  %v4397_v14 = vpop.f32.mrb[2].mxu0 }
  0xfc   :  { %7660 = vst [vmem:[#allocation6_spill] sm:$0xff] %v6887_v5  ;;  %v3510_v27 = vrot.slane %v4397_v14, 1  ;;  %4936 = vmatmul.mubr.f32.gmra.mrb[90].mxu0 %v3790_v59  ;;  %v341_v28 = vpop.f32.mrb[3].mxu0  ;;  %v3806_v14 = vld [vmem:[%s7647_s0 + $0x358] sm:$0xff] }
  0xfd   :  { %4847 = vmatmul.mubr.f32.gmra.mrb[34].mxu1 %v3788_v42  ;;  %v3509_v32 = vrot.slane %v341_v28, 1  ;;  %4938 = vmatprep.mubr.f32.mxu0 %v3791_v60 }
  0xfe   :  { %4849 = vmatprep.mubr.f32.mxu1 %v3789_v46 }
  0xff   :  { %v6897_v40 = vsel %vm3326_vm0, %v3509_v32, %v3510_v27  ;;  %v6901_v49 = vsel %vm3326_vm0, %v3508_v48, %v3509_v32  ;;  %v4400_v18 = vpop.f32.mrb[4].mxu0 }
 0x100   :  { %7661 = vst [vmem:[#allocation7_spill] sm:$0xff] %v6901_v49  ;;  %v3512_v33 = vrot.slane %v4400_v18, 1  ;;  %4939 = vmatmul.mubr.f32.gmra.mrb[92].mxu0 %v3792_v39  ;;  %v351_v19 = vpop.f32.mrb[5].mxu0 }
 0x101   :  { %4850 = vmatmul.mubr.f32.gmra.mrb[0].mxu1 %v3790_v59  ;;  %v3511_v44 = vrot.slane %v351_v19, 1  ;;  %4941 = vmatprep.mubr.f32.mxu0 %v3793_v38 }
 0x102   :  { %4852 = vmatprep.mubr.f32.mxu1 %v3791_v60 }
 0x103   :  { %v6911_v1 = vsel %vm3326_vm0, %v3511_v44, %v3512_v33  ;;  %v6915_v45 = vsel %vm3326_vm0, %v3510_v27, %v3511_v44  ;;  %v4403_v52 = vpop.f32.mrb[6].mxu0 }
 0x104   :  { %v3514_v24 = vrot.slane %v4403_v52, 1  ;;  %4942 = vmatmul.mubr.f32.gmra.mrb[94].mxu0 %v3794_v2  ;;  %v361_v13 = vpop.f32.mrb[7].mxu0 }
 0x105   :  { %4853 = vmatmul.mubr.f32.gmra.mrb[2].mxu1 %v3792_v39  ;;  %v3513_v15 = vrot.slane %v361_v13, 1  ;;  %4944 = vmatprep.mubr.f32.mxu0 %v3795_v3 }
 0x106   :  { %4855 = vmatprep.mubr.f32.mxu1 %v3793_v38 }
 0x107   :  { %v6925_v50 = vsel %vm3326_vm0, %v3513_v15, %v3514_v24  ;;  %v6929_v12 = vsel %vm3326_vm0, %v3512_v33, %v3513_v15  ;;  %v4406_v51 = vpop.f32.mrb[8].mxu0  ;;  %v5726_v33 = vld [vmem:[%s7647_s0] sm:$0xff] }
 0x108   :  { %v3516_v17 = vrot.slane %v4406_v51, 1  ;;  %4945 = vmatmul.mubr.f32.gmra.mrb[96].mxu0 %v3796_v41  ;;  %v371_v56 = vpop.f32.mrb[9].mxu0 }
 0x109   :  { %4856 = vmatmul.mubr.f32.gmra.mrb[4].mxu1 %v3794_v2  ;;  %v3515_v23 = vrot.slane %v371_v56, 1  ;;  %4947 = vmatprep.mubr.f32.mxu0 %v3797_v7 }
 0x10a   :  { %4858 = vmatprep.mubr.f32.mxu1 %v3795_v3  ;;  %v3839_v3 = vld [vmem:[%s7647_s0 + $0x360] sm:$0xff] }
 0x10b   :  { %v6939_v6 = vsel %vm3326_vm0, %v3515_v23, %v3516_v17  ;;  %v6943_v11 = vsel %vm3326_vm0, %v3514_v24, %v3515_v23  ;;  %v4409_v37 = vpop.f32.mrb[10].mxu0  ;;  %v5727_v24 = vld [vmem:[%s7647_s0 + $0x8] sm:$0xff]  ;;  %v3841_v23 = vld [vmem:[%s7647_s0 + $0x370] sm:$0xff] }
 0x10c   :  { %v3518_v25 = vrot.slane %v4409_v37, 1  ;;  %4948 = vmatmul.mubr.f32.gmra.mrb[98].mxu0 %v3798_v0  ;;  %v381_v43 = vpop.f32.mrb[11].mxu0 }
 0x10d   :  { %4859 = vmatmul.mubr.f32.gmra.mrb[6].mxu1 %v3796_v41  ;;  %v3517_v53 = vrot.slane %v381_v43, 1  ;;  %4950 = vmatprep.mubr.f32.mxu0 %v3799_v31  ;;  %v5728_v41 = vld [vmem:[%s7647_s0 + $0x10] sm:$0xff]  ;;  %v5730_v43 = vld [vmem:[%s7647_s0 + $0x20] sm:$0xff] }
 0x10e   :  { %4861 = vmatprep.mubr.f32.mxu1 %v3797_v7  ;;  %v3840_v7 = vld [vmem:[%s7647_s0 + $0x368] sm:$0xff] }
 0x10f   :  { %v6953_v55 = vsel %vm3326_vm0, %v3517_v53, %v3518_v25  ;;  %v6957_v29 = vsel %vm3326_vm0, %v3516_v17, %v3517_v53  ;;  %v4412_v62 = vpop.f32.mrb[12].mxu0  ;;  %v3842_v53 = vld [vmem:[%s7647_s0 + $0x378] sm:$0xff] }
 0x110   :  { %v3520_v4 = vrot.slane %v4412_v62, 1  ;;  %4951 = vmatmul.mubr.f32.gmra.mrb[100].mxu0 %v3800_v26  ;;  %v391_v61 = vpop.f32.mrb[13].mxu0 }
 0x111   :  { %4862 = vmatmul.mubr.f32.gmra.mrb[8].mxu1 %v3798_v0  ;;  %v3519_v63 = vrot.slane %v391_v61, 1  ;;  %4953 = vmatprep.mubr.f32.mxu0 %v3801_v58 }
 0x112   :  { %4864 = vmatprep.mubr.f32.mxu1 %v3799_v31  ;;  %v5729_v31 = vld [vmem:[%s7647_s0 + $0x18] sm:$0xff] }
 0x113   :  { %v6967_v10 = vsel %vm3326_vm0, %v3519_v63, %v3520_v4  ;;  %v6971_v16 = vsel %vm3326_vm0, %v3518_v25, %v3519_v63  ;;  %v4415_v20 = vpop.f32.mrb[14].mxu0  ;;  %v5731_v63 = vld [vmem:[%s7647_s0 + $0x28] sm:$0xff] }
 0x114   :  { %v3522_v21 = vrot.slane %v4415_v20, 1  ;;  %4954 = vmatmul.mubr.f32.gmra.mrb[102].mxu0 %v3802_v9  ;;  %v401_v22 = vpop.f32.mrb[15].mxu0  ;;  %v5732_v20 = vld [vmem:[%s7647_s0 + $0x30] sm:$0xff] }
 0x115   :  { %4865 = vmatmul.mubr.f32.gmra.mrb[10].mxu1 %v3800_v26  ;;  %v3521_v30 = vrot.slane %v401_v22, 1  ;;  %4956 = vmatprep.mubr.f32.mxu0 %v3803_v8 }
 0x116   :  { %4867 = vmatprep.mubr.f32.mxu1 %v3801_v58 }
 0x117   :  { %v6981_v42 = vsel %vm3326_vm0, %v3521_v30, %v3522_v21  ;;  %v6985_v46 = vsel %vm3326_vm0, %v3520_v4, %v3521_v30  ;;  %v4418_v47 = vpop.f32.mrb[16].mxu0  ;;  %v3843_v4 = vld [vmem:[%s7647_s0 + $0x380] sm:$0xff] }
 0x118   :  { %v3524_v48 = vrot.slane %v4418_v47, 1  ;;  %4957 = vmatmul.mubr.f32.gmra.mrb[104].mxu0 %v3804_v34  ;;  %v411_v59 = vpop.f32.mrb[17].mxu0 }
 0x119   :  { %4868 = vmatmul.mubr.f32.gmra.mrb[12].mxu1 %v3802_v9  ;;  %v3523_v60 = vrot.slane %v411_v59, 1  ;;  %4959 = vmatprep.mubr.f32.mxu0 %v3805_v35 }
 0x11a   :  { %4870 = vmatprep.mubr.f32.mxu1 %v3803_v8 }
 0x11b   :  { %v6992_v27 = vsel %vm3326_vm0, %v3523_v60, %v3524_v48  ;;  %v6996_v28 = vsel %vm3326_vm0, %v3522_v21, %v3523_v60  ;;  %v4421_v32 = vpop.f32.mrb[18].mxu0  ;;  %v3844_v21 = vld [vmem:[%s7647_s0 + $0x388] sm:$0xff] }
 0x11c   :  { %v3526_v39 = vrot.slane %v4421_v32, 1  ;;  %4960 = vmatmul.mubr.f32.gmra.mrb[106].mxu0 %v3806_v14  ;;  %v421_v38 = vpop.f32.mrb[19].mxu0  ;;  %v3846_v32 = vld [vmem:[%s7647_s0 + $0x398] sm:$0xff] }
 0x11d   :  { %4871 = vmatmul.mubr.f32.gmra.mrb[14].mxu1 %v3804_v34  ;;  %v3525_v18 = vrot.slane %v421_v38, 1  ;;  %4994 = vmatprep.mubr.f32.mxu0 %v5726_v33  ;;  %v3847_v33 = vld [vmem:[%s7647_s0 + $0x3a0] sm:$0xff] }
 0x11e   :  { %4873 = vmatprep.mubr.f32.mxu1 %v3805_v35  ;;  %v3845_v35 = vld [vmem:[%s7647_s0 + $0x390] sm:$0xff] }
 0x11f   :  { %v7003_v19 = vsel %vm3326_vm0, %v3525_v18, %v3526_v39  ;;  %v7007_v44 = vsel %vm3326_vm0, %v3524_v48, %v3525_v18  ;;  %v4424_v2 = vpop.f32.mrb[20].mxu0  ;;  %v5733_v48 = vld [vmem:[%s7647_s0 + $0x38] sm:$0xff] }
 0x120   :  { %v3528_v52 = vrot.slane %v4424_v2, 1  ;;  %4995 = vmatmul.mubr.f32.vlgmr.msra.gmra.mrb[72].mxu0 %v5727_v24  ;;  %v431_v13 = vpop.f32.mrb[21].mxu0 }
 0x121   :  { %4874 = vmatmul.mubr.f32.gmra.mrb[16].mxu1 %v3806_v14  ;;  %v3527_v15 = vrot.slane %v431_v13, 1  ;;  %4997 = vmatprep.mubr.f32.mxu0 %v5728_v41  ;;  %v5734_v14 = vld [vmem:[%s7647_s0 + $0x40] sm:$0xff]  ;;  %v5736_v13 = vld [vmem:[%s7647_s0 + $0x50] sm:$0xff] }
 0x122   :  { %5080 = vmatprep.mubr.f32.mxu1 %v3839_v3  ;;  %v5735_v3 = vld [vmem:[%s7647_s0 + $0x48] sm:$0xff] }
 0x123   :  { %v7023_v51 = vsel %vm3326_vm0, %v3527_v15, %v3528_v52  ;;  %v7027_v17 = vsel %vm3326_vm0, %v3526_v39, %v3527_v15  ;;  %v4427_v56 = vpop.f32.mrb[22].mxu0  ;;  %v3848_v15 = vld [vmem:[%s7647_s0 + $0x3a8] sm:$0xff] }
 0x124   :  { %7662 = vst [vmem:[#allocation8_spill] sm:$0xff] %v7023_v51  ;;  %v3530_v0 = vrot.slane %v4427_v56, 1  ;;  %4998 = vmatmul.mubr.f32.gmra.mrb[74].mxu0 %v5729_v31  ;;  %v441_v37 = vpop.f32.mrb[23].mxu0  ;;  %v5737_v31 = vld [vmem:[%s7647_s0 + $0x58] sm:$0xff] }
 0x125   :  { %5081 = vmatmul.mubr.f32.vlgmr.msra.gmra.mrb[18].mxu1 %v3840_v7  ;;  %v3529_v25 = vrot.slane %v441_v37, 1  ;;  %5000 = vmatprep.mubr.f32.mxu0 %v5730_v43  ;;  %v5738_v43 = vld [vmem:[%s7647_s0 + $0x60] sm:$0xff] }
 0x126   :  { %5083 = vmatprep.mubr.f32.mxu1 %v3841_v23  ;;  %v3849_v23 = vld [vmem:[%s7647_s0 + $0x3b0] sm:$0xff] }
 0x127   :  { %v7043_v26 = vsel %vm3326_vm0, %v3529_v25, %v3530_v0  ;;  %v7047_v58 = vsel %vm3326_vm0, %v3528_v52, %v3529_v25  ;;  %v4430_v62 = vpop.f32.mrb[24].mxu0 }
 0x128   :  { %7663 = vst [vmem:[#allocation9_spill] sm:$0xff] %v7043_v26  ;;  %v3532_v61 = vrot.slane %v4430_v62, 1  ;;  %5001 = vmatmul.mubr.f32.gmra.mrb[76].mxu0 %v5731_v63  ;;  %v451_v9 = vpop.f32.mrb[25].mxu0  ;;  %v3851_v63 = vld [vmem:[%s7647_s0 + $0x3c0] sm:$0xff] }
 0x129   :  { %5084 = vmatmul.mubr.f32.gmra.mrb[20].mxu1 %v3842_v53  ;;  %v3531_v8 = vrot.slane %v451_v9, 1  ;;  %5003 = vmatprep.mubr.f32.mxu0 %v5732_v20  ;;  %v3850_v53 = vld [vmem:[%s7647_s0 + $0x3b8] sm:$0xff] }
 0x12a   :  { %5086 = vmatprep.mubr.f32.mxu1 %v3843_v4 }
 0x12b   :  { %v7063_v22 = vsel %vm3326_vm0, %v3531_v8, %v3532_v61  ;;  %v7067_v30 = vsel %vm3326_vm0, %v3530_v0, %v3531_v8  ;;  %v4433_v34 = vpop.f32.mrb[26].mxu0  ;;  %v5739_v8 = vld [vmem:[%s7647_s0 + $0x68] sm:$0xff] }
 0x12c   :  { %7664 = vst [vmem:[#allocation10_spill] sm:$0xff] %v7063_v22  ;;  %7665 = vst [vmem:[#allocation11_spill] sm:$0xff] %v7067_v30  ;;  %v3534_v47 = vrot.slane %v4433_v34, 1  ;;  %5004 = vmatmul.mubr.f32.gmra.mrb[78].mxu0 %v5733_v48  ;;  %v461_v59 = vpop.f32.mrb[27].mxu0  ;;  %v5740_v34 = vld [vmem:[%s7647_s0 + $0x70] sm:$0xff] }
 0x12d   :  { %5087 = vmatmul.mubr.f32.gmra.mrb[22].mxu1 %v3844_v21  ;;  %v3533_v60 = vrot.slane %v461_v59, 1  ;;  %5006 = vmatprep.mubr.f32.mxu0 %v5734_v14 }
 0x12e   :  { %5089 = vmatprep.mubr.f32.mxu1 %v3845_v35  ;;  %v3852_v35 = vld [vmem:[%s7647_s0 + $0x3c8] sm:$0xff] }
 0x12f   :  { %v7083_v39 = vsel %vm3326_vm0, %v3533_v60, %v3534_v47  ;;  %v7087_v38 = vsel %vm3326_vm0, %v3532_v61, %v3533_v60  ;;  %v4436_v18 = vpop.f32.mrb[28].mxu0  ;;  %v3853_v60 = vld [vmem:[%s7647_s0 + $0x3d0] sm:$0xff] }
 0x130   :  { %7666 = vst [vmem:[#allocation12_spill] sm:$0xff] %v7083_v39  ;;  %7667 = vst [vmem:[#allocation13_spill] sm:$0xff] %v7087_v38  ;;  %v3536_v2 = vrot.slane %v4436_v18, 1  ;;  %5007 = vmatmul.mubr.f32.gmra.mrb[80].mxu0 %v5735_v3  ;;  %v471_v52 = vpop.f32.mrb[29].mxu0 }
 0x131   :  { %5090 = vmatmul.mubr.f32.gmra.mrb[24].mxu1 %v3846_v32  ;;  %v3535_v24 = vrot.slane %v471_v52, 1  ;;  %5009 = vmatprep.mubr.f32.mxu0 %v5736_v13  ;;  %v5741_v32 = vld [vmem:[%s7647_s0 + $0x78] sm:$0xff] }
 0x132   :  { %5092 = vmatprep.mubr.f32.mxu1 %v3847_v33  ;;  %v3854_v52 = vld [vmem:[%s7647_s0 + $0x3d8] sm:$0xff] }
 0x133   :  { %v7103_v41 = vsel %vm3326_vm0, %v3535_v24, %v3536_v2  ;;  %v7107_v7 = vsel %vm3326_vm0, %v3534_v47, %v3535_v24  ;;  %v4439_v56 = vpop.f32.mrb[30].mxu0 }
 0x134   :  { %7668 = vst [vmem:[#allocation14_spill] sm:$0xff] %v7103_v41  ;;  %7669 = vst [vmem:[#allocation15_spill] sm:$0xff] %v7107_v7  ;;  %v3538_v0 = vrot.slane %v4439_v56, 1  ;;  %5010 = vmatmul.mubr.f32.gmra.mrb[82].mxu0 %v5737_v31  ;;  %v481_v37 = vpop.f32.mrb[31].mxu0  ;;  %v3856_v56 = vld [vmem:[%s7647_s0 + $0x3e8] sm:$0xff]  ;;  %v5746_v31 = vld [vmem:[%s7647_s0 + $0xa0] sm:$0xff] }
 0x135   :  { %5093 = vmatmul.mubr.f32.gmra.mrb[26].mxu1 %v3848_v15  ;;  %v3537_v25 = vrot.slane %v481_v37, 1  ;;  %5012 = vmatprep.mubr.f32.mxu0 %v5738_v43  ;;  %v5744_v15 = vld [vmem:[%s7647_s0 + $0x90] sm:$0xff]  ;;  %v3858_v37 = vld [vmem:[%s7647_s0 + $0x3f8] sm:$0xff]  ;;  %v5747_v43 = vld [vmem:[%s7647_s0 + $0xa8] sm:$0xff] }
 0x136   :  { %5095 = vmatprep.mubr.f32.mxu1 %v3849_v23  ;;  %v3857_v23 = vld [vmem:[%s7647_s0 + $0x3f0] sm:$0xff]  ;;  %v7357_v41 = vld [vmem:[%s7648_s2] ss:$0 sm:$0xff] }
 0x137   :  { %v7123_v62 = vsel %vm3326_vm0, %v3537_v25, %v3538_v0  ;;  %v7127_v4 = vsel %vm3326_vm0, %v3536_v2, %v3537_v25  ;;  %v4442_v61 = vpop.f32.mrb[32].mxu0  ;;  %v5742_v2 = vld [vmem:[%s7647_s0 + $0x80] sm:$0xff] }
 0x138   :  { %7670 = vst [vmem:[#allocation16_spill] sm:$0xff] %v7123_v62  ;;  %7671 = vst [vmem:[#allocation17_spill] sm:$0xff] %v7127_v4  ;;  %v3540_v9 = vrot.slane %v4442_v61, 1  ;;  %5013 = vmatmul.mubr.f32.gmra.mrb[84].mxu0 %v5739_v8  ;;  %v491_v20 = vpop.f32.mrb[33].mxu0  ;;  %v3859_v25 = vld [vmem:[%s7647_s0 + $0x400] sm:$0xff]  ;;  %v3860_v61 = vld [vmem:[%s7647_s0 + $0x408] sm:$0xff] }
 0x139   :  { %5096 = vmatmul.mubr.f32.gmra.mrb[28].mxu1 %v3850_v53  ;;  %v3539_v21 = vrot.slane %v491_v20, 1  ;;  %5015 = vmatprep.mubr.f32.mxu0 %v5740_v34  ;;  %v5748_v53 = vld [vmem:[%s7647_s0 + $0xb0] sm:$0xff]  ;;  %v5750_v8 = vld [vmem:[%s7647_s0 + $0xc0] sm:$0xff]  ;;  %v3862_v20 = vld [vmem:[%s7647_s0 + $0x418] sm:$0xff] }
 0x13a   :  { %5098 = vmatprep.mubr.f32.mxu1 %v3851_v63  ;;  %v3861_v63 = vld [vmem:[%s7647_s0 + $0x410] sm:$0xff]  ;;  %v5751_v34 = vld [vmem:[%s7647_s0 + $0xc8] sm:$0xff] }
 0x13b   :  { %v7143_v47 = vsel %vm3326_vm0, %v3539_v21, %v3540_v9  ;;  %v7147_v48 = vsel %vm3326_vm0, %v3538_v0, %v3539_v21  ;;  %v4445_v59 = vpop.f32.mrb[34].mxu0  ;;  %v5745_v0 = vld [vmem:[%s7647_s0 + $0x98] sm:$0xff]  ;;  %v3863_v21 = vld [vmem:[%s7647_s0 + $0x420] sm:$0xff] }
 0x13c   :  { %7672 = vst [vmem:[#allocation18_spill] sm:$0xff] %v7143_v47  ;;  %7673 = vst [vmem:[#allocation19_spill] sm:$0xff] %v7147_v48  ;;  %v3542_v14 = vrot.slane %v4445_v59, 1  ;;  %5016 = vmatmul.mubr.f32.gmra.mrb[86].mxu0 %v5741_v32  ;;  %v501_v18 = vpop.f32.mrb[35].mxu0  ;;  %v3864_v59 = vld [vmem:[%s7647_s0 + $0x428] sm:$0xff]  ;;  %v5754_v32 = vld [vmem:[%s7647_s0 + $0xe0] sm:$0xff] }
 0x13d   :  { %5099 = vmatmul.mubr.f32.gmra.mrb[30].mxu1 %v3852_v35  ;;  %v3541_v33 = vrot.slane %v501_v18, 1  ;;  %5018 = vmatprep.mubr.f32.mxu0 %v5742_v2  ;;  %v5752_v35 = vld [vmem:[%s7647_s0 + $0xd0] sm:$0xff]  ;;  %v3866_v18 = vld [vmem:[%s7647_s0 + $0x438] sm:$0xff]  ;;  %v5755_v2 = vld [vmem:[%s7647_s0 + $0xe8] sm:$0xff] }
 0x13e   :  { %v7162_v3 = vsel %vm3326_vm0, %v3542_v14, %v3507_v57  ;;  %5101 = vmatprep.mubr.f32.mxu1 %v3853_v60  ;;  %v5743_v57 = vld [vmem:[%s7647_s0 + $0x88] sm:$0xff]  ;;  %v3865_v60 = vld [vmem:[%s7647_s0 + $0x430] sm:$0xff] }
 0x13f   :  { %7674 = vst [vmem:[#allocation20_spill] sm:$0xff] %v7162_v3  ;;  %v7169_v24 = vsel %vm3326_vm0, %v3541_v33, %v3542_v14  ;;  %v7173_v13 = vsel %vm3326_vm0, %v3540_v9, %v3541_v33  ;;  %v5749_v9 = vld [vmem:[%s7647_s0 + $0xb8] sm:$0xff]  ;;  %v3867_v33 = vld [vmem:[%s7647_s0 + $0x440] sm:$0xff] }
 0x140   :  { %7675 = vst [vmem:[#allocation21_spill] sm:$0xff] %v7169_v24  ;;  %7676 = vst [vmem:[#allocation22_spill] sm:$0xff] %v7173_v13  ;;  %5019 = vmatmul.mubr.f32.gmra.mrb[88].mxu0 %v5743_v57  ;;  %v5753_v14 = vld [vmem:[%s7647_s0 + $0xd8] sm:$0xff]  ;;  %v3869_v57 = vld [vmem:[%s7647_s0 + $0x450] sm:$0xff] }
 0x141   :  { %5102 = vmatmul.mubr.f32.gmra.mrb[32].mxu1 %v3854_v52  ;;  %5021 = vmatprep.mubr.f32.mxu0 %v5744_v15  ;;  %v5756_v52 = vld [vmem:[%s7647_s0 + $0xf0] sm:$0xff]  ;;  %v5757_v15 = vld [vmem:[%s7647_s0 + $0xf8] sm:$0xff] }
 0x142   :  { %5104 = vmatprep.mubr.f32.mxu1 %v3855_v54  ;;  %v3868_v54 = vld [vmem:[%s7647_s0 + $0x448] sm:$0xff] }
 0x144   :  { %5022 = vmatmul.mubr.f32.gmra.mrb[90].mxu0 %v5745_v0  ;;  %v3871_v0 = vld [vmem:[%s7647_s0 + $0x460] sm:$0xff] }
 0x145   :  { %5105 = vmatmul.mubr.f32.gmra.mrb[34].mxu1 %v3856_v56  ;;  %5024 = vmatprep.mubr.f32.mxu0 %v5746_v31  ;;  %v5758_v56 = vld [vmem:[%s7647_s0 + $0x100] sm:$0xff]  ;;  %v5759_v31 = vld [vmem:[%s7647_s0 + $0x108] sm:$0xff] }
 0x146   :  { %5107 = vmatprep.mubr.f32.mxu1 %v3857_v23  ;;  %v3870_v23 = vld [vmem:[%s7647_s0 + $0x458] sm:$0xff] }
 0x148   :  { %5025 = vmatmul.mubr.f32.gmra.mrb[92].mxu0 %v5747_v43  ;;  %v3873_v43 = vld [vmem:[%s7647_s0 + $0x470] sm:$0xff] }
 0x149   :  { %5108 = vmatmul.mubr.f32.gmra.mrb[0].mxu1 %v3858_v37  ;;  %5027 = vmatprep.mubr.f32.mxu0 %v5748_v53  ;;  %v5760_v37 = vld [vmem:[%s7647_s0 + $0x110] sm:$0xff] }
 0x14a   :  { %5110 = vmatprep.mubr.f32.mxu1 %v3859_v25  ;;  %v3872_v25 = vld [vmem:[%s7647_s0 + $0x468] sm:$0xff] }
 0x14c   :  { %5028 = vmatmul.mubr.f32.gmra.mrb[94].mxu0 %v5749_v9  ;;  %v3874_v9 = vld [vmem:[%s7647_s0 + $0x478] sm:$0xff] }
 0x14d   :  { %5111 = vmatmul.mubr.f32.gmra.mrb[2].mxu1 %v3860_v61  ;;  %5030 = vmatprep.mubr.f32.mxu0 %v5750_v8  ;;  %v5761_v61 = vld [vmem:[%s7647_s0 + $0x118] sm:$0xff] }
 0x14e   :  { %5113 = vmatprep.mubr.f32.mxu1 %v3861_v63 }
 0x150   :  { %5031 = vmatmul.mubr.f32.gmra.mrb[96].mxu0 %v5751_v34 }
 0x151   :  { %5114 = vmatmul.mubr.f32.gmra.mrb[4].mxu1 %v3862_v20  ;;  %5033 = vmatprep.mubr.f32.mxu0 %v5752_v35 }
 0x152   :  { %5116 = vmatprep.mubr.f32.mxu1 %v3863_v21 }
 0x154   :  { %5034 = vmatmul.mubr.f32.gmra.mrb[98].mxu0 %v5753_v14 }
 0x155   :  { %5117 = vmatmul.mubr.f32.gmra.mrb[6].mxu1 %v3864_v59  ;;  %5036 = vmatprep.mubr.f32.mxu0 %v5754_v32 }
 0x156   :  { %5119 = vmatprep.mubr.f32.mxu1 %v3865_v60 }
 0x158   :  { %5037 = vmatmul.mubr.f32.gmra.mrb[100].mxu0 %v5755_v2 }
 0x159   :  { %5120 = vmatmul.mubr.f32.gmra.mrb[8].mxu1 %v3866_v18  ;;  %5039 = vmatprep.mubr.f32.mxu0 %v5756_v52 }
 0x15a   :  { %5122 = vmatprep.mubr.f32.mxu1 %v3867_v33 }
 0x15c   :  { %5040 = vmatmul.mubr.f32.gmra.mrb[102].mxu0 %v5757_v15 }
 0x15d   :  { %5123 = vmatmul.mubr.f32.gmra.mrb[10].mxu1 %v3868_v54  ;;  %5042 = vmatprep.mubr.f32.mxu0 %v5758_v56 }
 0x15e   :  { %5125 = vmatprep.mubr.f32.mxu1 %v3869_v57 }
 0x160   :  { %5043 = vmatmul.mubr.f32.gmra.mrb[104].mxu0 %v5759_v31 }
 0x161   :  { %5126 = vmatmul.mubr.f32.gmra.mrb[12].mxu1 %v3870_v23  ;;  %5045 = vmatprep.mubr.f32.mxu0 %v5760_v37 }
 0x162   :  { %5128 = vmatprep.mubr.f32.mxu1 %v3871_v0 }
 0x163   :  { %v7286_v53 = vpop.f32.mrb[54].mxu0 }
 0x164   :  { %5046 = vmatmul.mubr.f32.gmra.mrb[106].mxu0 %v5761_v61  ;;  %v7291_v63 = vpop.f32.mrb[55].mxu0 }
 0x165   :  { %5129 = vmatmul.mubr.f32.gmra.mrb[14].mxu1 %v3872_v25 }
 0x166   :  { %5131 = vmatprep.mubr.f32.mxu1 %v3873_v43 }
 0x167   :  { %v7296_v8 = vpop.f32.mrb[56].mxu0 }
 0x168   :  { %v7298_v20 = vpop.f32.mrb[57].mxu0 }
 0x169   :  { %5132 = vmatmul.mubr.f32.gmra.mrb[16].mxu1 %v3874_v9 }
 0x16b   :  { %v7300_v21 = vpop.f32.mrb[58].mxu0 }
 0x16c   :  { %7677 = vst [vmem:[#allocation23_spill] sm:$0xff] %v7300_v21  ;;  %v7302_v34 = vpop.f32.mrb[59].mxu0 }
 0x16d   :  { %7678 = vst [vmem:[#allocation24_spill] sm:$0xff] %v7302_v34 }
 0x16f   :  { %v7304_v35 = vpop.f32.mrb[60].mxu0 }
 0x170   :  { %7679 = vst [vmem:[#allocation25_spill] sm:$0xff] %v7304_v35  ;;  %v7306_v59 = vpop.f32.mrb[61].mxu0 }
 0x171   :  { %7680 = vst [vmem:[#allocation26_spill] sm:$0xff] %v7306_v59 }
 0x173   :  { %v7308_v60 = vpop.f32.mrb[62].mxu0 }
 0x174   :  { %7681 = vst [vmem:[#allocation27_spill] sm:$0xff] %v7308_v60  ;;  %v7310_v14 = vpop.f32.mrb[63].mxu0 }
 0x175   :  { %7682 = vst [vmem:[#allocation28_spill] sm:$0xff] %v7310_v14 }
 0x177   :  { %v7312_v32 = vpop.f32.mrb[64].mxu0 }
 0x178   :  { %7683 = vst [vmem:[#allocation29_spill] sm:$0xff] %v7312_v32  ;;  %v7314_v18 = vpop.f32.mrb[65].mxu0 }
 0x179   :  { %7684 = vst [vmem:[#allocation30_spill] sm:$0xff] %v7314_v18 }
 0x17b   :  { %v7316_v33 = vpop.f32.mrb[66].mxu0 }
 0x17c   :  { %7685 = vst [vmem:[#allocation31_spill] sm:$0xff] %v7316_v33  ;;  %v7318_v2 = vpop.f32.mrb[67].mxu0 }
 0x17d   :  { %7686 = vst [vmem:[#allocation32_spill] sm:$0xff] %v7318_v2 }
 0x17f   :  { %v7320_v52 = vpop.f32.mrb[68].mxu0 }
 0x180   :  { %7687 = vst [vmem:[#allocation33_spill] sm:$0xff] %v7320_v52  ;;  %v7322_v54 = vpop.f32.mrb[69].mxu0 }
 0x181   :  { %7688 = vst [vmem:[#allocation34_spill] sm:$0xff] %v7322_v54 }
 0x183   :  { %v7324_v57 = vpop.f32.mrb[70].mxu0 }
 0x184   :  { %7689 = vst [vmem:[#allocation35_spill] sm:$0xff] %v7324_v57  ;;  %v7326_v15 = vpop.f32.mrb[71].mxu0 }
 0x185   :  { %7690 = vst [vmem:[#allocation36_spill] sm:$0xff] %v7326_v15 }
 0x187   :  { %v4566_v56 = vpop.f32.mrb[36].mxu0 }
 0x188   :  { %v875_v23 = vpop.f32.mrb[37].mxu0 }
 0x18b   :  { %v4569_v0 = vpop.f32.mrb[38].mxu0 }
 0x18c   :  { %v885_v31 = vpop.f32.mrb[39].mxu0 }
 0x18f   :  { %v4572_v37 = vpop.f32.mrb[40].mxu0 }
 0x190   :  { %v895_v25 = vpop.f32.mrb[41].mxu0 }
 0x193   :  { %v7328_v43 = vpop.f32.mrb[42].mxu0 }
 0x194   :  { %v7330_v61 = vpop.f32.mrb[43].mxu0 }
 0x197   :  { %v7332_v9 = vpop.f32.mrb[44].mxu0 }
 0x198   :  { %v7334_v5 = vpop.f32.mrb[45].mxu0 }
 0x19b   :  { %v7336_v49 = vpop.f32.mrb[46].mxu0 }
 0x19c   :  { %v7338_v24 = vpop.f32.mrb[47].mxu0 }
 0x19f   :  { %v7340_v3 = vpop.f32.mrb[48].mxu0 }
 0x1a0   :  { %v7342_v15 = vpop.f32.mrb[49].mxu0 }
 0x1a3   :  { %v7344_v57 = vpop.f32.mrb[50].mxu0 }
 0x1a4   :  { %v7346_v47 = vpop.f32.mrb[51].mxu0 }
 0x1a7   :  { %v7348_v13 = vpop.f32.mrb[52].mxu0 }
 0x1a8   :  { %v7350_v54 = vpop.f32.mrb[53].mxu0 }
 0x1f3   :  { %v4996_v52 = vpop.f32.mrb[72].mxu0 }
 0x1f4   :  { %v7352_v62 = vpop.f32.mrb[73].mxu0  ;;  %v3289_v18 = vrot.slane %v4996_v52, 1 }
 0x1f5   :  { %7691 = vst [vmem:[#allocation37_spill] sm:$0xff] %v7352_v62  ;;  %v3288_v32 = vrot.slane %v7352_v62, 1 }
 0x1f7   :  { %v4999_v48 = vpop.f32.mrb[74].mxu0 }
 0x1f8   :  { %v3291_v2 = vrot.slane %v4999_v48, 1  ;;  %v5082_v33 = vpop.f32.mrb[18].mxu1  ;;  %v2234_v4 = vpop.f32.mrb[75].mxu0 }
 0x1f9   :  { %v5438_v39 = vadd.f32 %v5082_v33, %v4566_v56  ;;  %v3290_v7 = vrot.slane %v2234_v4, 1  ;;  %v2523_v14 = vpop.f32.mrb[19].mxu1  ;;  %v3361_v4 = vsel %vm3326_vm0, %v3288_v32, %v3289_v18 }
 0x1fa   :  { %v5441_v60 = vadd.f32 %v2523_v14, %v875_v23 }
 0x1fb   :  { %v5439_v22 = vadd.f32 %v5438_v39, %v7357_v41  ;;  %v3359_v38 = vsel %vm3326_vm0, %v3290_v7, %v3291_v2  ;;  %v3360_v48 = vsel %vm3326_vm0, %v3289_v18, %v3290_v7  ;;  %v5002_v59 = vpop.f32.mrb[76].mxu0 }
 0x1fc   :  { %v5442_v35 = vadd.f32 %v5441_v60, %v7357_v41  ;;  %v3293_v26 = vrot.slane %v5002_v59, 1  ;;  %v5085_v30 = vpop.f32.mrb[20].mxu1  ;;  %v2244_v52 = vpop.f32.mrb[77].mxu0 }
 0x1fd   :  { %v5440_v14 = vadd.f32 %v5439_v22, %v3360_v48  ;;  %v5444_v33 = vadd.f32 %v5085_v30, %v4569_v0  ;;  %v3292_v39 = vrot.slane %v2244_v52, 1  ;;  %v2533_v56 = vpop.f32.mrb[21].mxu1 }
 0x1fe   :  { %v5443_v23 = vadd.f32 %v5442_v35, %v3361_v4  ;;  %v5447_v34 = vadd.f32 %v2533_v56, %v885_v31 }
 0x1ff   :  { %v3580_v21 = vadd.f32 %v5440_v14, %v6915_v45  ;;  %v5445_v7 = vadd.f32 %v5444_v33, %v7357_v41  ;;  %v3357_v59 = vsel %vm3326_vm0, %v3292_v39, %v3293_v26  ;;  %v3358_v60 = vsel %vm3326_vm0, %v3291_v2, %v3292_v39  ;;  %v5005_v62 = vpop.f32.mrb[78].mxu0 }
 0x200   :  { %v3579_v51 = vadd.f32 %v5443_v23, %v6897_v40  ;;  %v5448_v22 = vadd.f32 %v5447_v34, %v7357_v41  ;;  %v3295_v30 = vrot.slane %v5005_v62, 1  ;;  %v5088_v18 = vpop.f32.mrb[22].mxu1  ;;  %v2254_v0 = vpop.f32.mrb[79].mxu0 }
 0x201   :  { %3616 = vst [vmem:[%s7649_s3 + $0x8] sm:$0xff] %v3580_v21  ;;  %v5446_v45 = vadd.f32 %v5445_v7, %v3358_v60  ;;  %v5450_v35 = vadd.f32 %v5088_v18, %v4572_v37  ;;  %v3294_v31 = vrot.slane %v2254_v0, 1  ;;  %v2543_v48 = vpop.f32.mrb[23].mxu1 }
 0x202   :  { %3615 = vst [vmem:[%s7649_s3] sm:$0xff] %v3579_v51  ;;  %v5449_v2 = vadd.f32 %v5448_v22, %v3359_v38  ;;  %v5453_v52 = vadd.f32 %v2543_v48, %v895_v25 }
 0x203   :  { %v3582_v40 = vadd.f32 %v5446_v45, %v6929_v12  ;;  %v5451_v62 = vadd.f32 %v5450_v35, %v7357_v41  ;;  %v3355_v34 = vsel %vm3326_vm0, %v3294_v31, %v3295_v30  ;;  %v3356_v21 = vsel %vm3326_vm0, %v3293_v26, %v3294_v31  ;;  %v5008_v4 = vpop.f32.mrb[80].mxu0 }
 0x204   :  { %v3581_v37 = vadd.f32 %v5449_v2, %v6911_v1  ;;  %v5454_v14 = vadd.f32 %v5453_v52, %v7357_v41  ;;  %v3297_v33 = vrot.slane %v5008_v4, 1  ;;  %v5091_v39 = vpop.f32.mrb[24].mxu1  ;;  %v2264_v51 = vpop.f32.mrb[81].mxu0 }
 0x205   :  { %3618 = vst [vmem:[%s7649_s3 + $0x18] sm:$0xff] %v3582_v40  ;;  %v5452_v12 = vadd.f32 %v5451_v62, %v3356_v21  ;;  %v5456_v38 = vadd.f32 %v5091_v39, %v7328_v43  ;;  %v3296_v25 = vrot.slane %v2264_v51, 1  ;;  %v2553_v56 = vpop.f32.mrb[25].mxu1 }
 0x206   :  { %3617 = vst [vmem:[%s7649_s3 + $0x10] sm:$0xff] %v3581_v37  ;;  %v5455_v26 = vadd.f32 %v5454_v14, %v3357_v59  ;;  %v5459_v1 = vadd.f32 %v2553_v56, %v7330_v61 }
 0x207   :  { %v3584_v23 = vadd.f32 %v5452_v12, %v6943_v11  ;;  %v5457_v7 = vadd.f32 %v5456_v38, %v7357_v41  ;;  %v3353_v60 = vsel %vm3326_vm0, %v3296_v25, %v3297_v33  ;;  %v3354_v22 = vsel %vm3326_vm0, %v3295_v30, %v3296_v25  ;;  %v5011_v43 = vpop.f32.mrb[82].mxu0 }
 0x208   :  { %v3583_v18 = vadd.f32 %v5455_v26, %v6925_v50  ;;  %v5460_v0 = vadd.f32 %v5459_v1, %v7357_v41  ;;  %v3299_v45 = vrot.slane %v5011_v43, 1  ;;  %v5094_v35 = vpop.f32.mrb[26].mxu1  ;;  %v2274_v59 = vpop.f32.mrb[83].mxu0 }
 0x209   :  { %3620 = vst [vmem:[%s7649_s3 + $0x28] sm:$0xff] %v3584_v23  ;;  %v5458_v11 = vadd.f32 %v5457_v7, %v3354_v22  ;;  %v5462_v61 = vadd.f32 %v5094_v35, %v7332_v9  ;;  %v3298_v31 = vrot.slane %v2274_v59, 1  ;;  %v2563_v48 = vpop.f32.mrb[27].mxu1 }
 0x20a   :  { %3619 = vst [vmem:[%s7649_s3 + $0x20] sm:$0xff] %v3583_v18  ;;  %v5461_v30 = vadd.f32 %v5460_v0, %v3355_v34  ;;  %v5465_v50 = vadd.f32 %v2563_v48, %v7334_v5 }
 0x20b   :  { %v3586_v2 = vadd.f32 %v5458_v11, %v6957_v29  ;;  %v5463_v52 = vadd.f32 %v5462_v61, %v7357_v41  ;;  %v3351_v40 = vsel %vm3326_vm0, %v3298_v31, %v3299_v45  ;;  %v3352_v62 = vsel %vm3326_vm0, %v3297_v33, %v3298_v31  ;;  %v5014_v9 = vpop.f32.mrb[84].mxu0 }
 0x20c   :  { %v3585_v21 = vadd.f32 %v5461_v30, %v6939_v6  ;;  %v5466_v4 = vadd.f32 %v5465_v50, %v7357_v41  ;;  %v3301_v37 = vrot.slane %v5014_v9, 1  ;;  %v5097_v14 = vpop.f32.mrb[28].mxu1  ;;  %v2284_v34 = vpop.f32.mrb[85].mxu0 }
 0x20d   :  { %3622 = vst [vmem:[%s7649_s3 + $0x38] sm:$0xff] %v3586_v2  ;;  %v5464_v5 = vadd.f32 %v5463_v52, %v3352_v62  ;;  %v5468_v29 = vadd.f32 %v5097_v14, %v7336_v49  ;;  %v3300_v39 = vrot.slane %v2284_v34, 1  ;;  %v2573_v51 = vpop.f32.mrb[29].mxu1 }
 0x20e   :  { %3621 = vst [vmem:[%s7649_s3 + $0x30] sm:$0xff] %v3585_v21  ;;  %v5467_v33 = vadd.f32 %v5466_v4, %v3353_v60  ;;  %v5471_v6 = vadd.f32 %v2573_v51, %v7338_v24 }
 0x20f   :  { %v3588_v12 = vadd.f32 %v5464_v5, %v6971_v16  ;;  %v5469_v38 = vadd.f32 %v5468_v29, %v7357_v41  ;;  %v3349_v25 = vsel %vm3326_vm0, %v3300_v39, %v3301_v37  ;;  %v3350_v56 = vsel %vm3326_vm0, %v3299_v45, %v3300_v39  ;;  %v5017_v49 = vpop.f32.mrb[86].mxu0 }
 0x210   :  { %v3587_v26 = vadd.f32 %v5467_v33, %v6953_v55  ;;  %v5472_v1 = vadd.f32 %v5471_v6, %v7357_v41  ;;  %v3303_v23 = vrot.slane %v5017_v49, 1  ;;  %v5100_v7 = vpop.f32.mrb[30].mxu1  ;;  %v2294_v60 = vpop.f32.mrb[87].mxu0 }
 0x211   :  { %3624 = vst [vmem:[%s7649_s3 + $0x48] sm:$0xff] %v3588_v12  ;;  %v5470_v16 = vadd.f32 %v5469_v38, %v3350_v56  ;;  %v5474_v24 = vadd.f32 %v5100_v7, %v7340_v3  ;;  %v3302_v22 = vrot.slane %v2294_v60, 1  ;;  %v2583_v43 = vpop.f32.mrb[31].mxu1 }
 0x212   :  { %3623 = vst [vmem:[%s7649_s3 + $0x40] sm:$0xff] %v3587_v26  ;;  %v5473_v18 = vadd.f32 %v5472_v1, %v3351_v40  ;;  %v5477_v55 = vadd.f32 %v2583_v43, %v7342_v15 }
 0x213   :  { %v3590_v0 = vadd.f32 %v5470_v16, %v6985_v46  ;;  %v5475_v45 = vadd.f32 %v5474_v24, %v7357_v41  ;;  %v3347_v35 = vsel %vm3326_vm0, %v3302_v22, %v3303_v23  ;;  %v3348_v59 = vsel %vm3326_vm0, %v3301_v37, %v3302_v22  ;;  %v5020_v3 = vpop.f32.mrb[88].mxu0 }
 0x214   :  { %v3589_v11 = vadd.f32 %v5473_v18, %v6967_v10  ;;  %v5478_v61 = vadd.f32 %v5477_v55, %v7357_v41  ;;  %v3305_v31 = vrot.slane %v5020_v3, 1  ;;  %v5103_v48 = vpop.f32.mrb[32].mxu1  ;;  %v2304_v30 = vpop.f32.mrb[89].mxu0 }
 0x215   :  { %3626 = vst [vmem:[%s7649_s3 + $0x58] sm:$0xff] %v3590_v0  ;;  %v5476_v46 = vadd.f32 %v5475_v45, %v3348_v59  ;;  %v5480_v15 = vadd.f32 %v5103_v48, %v7344_v57  ;;  %v3304_v50 = vrot.slane %v2304_v30, 1  ;;  %v2593_v2 = vpop.f32.mrb[33].mxu1 }
 0x216   :  { %3625 = vst [vmem:[%s7649_s3 + $0x50] sm:$0xff] %v3589_v11  ;;  %v5479_v52 = vadd.f32 %v5478_v61, %v3349_v25  ;;  %v5483_v10 = vadd.f32 %v2593_v2, %v7346_v47 }
 0x217   :  { %v3592_v40 = vadd.f32 %v5476_v46, %v6996_v28  ;;  %v5481_v62 = vadd.f32 %v5480_v15, %v7357_v41  ;;  %v3345_v9 = vsel %vm3326_vm0, %v3304_v50, %v3305_v31  ;;  %v3346_v21 = vsel %vm3326_vm0, %v3303_v23, %v3304_v50  ;;  %v5023_v57 = vpop.f32.mrb[90].mxu0  ;;  %v7692_v46 = vld [vmem:[#allocation8_spill] sm:$0xff] }
 0x218   :  { %v3591_v4 = vadd.f32 %v5479_v52, %v6981_v42  ;;  %v5484_v37 = vadd.f32 %v5483_v10, %v7357_v41  ;;  %v3307_v14 = vrot.slane %v5023_v57, 1  ;;  %v5106_v34 = vpop.f32.mrb[34].mxu1  ;;  %v2314_v5 = vpop.f32.mrb[91].mxu0  ;;  %v7694_v57 = vld [vmem:[#allocation24_spill] sm:$0xff] }
 0x219   :  { %3628 = vst [vmem:[%s7649_s3 + $0x68] sm:$0xff] %v3592_v40  ;;  %v5482_v28 = vadd.f32 %v5481_v62, %v3346_v21  ;;  %v5486_v47 = vadd.f32 %v5106_v34, %v7348_v13  ;;  %v3306_v29 = vrot.slane %v2314_v5, 1  ;;  %v2603_v39 = vpop.f32.mrb[35].mxu1 }
 0x21a   :  { %3627 = vst [vmem:[%s7649_s3 + $0x60] sm:$0xff] %v3591_v4  ;;  %v5485_v51 = vadd.f32 %v5484_v37, %v3347_v35  ;;  %v5489_v42 = vadd.f32 %v2603_v39, %v7350_v54  ;;  %v7695_v37 = vld [vmem:[#allocation11_spill] sm:$0xff] }
 0x21b   :  { %v3594_v33 = vadd.f32 %v5482_v28, %v7007_v44  ;;  %v5487_v6 = vadd.f32 %v5486_v47, %v7357_v41  ;;  %v3343_v12 = vsel %vm3326_vm0, %v3306_v29, %v3307_v14  ;;  %v3344_v38 = vsel %vm3326_vm0, %v3305_v31, %v3306_v29  ;;  %v5026_v13 = vpop.f32.mrb[92].mxu0  ;;  %v7696_v29 = vld [vmem:[#allocation9_spill] sm:$0xff] }
 0x21c   :  { %v3593_v25 = vadd.f32 %v5485_v51, %v6992_v27  ;;  %v5490_v56 = vadd.f32 %v5489_v42, %v7357_v41  ;;  %v3309_v49 = vrot.slane %v5026_v13, 1  ;;  %v5109_v26 = vpop.f32.mrb[0].mxu1  ;;  %v2324_v1 = vpop.f32.mrb[93].mxu0 }
 0x21d   :  { %3630 = vst [vmem:[%s7649_s3 + $0x78] sm:$0xff] %v3594_v33  ;;  %v5488_v44 = vadd.f32 %v5487_v6, %v3344_v38  ;;  %v5492_v54 = vadd.f32 %v5109_v26, %v7286_v53  ;;  %v3308_v23 = vrot.slane %v2324_v1, 1  ;;  %v2613_v7 = vpop.f32.mrb[1].mxu1  ;;  %v7697_v38 = vld [vmem:[#allocation25_spill] sm:$0xff]  ;;  %v7698_v26 = vld [vmem:[#allocation26_spill] sm:$0xff] }
 0x21e   :  { %3629 = vst [vmem:[%s7649_s3 + $0x70] sm:$0xff] %v3593_v25  ;;  %v5491_v60 = vadd.f32 %v5490_v56, %v3345_v9  ;;  %v5495_v27 = vadd.f32 %v2613_v7, %v7291_v63 }
 0x21f   :  { %v3596_v16 = vadd.f32 %v5488_v44, %v7027_v17  ;;  %v5493_v24 = vadd.f32 %v5492_v54, %v7357_v41  ;;  %v3341_v22 = vsel %vm3326_vm0, %v3308_v23, %v3309_v49  ;;  %v3342_v43 = vsel %vm3326_vm0, %v3307_v14, %v3308_v23  ;;  %v5029_v53 = vpop.f32.mrb[94].mxu0  ;;  %v7699_v44 = vld [vmem:[#allocation13_spill] sm:$0xff] }
 0x220   :  { %v3595_v18 = vadd.f32 %v5491_v60, %v7003_v19  ;;  %v5496_v55 = vadd.f32 %v5495_v27, %v7357_v41  ;;  %v3311_v0 = vrot.slane %v5029_v53, 1  ;;  %v5112_v45 = vpop.f32.mrb[2].mxu1  ;;  %v2334_v35 = vpop.f32.mrb[95].mxu0 }
 0x221   :  { %3632 = vst [vmem:[%s7649_s3 + $0x88] sm:$0xff] %v3596_v16  ;;  %v5494_v17 = vadd.f32 %v5493_v24, %v3342_v43  ;;  %v5498_v63 = vadd.f32 %v5112_v45, %v7296_v8  ;;  %v3310_v59 = vrot.slane %v2334_v35, 1  ;;  %v2623_v3 = vpop.f32.mrb[3].mxu1  ;;  %v7700_v16 = vld [vmem:[#allocation10_spill] sm:$0xff] }
 0x222   :  { %3631 = vst [vmem:[%s7649_s3 + $0x80] sm:$0xff] %v3595_v18  ;;  %v5497_v11 = vadd.f32 %v5496_v55, %v3343_v12  ;;  %v5501_v19 = vadd.f32 %v2623_v3, %v7298_v20  ;;  %v7693_v20 = vld [vmem:[#allocation23_spill] sm:$0xff] }
 0x223   :  { %v3598_v61 = vadd.f32 %v5494_v17, %v7047_v58  ;;  %v5499_v31 = vadd.f32 %v5498_v63, %v7357_v41  ;;  %v3339_v48 = vsel %vm3326_vm0, %v3310_v59, %v3311_v0  ;;  %v3340_v30 = vsel %vm3326_vm0, %v3309_v49, %v3310_v59  ;;  %v5032_v8 = vpop.f32.mrb[96].mxu0  ;;  %v7702_v59 = vld [vmem:[#allocation28_spill] sm:$0xff] }
 0x224   :  { %v3597_v15 = vadd.f32 %v5497_v11, %v7692_v46  ;;  %v5502_v50 = vadd.f32 %v5501_v19, %v7357_v41  ;;  %v3313_v2 = vrot.slane %v5032_v8, 1  ;;  %v5115_v52 = vpop.f32.mrb[4].mxu1  ;;  %v2344_v10 = vpop.f32.mrb[97].mxu0  ;;  %v7703_v11 = vld [vmem:[#allocation15_spill] sm:$0xff]  ;;  %v7704_v8 = vld [vmem:[#allocation12_spill] sm:$0xff] }
 0x225   :  { %3634 = vst [vmem:[%s7649_s3 + $0x98] sm:$0xff] %v3598_v61  ;;  %v5500_v58 = vadd.f32 %v5499_v31, %v3340_v30  ;;  %v5504_v40 = vadd.f32 %v5115_v52, %v7693_v20  ;;  %v3312_v62 = vrot.slane %v2344_v10, 1  ;;  %v2633_v9 = vpop.f32.mrb[5].mxu1 }
 0x226   :  { %3633 = vst [vmem:[%s7649_s3 + $0x90] sm:$0xff] %v3597_v15  ;;  %v5503_v21 = vadd.f32 %v5502_v50, %v3341_v22  ;;  %v5507_v4 = vadd.f32 %v2633_v9, %v7694_v57 }
 0x227   :  { %v3600_v14 = vadd.f32 %v5500_v58, %v7695_v37  ;;  %v5505_v34 = vadd.f32 %v5504_v40, %v7357_v41  ;;  %v3337_v5 = vsel %vm3326_vm0, %v3312_v62, %v3313_v2  ;;  %v3338_v28 = vsel %vm3326_vm0, %v3311_v0, %v3312_v62  ;;  %v5035_v47 = vpop.f32.mrb[98].mxu0  ;;  %v7701_v0 = vld [vmem:[#allocation27_spill] sm:$0xff]  ;;  %v7705_v58 = vld [vmem:[#allocation29_spill] sm:$0xff] }
 0x228   :  { %v3599_v39 = vadd.f32 %v5503_v21, %v7696_v29  ;;  %v5508_v51 = vadd.f32 %v5507_v4, %v7357_v41  ;;  %v3315_v42 = vrot.slane %v5035_v47, 1  ;;  %v5118_v33 = vpop.f32.mrb[6].mxu1  ;;  %v2354_v6 = vpop.f32.mrb[99].mxu0  ;;  %v7706_v21 = vld [vmem:[#allocation30_spill] sm:$0xff]  ;;  %v7707_v4 = vld [vmem:[#allocation17_spill] sm:$0xff] }
 0x229   :  { %3636 = vst [vmem:[%s7649_s3 + $0xa8] sm:$0xff] %v3600_v14  ;;  %v5506_v12 = vadd.f32 %v5505_v34, %v3338_v28  ;;  %v5510_v13 = vadd.f32 %v5118_v33, %v7697_v38  ;;  %v3314_v25 = vrot.slane %v2354_v6, 1  ;;  %v2643_v56 = vpop.f32.mrb[7].mxu1  ;;  %v7708_v47 = vld [vmem:[#allocation14_spill] sm:$0xff] }
 0x22a   :  { %3635 = vst [vmem:[%s7649_s3 + $0xa0] sm:$0xff] %v3599_v39  ;;  %v5509_v49 = vadd.f32 %v5508_v51, %v3339_v48  ;;  %v5513_v1 = vadd.f32 %v2643_v56, %v7698_v26 }
 0x22b   :  { %v3602_v54 = vadd.f32 %v5506_v12, %v7699_v44  ;;  %v5511_v23 = vadd.f32 %v5510_v13, %v7357_v41  ;;  %v3335_v7 = vsel %vm3326_vm0, %v3314_v25, %v3315_v42  ;;  %v3336_v60 = vsel %vm3326_vm0, %v3313_v2, %v3314_v25  ;;  %v5038_v27 = vpop.f32.mrb[100].mxu0  ;;  %v7709_v12 = vld [vmem:[#allocation31_spill] sm:$0xff] }
 0x22c   :  { %v3601_v24 = vadd.f32 %v5509_v49, %v7700_v16  ;;  %v5514_v22 = vadd.f32 %v5513_v1, %v7357_v41  ;;  %v3317_v43 = vrot.slane %v5038_v27, 1  ;;  %v5121_v53 = vpop.f32.mrb[8].mxu1  ;;  %v2364_v18 = vpop.f32.mrb[101].mxu0  ;;  %v7710_v49 = vld [vmem:[#allocation32_spill] sm:$0xff]  ;;  %v7711_v1 = vld [vmem:[#allocation19_spill] sm:$0xff] }
 0x22d   :  { %3638 = vst [vmem:[%s7649_s3 + $0xb8] sm:$0xff] %v3602_v54  ;;  %v5512_v55 = vadd.f32 %v5511_v23, %v3336_v60  ;;  %v5516_v45 = vadd.f32 %v5121_v53, %v7701_v0  ;;  %v3316_v35 = vrot.slane %v2364_v18, 1  ;;  %v2653_v17 = vpop.f32.mrb[9].mxu1  ;;  %v7712_v27 = vld [vmem:[#allocation16_spill] sm:$0xff] }
 0x22e   :  { %3637 = vst [vmem:[%s7649_s3 + $0xb0] sm:$0xff] %v3601_v24  ;;  %v5515_v63 = vadd.f32 %v5514_v22, %v3337_v5  ;;  %v5519_v3 = vadd.f32 %v2653_v17, %v7702_v59 }
 0x22f   :  { %v3604_v19 = vadd.f32 %v5512_v55, %v7703_v11  ;;  %v5517_v61 = vadd.f32 %v5516_v45, %v7357_v41  ;;  %v3333_v31 = vsel %vm3326_vm0, %v3316_v35, %v3317_v43  ;;  %v3334_v48 = vsel %vm3326_vm0, %v3315_v42, %v3316_v35  ;;  %v5041_v30 = vpop.f32.mrb[102].mxu0  ;;  %v7713_v55 = vld [vmem:[#allocation33_spill] sm:$0xff] }
 0x230   :  { %v3603_v46 = vadd.f32 %v5515_v63, %v7704_v8  ;;  %v5520_v15 = vadd.f32 %v5519_v3, %v7357_v41  ;;  %v3319_v50 = vrot.slane %v5041_v30, 1  ;;  %v5124_v2 = vpop.f32.mrb[10].mxu1  ;;  %v2374_v52 = vpop.f32.mrb[103].mxu0  ;;  %v7714_v63 = vld [vmem:[#allocation34_spill] sm:$0xff] }
 0x231   :  { %3640 = vst [vmem:[%s7649_s3 + $0xc8] sm:$0xff] %v3604_v19  ;;  %v5518_v10 = vadd.f32 %v5517_v61, %v3334_v48  ;;  %v5522_v20 = vadd.f32 %v5124_v2, %v7705_v58  ;;  %v3318_v40 = vrot.slane %v2374_v52, 1  ;;  %v2663_v62 = vpop.f32.mrb[11].mxu1  ;;  %v7715_v3 = vld [vmem:[#allocation22_spill] sm:$0xff]  ;;  %v7718_v58 = vld [vmem:[#allocation36_spill] sm:$0xff] }
 0x232   :  { %3639 = vst [vmem:[%s7649_s3 + $0xc0] sm:$0xff] %v3603_v46  ;;  %v5521_v9 = vadd.f32 %v5520_v15, %v3335_v7  ;;  %v5525_v57 = vadd.f32 %v2663_v62, %v7706_v21  ;;  %v7716_v48 = vld [vmem:[#allocation18_spill] sm:$0xff] }
 0x233   :  { %v3606_v37 = vadd.f32 %v5518_v10, %v7707_v4  ;;  %v5523_v14 = vadd.f32 %v5522_v20, %v7357_v41  ;;  %v3331_v34 = vsel %vm3326_vm0, %v3318_v40, %v3319_v50  ;;  %v3332_v5 = vsel %vm3326_vm0, %v3317_v43, %v3318_v40  ;;  %v5044_v28 = vpop.f32.mrb[104].mxu0  ;;  %v7719_v40 = vld [vmem:[#allocation20_spill] sm:$0xff]  ;;  %v7721_v4 = vld [vmem:[#allocation21_spill] sm:$0xff] }
 0x234   :  { %v3605_v29 = vadd.f32 %v5521_v9, %v7708_v47  ;;  %v5526_v39 = vadd.f32 %v5525_v57, %v7357_v41  ;;  %v3321_v51 = vrot.slane %v5044_v28, 1  ;;  %v5127_v42 = vpop.f32.mrb[12].mxu1  ;;  %v2384_v33 = vpop.f32.mrb[105].mxu0  ;;  %v7722_v28 = vld [vmem:[#allocation7_spill] sm:$0xff] }
 0x235   :  { %3642 = vst [vmem:[%s7649_s3 + $0xd8] sm:$0xff] %v3606_v37  ;;  %v5524_v6 = vadd.f32 %v5523_v14, %v3332_v5  ;;  %v5528_v38 = vadd.f32 %v5127_v42, %v7709_v12  ;;  %v3320_v13 = vrot.slane %v2384_v33, 1  ;;  %v2673_v25 = vpop.f32.mrb[13].mxu1 }
 0x236   :  { %3641 = vst [vmem:[%s7649_s3 + $0xd0] sm:$0xff] %v3605_v29  ;;  %v5527_v56 = vadd.f32 %v5526_v39, %v3333_v31  ;;  %v5531_v26 = vadd.f32 %v2673_v25, %v7710_v49  ;;  %v7723_v29 = vld [vmem:[#allocation6_spill] sm:$0xff] }
 0x237   :  { %v3608_v44 = vadd.f32 %v5524_v6, %v7711_v1  ;;  %v5529_v54 = vadd.f32 %v5528_v38, %v7357_v41  ;;  %v3329_v23 = vsel %vm3326_vm0, %v3320_v13, %v3321_v51  ;;  %v3330_v7 = vsel %vm3326_vm0, %v3319_v50, %v3320_v13  ;;  %v5047_v60 = vpop.f32.mrb[106].mxu0  ;;  %v7717_v50 = vld [vmem:[#allocation35_spill] sm:$0xff] }
 0x238   :  { %v3607_v16 = vadd.f32 %v5527_v56, %v7712_v27  ;;  %v5532_v24 = vadd.f32 %v5531_v26, %v7357_v41  ;;  %v3323_v22 = vrot.slane %v5047_v60, 1  ;;  %v5130_v43 = vpop.f32.mrb[14].mxu1  ;;  %v2394_v53 = vpop.f32.mrb[107].mxu0 }
 0x239   :  { %3644 = vst [vmem:[%s7649_s3 + $0xe8] sm:$0xff] %v3608_v44  ;;  %v5530_v18 = vadd.f32 %v5529_v54, %v3330_v7  ;;  %v5534_v0 = vadd.f32 %v5130_v43, %v7713_v55  ;;  %v3322_v45 = vrot.slane %v2394_v53, 1  ;;  %v2683_v35 = vpop.f32.mrb[15].mxu1 }
 0x23a   :  { %3643 = vst [vmem:[%s7649_s3 + $0xe0] sm:$0xff] %v3607_v16  ;;  %v5533_v17 = vadd.f32 %v5532_v24, %v3331_v34  ;;  %v5537_v59 = vadd.f32 %v2683_v35, %v7714_v63  ;;  %v3362_v57 = vsel %vm3326_vm0, %v3323_v22, %v3288_v32 }
 0x23b   :  { %v3610_v11 = vadd.f32 %v5530_v18, %v7715_v3  ;;  %v5535_v19 = vadd.f32 %v5534_v0, %v7357_v41  ;;  %v3327_v61 = vsel %vm3326_vm0, %v3322_v45, %v3323_v22  ;;  %v3328_v31 = vsel %vm3326_vm0, %v3321_v51, %v3322_v45 }
 0x23c   :  { %v3609_v30 = vadd.f32 %v5533_v17, %v7716_v48  ;;  %v5538_v8 = vadd.f32 %v5537_v59, %v7357_v41  ;;  %v5133_v46 = vpop.f32.mrb[16].mxu1 }
 0x23d   :  { %3646 = vst [vmem:[%s7649_s3 + $0xf8] sm:$0xff] %v3610_v11  ;;  %v5536_v15 = vadd.f32 %v5535_v19, %v3328_v31  ;;  %v5540_v2 = vadd.f32 %v5133_v46, %v7717_v50  ;;  %v2693_v52 = vpop.f32.mrb[17].mxu1 }
 0x23e   :  { %3645 = vst [vmem:[%s7649_s3 + $0xf0] sm:$0xff] %v3609_v30  ;;  %v5539_v10 = vadd.f32 %v5538_v8, %v3329_v23  ;;  %v5543_v20 = vadd.f32 %v2693_v52, %v7718_v58 }
 0x23f   :  { %v3612_v62 = vadd.f32 %v5536_v15, %v7719_v40  ;;  %v5541_v9 = vadd.f32 %v5540_v2, %v7357_v41 }
 0x240   :  { %v3611_v37 = vadd.f32 %v5539_v10, %v7721_v4  ;;  %v5544_v14 = vadd.f32 %v5543_v20, %v7357_v41 }
 0x241   :  { %3648 = vst [vmem:[%s7649_s3 + $0x108] sm:$0xff] %v3612_v62  ;;  %v5542_v34 = vadd.f32 %v5541_v9, %v3362_v57 }
 0x242   :  { %3647 = vst [vmem:[%s7649_s3 + $0x100] sm:$0xff] %v3611_v37  ;;  %v5545_v5 = vadd.f32 %v5544_v14, %v3327_v61 }
 0x243   :  { %v3614_v47 = vadd.f32 %v5542_v34, %v7722_v28 }
 0x244   :  { %v3613_v39 = vadd.f32 %v5545_v5, %v7723_v29 }
 0x245   :  { %3650 = vst [vmem:[%s7649_s3 + $0x118] sm:$0xff] %v3614_v47 }
 0x246   :  { %3649 = vst [vmem:[%s7649_s3 + $0x110] sm:$0xff] %v3613_v39 }

</bundles_post_ra>
